<compile_context>
chip_gen: v5e
topology: v5e:2x2
jax: 0.10.0
libtpu: 0.0.40
codegen_flags: <defaults>
</compile_context>

<pallas_src>
import functools

import jax
import jax.numpy as jnp
import numpy as np
from jax import lax
from jax.experimental import pallas as pl
from jax.experimental.pallas import tpu as pltpu


def _round_up(x, m):
    return ((x + m - 1) // m) * m


def _bilstm_classifier_kernel(x_ref, w_all_ref, whh_ref, b_all_ref,
                              wfc_ref, bfc_ref, out_ref, pre_ref,
                              *, bc, seq_len, hp, precision):
    Bc, T, HP = bc, seq_len, hp
    mx = whh_ref.dtype                       # MXU operand dtype (bf16 or f32)

    # --- One hoisted wide MXU matmul: forward + backward input-hidden
    # projections with biases folded in. Gate blocks are lane-padded to HP and
    # Bc is a multiple of 8, so every later slice is (8,128)-tile aligned.
    pre_ref[...] = (
        jnp.dot(x_ref[...], w_all_ref[...],
                preferred_element_type=jnp.float32, precision=precision)
        + b_all_ref[...])                     # (T*Bc, 8*HP)

    # --- Backward direction. PyTorch's lstm_out[:, -1, H:2H] is the FIRST step
    # of the reverse scan with zero (h0, c0): the W_hh_reverse term and the
    # forget-gate * c0 term vanish exactly, so only the last timestep's input
    # projection (upper 4*HP lanes of the fused result) is needed.
    gb = pre_ref[(T - 1) * Bc:T * Bc, 4 * HP:8 * HP]
    i_b = jax.nn.sigmoid(gb[:, 0:HP])
    g_b = jnp.tanh(gb[:, 2 * HP:3 * HP])
    o_b = jax.nn.sigmoid(gb[:, 3 * HP:4 * HP])
    h_bwd = o_b * jnp.tanh(i_b * g_b)         # (Bc, HP); padding lanes stay 0

    # --- Forward recurrence: statically unrolled; only the small recurrent
    # matmul sits on the serial chain. All gate slices are vreg-aligned
    # (lane offsets 0/HP/2HP/3HP), so no XLU rotations per step.
    # TODO(synk): on v7x, consider pltpu.matmul_push_rhs/matmul_acc_lhs to keep
    # W_hh resident in the MXU if the bundle dump shows it being re-staged.
    whh = whh_ref[...]                        # (HP, 4*HP), hoisted
    h = jnp.zeros((Bc, HP), jnp.float32)
    c = jnp.zeros((Bc, HP), jnp.float32)
    for t in range(T):                        # static unroll, static offsets
        gates = (pre_ref[t * Bc:(t + 1) * Bc, 0:4 * HP]
                 + jnp.dot(h.astype(mx), whh,
                           preferred_element_type=jnp.float32,
                           precision=precision))
        i = jax.nn.sigmoid(gates[:, 0:HP])
        f = jax.nn.sigmoid(gates[:, HP:2 * HP])
        g = jnp.tanh(gates[:, 2 * HP:3 * HP])
        o = jax.nn.sigmoid(gates[:, 3 * HP:4 * HP])
        c = f * c + i * g
        h = o * jnp.tanh(c)

    # TODO(synk): nn.Dropout(0.3) is identity in eval mode; training-mode
    # dropout masking is not implemented here.

    # --- Single fused FC on concat([h_fwd, h_bwd]) (both 128-lane aligned
    # blocks). wfc / bfc / out are lane-padded so this store is lane-dense.
    hcat = jnp.concatenate([h, h_bwd], axis=-1).astype(mx)   # (Bc, 2*HP)
    out_ref[...] = (
        jnp.dot(hcat, wfc_ref[...],
                preferred_element_type=jnp.float32, precision=precision)
        + bfc_ref[...])


def _pack_gate_cols(w, H, HP, n_gates=4):
    """(in_dim, n_gates*H) -> (in_dim, n_gates*HP), gate g at cols [g*HP, g*HP+H)."""
    out = jnp.zeros((w.shape[0], n_gates * HP), w.dtype)
    for g in range(n_gates):
        out = out.at[:, g * HP:g * HP + H].set(w[:, g * H:(g + 1) * H])
    return out


def sequence_classifier_forward(embeddings, params, matmul_dtype=jnp.bfloat16,
                                precision=None, num_batch_blocks=None):
    """embeddings: (B, T, E) batch-first, like the PyTorch module (eval mode).

    matmul_dtype: MXU operand dtype (bf16 recommended on all of v5e/v6e/v7x).
    precision:    forwarded to every jnp.dot (e.g. lax.Precision.HIGHEST when
                  matmul_dtype=float32 and bit-tight matmuls are required;
                  default precision is close enough for the checks below).
    num_batch_blocks: batch blocks for the "parallel" grid axis (v7x dual-TC);
                  auto-selected from the batch size when None.
    """
    B, T, E = embeddings.shape
    H = params["weight_hh_l0"].shape[1]
    C = params["fc_weight"].shape[0]

    HP = _round_up(H, 128)                    # per-gate lane padding
    C_pad = _round_up(C, 128)                 # lane-dense FC output store
    Bp = _round_up(max(B, 8), 8)              # sublane-aligned batch rows

    if num_batch_blocks is None:
        # v7x has 2 TensorCores; only split when there is enough work to
        # amortize the extra grid step (no effect on single-TC v5e/v6e).
        num_batch_blocks = 2 if (Bp >= 64 and Bp % 16 == 0) else 1
    NB = num_batch_blocks
    assert Bp % NB == 0 and (Bp // NB) % 8 == 0, "batch block must be 8-aligned"
    Bc = Bp // NB

    f32 = jnp.float32

    # ---- Weight / bias packing (gate blocks padded to HP lanes). PyTorch gate
    # order is (i, f, g, o) along the 4H axis.
    wih_f = _pack_gate_cols(params["weight_ih_l0"].T, H, HP)             # (E, 4HP)
    wih_b = _pack_gate_cols(params["weight_ih_l0_reverse"].T, H, HP)     # (E, 4HP)
    w_all = jnp.concatenate([wih_f, wih_b], axis=1).astype(matmul_dtype)  # (E, 8HP)

    b_f = _pack_gate_cols((params["bias_ih_l0"] +
                           params["bias_hh_l0"]).reshape(1, 4 * H), H, HP)
    b_b = _pack_gate_cols((params["bias_ih_l0_reverse"] +
                           params["bias_hh_l0_reverse"]).reshape(1, 4 * H), H, HP)
    b_all = jnp.concatenate([b_f, b_b], axis=1).astype(f32)               # (1, 8HP)

    whh = jnp.zeros((HP, 4 * HP), f32).at[:H, :].set(
        _pack_gate_cols(params["weight_hh_l0"].T, H, HP)).astype(matmul_dtype)
    # weight_hh_l0_reverse is not needed: the head reads the first reverse step,
    # whose hidden input is zero.

    fc_t = params["fc_weight"].T                                          # (2H, C)
    wfc = (jnp.zeros((2 * HP, C_pad), f32)
           .at[0:H, :C].set(fc_t[0:H])
           .at[HP:HP + H, :C].set(fc_t[H:2 * H])).astype(matmul_dtype)    # (2HP, Cp)
    bfc = jnp.zeros((1, C_pad), f32).at[0, :C].set(params["fc_bias"])

    # ---- Input: pad batch to Bp, split into NB blocks, time-major flatten so
    # per-timestep rows are contiguous, 8-sublane-aligned slices.
    x = jnp.zeros((Bp, T, E), f32).at[:B].set(embeddings)
    x = (x.reshape(NB, Bc, T, E).transpose(0, 2, 1, 3)
           .reshape(NB, T * Bc, E).astype(matmul_dtype))

    # Everything fits easily in VMEM at these shapes (weights + 8HP*T*Bc f32
    # scratch well under 1 MiB).
    # TODO(synk): for large T*B*E, pipeline x over a T-chunked ("arbitrary")
    # grid axis with h/c carried in scratch, budgeting 2x(double-buffered x
    # block) + pre scratch + weights under v7x's 64 MiB (32 MiB scoped) VMEM
    # and setting pltpu.CompilerParams(vmem_limit_bytes=...).
    kernel = functools.partial(_bilstm_classifier_kernel, bc=Bc, seq_len=T,
                               hp=HP, precision=precision)
    const0 = lambda i: (0, 0)
    out = pl.pallas_call(
        kernel,
        out_shape=jax.ShapeDtypeStruct((NB, Bc, C_pad), jnp.float32),
        grid=(NB,),
        in_specs=[
            pl.BlockSpec((None, T * Bc, E), lambda i: (i, 0, 0)),   # x (per block)
            pl.BlockSpec((E, 8 * HP), const0),                      # fused W_ih
            pl.BlockSpec((HP, 4 * HP), const0),                     # W_hh (fwd)
            pl.BlockSpec((1, 8 * HP), const0),                      # fused bias
            pl.BlockSpec((2 * HP, C_pad), const0),                  # FC weight
            pl.BlockSpec((1, C_pad), const0),                       # FC bias
        ],
        out_specs=pl.BlockSpec((None, Bc, C_pad), lambda i: (i, 0, 0)),
        scratch_shapes=[pltpu.VMEM((T * Bc, 8 * HP), jnp.float32)],
        compiler_params=pltpu.CompilerParams(
            dimension_semantics=("parallel",)),
    )(x, w_all, whh, b_all, wfc, bfc)
    return out.reshape(Bp, C_pad)[:B, :C]


def reference_forward(embeddings, params):
    """Pure-JAX reference of the PyTorch module (eval mode)."""
    B, T, E = embeddings.shape
    H = params["weight_hh_l0"].shape[1]

    def run_dir(xs, wih, whh, bih, bhh):
        h = jnp.zeros((B, H), jnp.float32)
        c = jnp.zeros((B, H), jnp.float32)
        outs = []
        for t in range(xs.shape[1]):
            gates = xs[:, t] @ wih.T + bih + h @ whh.T + bhh
            i, f, g, o = jnp.split(gates, 4, axis=-1)
            i = jax.nn.sigmoid(i); f = jax.nn.sigmoid(f)
            g = jnp.tanh(g); o = jax.nn.sigmoid(o)
            c = f * c + i * g
            h = o * jnp.tanh(c)
            outs.append(h)
        return jnp.stack(outs, axis=1)

    out_f = run_dir(embeddings, params["weight_ih_l0"], params["weight_hh_l0"],
                    params["bias_ih_l0"], params["bias_hh_l0"])
    out_b = run_dir(embeddings[:, ::-1], params["weight_ih_l0_reverse"],
                    params["weight_hh_l0_reverse"],
                    params["bias_ih_l0_reverse"], params["bias_hh_l0_reverse"])[:, ::-1]
    final = jnp.concatenate([out_f[:, -1], out_b[:, -1]], axis=-1)
    return final @ params["fc_weight"].T + params["fc_bias"]


def init_params(key, embed_dim, hidden_dim, num_classes):
    """Deterministic init mirroring nn.LSTM / nn.Linear parameter shapes."""
    ks = jax.random.split(key, 10)
    s_lstm = 1.0 / np.sqrt(hidden_dim)
    s_fc = 1.0 / np.sqrt(2 * hidden_dim)
    u = lambda k, shape, s: jax.random.uniform(k, shape, jnp.float32, -s, s)
    return {
        "weight_ih_l0":          u(ks[0], (4 * hidden_dim, embed_dim),  s_lstm),
        "weight_hh_l0":          u(ks[1], (4 * hidden_dim, hidden_dim), s_lstm),
        "bias_ih_l0":            u(ks[2], (4 * hidden_dim,),            s_lstm),
        "bias_hh_l0":            u(ks[3], (4 * hidden_dim,),            s_lstm),
        "weight_ih_l0_reverse":  u(ks[4], (4 * hidden_dim, embed_dim),  s_lstm),
        "weight_hh_l0_reverse":  u(ks[5], (4 * hidden_dim, hidden_dim), s_lstm),
        "bias_ih_l0_reverse":    u(ks[6], (4 * hidden_dim,),            s_lstm),
        "bias_hh_l0_reverse":    u(ks[7], (4 * hidden_dim,),            s_lstm),
        "fc_weight":             u(ks[8], (num_classes, 2 * hidden_dim), s_fc),
        "fc_bias":               u(ks[9], (num_classes,),                s_fc),
    }


if __name__ == "__main__":
    B, T, E, H, C = 2, 8, 32, 32, 4
    key = jax.random.PRNGKey(0)
    k_x, k_p, k_x2 = jax.random.split(key, 3)
    embeddings = jax.random.normal(k_x, (B, T, E), jnp.float32)
    params = init_params(k_p, E, H, C)

    ref = jax.block_until_ready(reference_forward(embeddings, params))

    # f32 MXU operands: tight check against the pure-JAX reference.
    logits_f32 = jax.block_until_ready(
        sequence_classifier_forward(embeddings, params, matmul_dtype=jnp.float32))
    np.testing.assert_allclose(np.asarray(logits_f32), np.asarray(ref),
                               rtol=2e-5, atol=2e-5)

    # bf16 MXU operands (default; right trade on v5e/v6e/v7x). f32 accumulation
    # and f32 cell/hidden state bound the error; tolerance loosened accordingly.
    logits_bf16 = jax.block_until_ready(
        sequence_classifier_forward(embeddings, params))
    np.testing.assert_allclose(np.asarray(logits_bf16), np.asarray(ref),
                               rtol=5e-2, atol=5e-2)

    # Larger batch exercising the batch-parallel grid path (v7x dual-TC).
    B2 = 32
    embeddings2 = jax.random.normal(k_x2, (B2, T, E), jnp.float32)
    ref2 = jax.block_until_ready(reference_forward(embeddings2, params))
    logits2 = jax.block_until_ready(
        sequence_classifier_forward(embeddings2, params,
                                    matmul_dtype=jnp.float32,
                                    num_batch_blocks=2))
    np.testing.assert_allclose(np.asarray(logits2), np.asarray(ref2),
                               rtol=2e-5, atol=2e-5)

    print("KERNEL_OK")
</pallas_src>

<mosaic_0001>
module attributes {stable_mosaic.version = 11 : i64} {
  func.func @_bilstm_classifier_kernel(%arg0: i32, %arg1: memref<1x64x32xf32, #tpu.memory_space<vmem>>, %arg2: memref<32x1024xf32, #tpu.memory_space<vmem>>, %arg3: memref<128x512xf32, #tpu.memory_space<vmem>>, %arg4: memref<1x1024xf32, #tpu.memory_space<vmem>>, %arg5: memref<256x128xf32, #tpu.memory_space<vmem>>, %arg6: memref<1x128xf32, #tpu.memory_space<vmem>>, %arg7: memref<1x8x128xf32, #tpu.memory_space<vmem>>, %arg8: memref<64x1024xf32, #tpu.memory_space<vmem>>) attributes {dimension_semantics = [#tpu.dimension_semantics<parallel>], iteration_bounds = array<i64: 1>, scalar_prefetch = 0 : i64, scratch_operands = 1 : i64, tpu.core_type = #tpu.core_type<tc>, window_params = [{transform_indices = @transform_0, window_bounds = array<i64: 1, 64, 32>}, {pipeline_mode = #tpu.pipeline_mode<synchronous>, transform_indices = @transform_1, window_bounds = array<i64: 32, 1024>}, {pipeline_mode = #tpu.pipeline_mode<synchronous>, transform_indices = @transform_2, window_bounds = array<i64: 128, 512>}, {pipeline_mode = #tpu.pipeline_mode<synchronous>, transform_indices = @transform_3, window_bounds = array<i64: 1, 1024>}, {pipeline_mode = #tpu.pipeline_mode<synchronous>, transform_indices = @transform_4, window_bounds = array<i64: 256, 128>}, {pipeline_mode = #tpu.pipeline_mode<synchronous>, transform_indices = @transform_5, window_bounds = array<i64: 1, 128>}, {transform_indices = @transform_6, window_bounds = array<i64: 1, 8, 128>}]} {
    %c0 = arith.constant 0 : index
    %c0_0 = arith.constant 0 : index
    %c0_1 = arith.constant 0 : index
    %0 = vector.load %arg1[%c0, %c0_0, %c0_1] : memref<1x64x32xf32, #tpu.memory_space<vmem>>, vector<1x64x32xf32>
    %1 = vector.shape_cast %0 : vector<1x64x32xf32> to vector<64x32xf32>
    %c0_2 = arith.constant 0 : index
    %c0_3 = arith.constant 0 : index
    %2 = vector.load %arg2[%c0_2, %c0_3] : memref<32x1024xf32, #tpu.memory_space<vmem>>, vector<32x1024xf32>
    %cst = arith.constant dense<0.000000e+00> : vector<64x1024xf32>
    %3 = tpu.matmul %1, %2, %cst {dimension_numbers = #tpu.dot_dimension_numbers<[1], [0], [0], [1], [0, 0, 1, 1], [], []>} : vector<64x32xf32>, vector<32x1024xf32>, vector<64x1024xf32> -> vector<64x1024xf32>
    %c0_4 = arith.constant 0 : index
    %c0_5 = arith.constant 0 : index
    %4 = vector.load %arg4[%c0_4, %c0_5] : memref<1x1024xf32, #tpu.memory_space<vmem>>, vector<1x1024xf32>
    %5 = vector.broadcast %4 : vector<1x1024xf32> to vector<64x1024xf32>
    %6 = arith.addf %3, %5 : vector<64x1024xf32>
    %c0_6 = arith.constant 0 : index
    %c0_7 = arith.constant 0 : index
    %7 = vector.load %arg8[%c0_6, %c0_7] : memref<64x1024xf32, #tpu.memory_space<vmem>>, vector<64x1024xf32>
    tpu.vector_store %arg8[%c0_6, %c0_7], %6 {strides = array<i32>} : memref<64x1024xf32, #tpu.memory_space<vmem>>, vector<64x1024xf32>,
    %c56 = arith.constant 56 : index
    %c512 = arith.constant 512 : index
    %8 = vector.load %arg8[%c56, %c512] : memref<64x1024xf32, #tpu.memory_space<vmem>>, vector<8x512xf32>
    %9 = vector.extract_strided_slice %8 {offsets = [0, 0], sizes = [8, 128], strides = [1, 1]} : vector<8x512xf32> to vector<8x128xf32>
    %10 = arith.negf %9 : vector<8x128xf32>
    %11 = math.exp %10 : vector<8x128xf32>
    %cst_8 = arith.constant 1.000000e+00 : f32
    %12 = vector.broadcast %cst_8 : f32 to vector<8x128xf32>
    %13 = arith.addf %12, %11 : vector<8x128xf32>
    %14 = arith.divf %12, %13 : vector<8x128xf32>
    %15 = vector.extract_strided_slice %8 {offsets = [0, 256], sizes = [8, 128], strides = [1, 1]} : vector<8x512xf32> to vector<8x128xf32>
    %16 = math.tanh %15 : vector<8x128xf32>
    %17 = vector.extract_strided_slice %8 {offsets = [0, 384], sizes = [8, 128], strides = [1, 1]} : vector<8x512xf32> to vector<8x128xf32>
    %18 = arith.negf %17 : vector<8x128xf32>
    %19 = math.exp %18 : vector<8x128xf32>
    %cst_9 = arith.constant 1.000000e+00 : f32
    %20 = vector.broadcast %cst_9 : f32 to vector<8x128xf32>
    %21 = arith.addf %20, %19 : vector<8x128xf32>
    %22 = arith.divf %20, %21 : vector<8x128xf32>
    %23 = arith.mulf %14, %16 : vector<8x128xf32>
    %24 = math.tanh %23 : vector<8x128xf32>
    %25 = arith.mulf %22, %24 : vector<8x128xf32>
    %c0_10 = arith.constant 0 : index
    %c0_11 = arith.constant 0 : index
    %26 = vector.load %arg3[%c0_10, %c0_11] : memref<128x512xf32, #tpu.memory_space<vmem>>, vector<128x512xf32>
    %cst_12 = arith.constant 0.000000e+00 : f32
    %27 = vector.broadcast %cst_12 : f32 to vector<8x128xf32>
    %cst_13 = arith.constant 0.000000e+00 : f32
    %28 = vector.broadcast %cst_13 : f32 to vector<8x128xf32>
    %c0_14 = arith.constant 0 : index
    %c0_15 = arith.constant 0 : index
    %29 = vector.load %arg8[%c0_14, %c0_15] : memref<64x1024xf32, #tpu.memory_space<vmem>>, vector<8x512xf32>
    %cst_16 = arith.constant dense<0.000000e+00> : vector<8x512xf32>
    %30 = tpu.matmul %27, %26, %cst_16 {dimension_numbers = #tpu.dot_dimension_numbers<[1], [0], [0], [1], [0, 0, 1, 1], [], []>} : vector<8x128xf32>, vector<128x512xf32>, vector<8x512xf32> -> vector<8x512xf32>
    %31 = arith.addf %29, %30 : vector<8x512xf32>
    %32 = vector.extract_strided_slice %31 {offsets = [0, 0], sizes = [8, 128], strides = [1, 1]} : vector<8x512xf32> to vector<8x128xf32>
    %33 = arith.negf %32 : vector<8x128xf32>
    %34 = math.exp %33 : vector<8x128xf32>
    %cst_17 = arith.constant 1.000000e+00 : f32
    %35 = vector.broadcast %cst_17 : f32 to vector<8x128xf32>
    %36 = arith.addf %35, %34 : vector<8x128xf32>
    %37 = arith.divf %35, %36 : vector<8x128xf32>
    %38 = vector.extract_strided_slice %31 {offsets = [0, 128], sizes = [8, 128], strides = [1, 1]} : vector<8x512xf32> to vector<8x128xf32>
    %39 = arith.negf %38 : vector<8x128xf32>
    %40 = math.exp %39 : vector<8x128xf32>
    %cst_18 = arith.constant 1.000000e+00 : f32
    %41 = vector.broadcast %cst_18 : f32 to vector<8x128xf32>
    %42 = arith.addf %41, %40 : vector<8x128xf32>
    %43 = arith.divf %41, %42 : vector<8x128xf32>
    %44 = vector.extract_strided_slice %31 {offsets = [0, 256], sizes = [8, 128], strides = [1, 1]} : vector<8x512xf32> to vector<8x128xf32>
    %45 = math.tanh %44 : vector<8x128xf32>
    %46 = vector.extract_strided_slice %31 {offsets = [0, 384], sizes = [8, 128], strides = [1, 1]} : vector<8x512xf32> to vector<8x128xf32>
    %47 = arith.negf %46 : vector<8x128xf32>
    %48 = math.exp %47 : vector<8x128xf32>
    %cst_19 = arith.constant 1.000000e+00 : f32
    %49 = vector.broadcast %cst_19 : f32 to vector<8x128xf32>
    %50 = arith.addf %49, %48 : vector<8x128xf32>
    %51 = arith.divf %49, %50 : vector<8x128xf32>
    %52 = arith.mulf %43, %28 : vector<8x128xf32>
    %53 = arith.mulf %37, %45 : vector<8x128xf32>
    %54 = arith.addf %52, %53 : vector<8x128xf32>
    %55 = math.tanh %54 : vector<8x128xf32>
    %56 = arith.mulf %51, %55 : vector<8x128xf32>
    %c8 = arith.constant 8 : index
    %c0_20 = arith.constant 0 : index
    %57 = vector.load %arg8[%c8, %c0_20] : memref<64x1024xf32, #tpu.memory_space<vmem>>, vector<8x512xf32>
    %cst_21 = arith.constant dense<0.000000e+00> : vector<8x512xf32>
    %58 = tpu.matmul %56, %26, %cst_21 {dimension_numbers = #tpu.dot_dimension_numbers<[1], [0], [0], [1], [0, 0, 1, 1], [], []>} : vector<8x128xf32>, vector<128x512xf32>, vector<8x512xf32> -> vector<8x512xf32>
    %59 = arith.addf %57, %58 : vector<8x512xf32>
    %60 = vector.extract_strided_slice %59 {offsets = [0, 0], sizes = [8, 128], strides = [1, 1]} : vector<8x512xf32> to vector<8x128xf32>
    %61 = arith.negf %60 : vector<8x128xf32>
    %62 = math.exp %61 : vector<8x128xf32>
    %cst_22 = arith.constant 1.000000e+00 : f32
    %63 = vector.broadcast %cst_22 : f32 to vector<8x128xf32>
    %64 = arith.addf %63, %62 : vector<8x128xf32>
    %65 = arith.divf %63, %64 : vector<8x128xf32>
    %66 = vector.extract_strided_slice %59 {offsets = [0, 128], sizes = [8, 128], strides = [1, 1]} : vector<8x512xf32> to vector<8x128xf32>
    %67 = arith.negf %66 : vector<8x128xf32>
    %68 = math.exp %67 : vector<8x128xf32>
    %cst_23 = arith.constant 1.000000e+00 : f32
    %69 = vector.broadcast %cst_23 : f32 to vector<8x128xf32>
    %70 = arith.addf %69, %68 : vector<8x128xf32>
    %71 = arith.divf %69, %70 : vector<8x128xf32>
    %72 = vector.extract_strided_slice %59 {offsets = [0, 256], sizes = [8, 128], strides = [1, 1]} : vector<8x512xf32> to vector<8x128xf32>
    %73 = math.tanh %72 : vector<8x128xf32>
    %74 = vector.extract_strided_slice %59 {offsets = [0, 384], sizes = [8, 128], strides = [1, 1]} : vector<8x512xf32> to vector<8x128xf32>
    %75 = arith.negf %74 : vector<8x128xf32>
    %76 = math.exp %75 : vector<8x128xf32>
    %cst_24 = arith.constant 1.000000e+00 : f32
    %77 = vector.broadcast %cst_24 : f32 to vector<8x128xf32>
    %78 = arith.addf %77, %76 : vector<8x128xf32>
    %79 = arith.divf %77, %78 : vector<8x128xf32>
    %80 = arith.mulf %71, %54 : vector<8x128xf32>
    %81 = arith.mulf %65, %73 : vector<8x128xf32>
    %82 = arith.addf %80, %81 : vector<8x128xf32>
    %83 = math.tanh %82 : vector<8x128xf32>
    %84 = arith.mulf %79, %83 : vector<8x128xf32>
    %c16 = arith.constant 16 : index
    %c0_25 = arith.constant 0 : index
    %85 = vector.load %arg8[%c16, %c0_25] : memref<64x1024xf32, #tpu.memory_space<vmem>>, vector<8x512xf32>
    %cst_26 = arith.constant dense<0.000000e+00> : vector<8x512xf32>
    %86 = tpu.matmul %84, %26, %cst_26 {dimension_numbers = #tpu.dot_dimension_numbers<[1], [0], [0], [1], [0, 0, 1, 1], [], []>} : vector<8x128xf32>, vector<128x512xf32>, vector<8x512xf32> -> vector<8x512xf32>
    %87 = arith.addf %85, %86 : vector<8x512xf32>
    %88 = vector.extract_strided_slice %87 {offsets = [0, 0], sizes = [8, 128], strides = [1, 1]} : vector<8x512xf32> to vector<8x128xf32>
    %89 = arith.negf %88 : vector<8x128xf32>
    %90 = math.exp %89 : vector<8x128xf32>
    %cst_27 = arith.constant 1.000000e+00 : f32
    %91 = vector.broadcast %cst_27 : f32 to vector<8x128xf32>
    %92 = arith.addf %91, %90 : vector<8x128xf32>
    %93 = arith.divf %91, %92 : vector<8x128xf32>
    %94 = vector.extract_strided_slice %87 {offsets = [0, 128], sizes = [8, 128], strides = [1, 1]} : vector<8x512xf32> to vector<8x128xf32>
    %95 = arith.negf %94 : vector<8x128xf32>
    %96 = math.exp %95 : vector<8x128xf32>
    %cst_28 = arith.constant 1.000000e+00 : f32
    %97 = vector.broadcast %cst_28 : f32 to vector<8x128xf32>
    %98 = arith.addf %97, %96 : vector<8x128xf32>
    %99 = arith.divf %97, %98 : vector<8x128xf32>
    %100 = vector.extract_strided_slice %87 {offsets = [0, 256], sizes = [8, 128], strides = [1, 1]} : vector<8x512xf32> to vector<8x128xf32>
    %101 = math.tanh %100 : vector<8x128xf32>
    %102 = vector.extract_strided_slice %87 {offsets = [0, 384], sizes = [8, 128], strides = [1, 1]} : vector<8x512xf32> to vector<8x128xf32>
    %103 = arith.negf %102 : vector<8x128xf32>
    %104 = math.exp %103 : vector<8x128xf32>
    %cst_29 = arith.constant 1.000000e+00 : f32
    %105 = vector.broadcast %cst_29 : f32 to vector<8x128xf32>
    %106 = arith.addf %105, %104 : vector<8x128xf32>
    %107 = arith.divf %105, %106 : vector<8x128xf32>
    %108 = arith.mulf %99, %82 : vector<8x128xf32>
    %109 = arith.mulf %93, %101 : vector<8x128xf32>
    %110 = arith.addf %108, %109 : vector<8x128xf32>
    %111 = math.tanh %110 : vector<8x128xf32>
    %112 = arith.mulf %107, %111 : vector<8x128xf32>
    %c24 = arith.constant 24 : index
    %c0_30 = arith.constant 0 : index
    %113 = vector.load %arg8[%c24, %c0_30] : memref<64x1024xf32, #tpu.memory_space<vmem>>, vector<8x512xf32>
    %cst_31 = arith.constant dense<0.000000e+00> : vector<8x512xf32>
    %114 = tpu.matmul %112, %26, %cst_31 {dimension_numbers = #tpu.dot_dimension_numbers<[1], [0], [0], [1], [0, 0, 1, 1], [], []>} : vector<8x128xf32>, vector<128x512xf32>, vector<8x512xf32> -> vector<8x512xf32>
    %115 = arith.addf %113, %114 : vector<8x512xf32>
    %116 = vector.extract_strided_slice %115 {offsets = [0, 0], sizes = [8, 128], strides = [1, 1]} : vector<8x512xf32> to vector<8x128xf32>
    %117 = arith.negf %116 : vector<8x128xf32>
    %118 = math.exp %117 : vector<8x128xf32>
    %cst_32 = arith.constant 1.000000e+00 : f32
    %119 = vector.broadcast %cst_32 : f32 to vector<8x128xf32>
    %120 = arith.addf %119, %118 : vector<8x128xf32>
    %121 = arith.divf %119, %120 : vector<8x128xf32>
    %122 = vector.extract_strided_slice %115 {offsets = [0, 128], sizes = [8, 128], strides = [1, 1]} : vector<8x512xf32> to vector<8x128xf32>
    %123 = arith.negf %122 : vector<8x128xf32>
    %124 = math.exp %123 : vector<8x128xf32>
    %cst_33 = arith.constant 1.000000e+00 : f32
    %125 = vector.broadcast %cst_33 : f32 to vector<8x128xf32>
    %126 = arith.addf %125, %124 : vector<8x128xf32>
    %127 = arith.divf %125, %126 : vector<8x128xf32>
    %128 = vector.extract_strided_slice %115 {offsets = [0, 256], sizes = [8, 128], strides = [1, 1]} : vector<8x512xf32> to vector<8x128xf32>
    %129 = math.tanh %128 : vector<8x128xf32>
    %130 = vector.extract_strided_slice %115 {offsets = [0, 384], sizes = [8, 128], strides = [1, 1]} : vector<8x512xf32> to vector<8x128xf32>
    %131 = arith.negf %130 : vector<8x128xf32>
    %132 = math.exp %131 : vector<8x128xf32>
    %cst_34 = arith.constant 1.000000e+00 : f32
    %133 = vector.broadcast %cst_34 : f32 to vector<8x128xf32>
    %134 = arith.addf %133, %132 : vector<8x128xf32>
    %135 = arith.divf %133, %134 : vector<8x128xf32>
    %136 = arith.mulf %127, %110 : vector<8x128xf32>
    %137 = arith.mulf %121, %129 : vector<8x128xf32>
    %138 = arith.addf %136, %137 : vector<8x128xf32>
    %139 = math.tanh %138 : vector<8x128xf32>
    %140 = arith.mulf %135, %139 : vector<8x128xf32>
    %c32 = arith.constant 32 : index
    %c0_35 = arith.constant 0 : index
    %141 = vector.load %arg8[%c32, %c0_35] : memref<64x1024xf32, #tpu.memory_space<vmem>>, vector<8x512xf32>
    %cst_36 = arith.constant dense<0.000000e+00> : vector<8x512xf32>
    %142 = tpu.matmul %140, %26, %cst_36 {dimension_numbers = #tpu.dot_dimension_numbers<[1], [0], [0], [1], [0, 0, 1, 1], [], []>} : vector<8x128xf32>, vector<128x512xf32>, vector<8x512xf32> -> vector<8x512xf32>
    %143 = arith.addf %141, %142 : vector<8x512xf32>
    %144 = vector.extract_strided_slice %143 {offsets = [0, 0], sizes = [8, 128], strides = [1, 1]} : vector<8x512xf32> to vector<8x128xf32>
    %145 = arith.negf %144 : vector<8x128xf32>
    %146 = math.exp %145 : vector<8x128xf32>
    %cst_37 = arith.constant 1.000000e+00 : f32
    %147 = vector.broadcast %cst_37 : f32 to vector<8x128xf32>
    %148 = arith.addf %147, %146 : vector<8x128xf32>
    %149 = arith.divf %147, %148 : vector<8x128xf32>
    %150 = vector.extract_strided_slice %143 {offsets = [0, 128], sizes = [8, 128], strides = [1, 1]} : vector<8x512xf32> to vector<8x128xf32>
    %151 = arith.negf %150 : vector<8x128xf32>
    %152 = math.exp %151 : vector<8x128xf32>
    %cst_38 = arith.constant 1.000000e+00 : f32
    %153 = vector.broadcast %cst_38 : f32 to vector<8x128xf32>
    %154 = arith.addf %153, %152 : vector<8x128xf32>
    %155 = arith.divf %153, %154 : vector<8x128xf32>
    %156 = vector.extract_strided_slice %143 {offsets = [0, 256], sizes = [8, 128], strides = [1, 1]} : vector<8x512xf32> to vector<8x128xf32>
    %157 = math.tanh %156 : vector<8x128xf32>
    %158 = vector.extract_strided_slice %143 {offsets = [0, 384], sizes = [8, 128], strides = [1, 1]} : vector<8x512xf32> to vector<8x128xf32>
    %159 = arith.negf %158 : vector<8x128xf32>
    %160 = math.exp %159 : vector<8x128xf32>
    %cst_39 = arith.constant 1.000000e+00 : f32
    %161 = vector.broadcast %cst_39 : f32 to vector<8x128xf32>
    %162 = arith.addf %161, %160 : vector<8x128xf32>
    %163 = arith.divf %161, %162 : vector<8x128xf32>
    %164 = arith.mulf %155, %138 : vector<8x128xf32>
    %165 = arith.mulf %149, %157 : vector<8x128xf32>
    %166 = arith.addf %164, %165 : vector<8x128xf32>
    %167 = math.tanh %166 : vector<8x128xf32>
    %168 = arith.mulf %163, %167 : vector<8x128xf32>
    %c40 = arith.constant 40 : index
    %c0_40 = arith.constant 0 : index
    %169 = vector.load %arg8[%c40, %c0_40] : memref<64x1024xf32, #tpu.memory_space<vmem>>, vector<8x512xf32>
    %cst_41 = arith.constant dense<0.000000e+00> : vector<8x512xf32>
    %170 = tpu.matmul %168, %26, %cst_41 {dimension_numbers = #tpu.dot_dimension_numbers<[1], [0], [0], [1], [0, 0, 1, 1], [], []>} : vector<8x128xf32>, vector<128x512xf32>, vector<8x512xf32> -> vector<8x512xf32>
    %171 = arith.addf %169, %170 : vector<8x512xf32>
    %172 = vector.extract_strided_slice %171 {offsets = [0, 0], sizes = [8, 128], strides = [1, 1]} : vector<8x512xf32> to vector<8x128xf32>
    %173 = arith.negf %172 : vector<8x128xf32>
    %174 = math.exp %173 : vector<8x128xf32>
    %cst_42 = arith.constant 1.000000e+00 : f32
    %175 = vector.broadcast %cst_42 : f32 to vector<8x128xf32>
    %176 = arith.addf %175, %174 : vector<8x128xf32>
    %177 = arith.divf %175, %176 : vector<8x128xf32>
    %178 = vector.extract_strided_slice %171 {offsets = [0, 128], sizes = [8, 128], strides = [1, 1]} : vector<8x512xf32> to vector<8x128xf32>
    %179 = arith.negf %178 : vector<8x128xf32>
    %180 = math.exp %179 : vector<8x128xf32>
    %cst_43 = arith.constant 1.000000e+00 : f32
    %181 = vector.broadcast %cst_43 : f32 to vector<8x128xf32>
    %182 = arith.addf %181, %180 : vector<8x128xf32>
    %183 = arith.divf %181, %182 : vector<8x128xf32>
    %184 = vector.extract_strided_slice %171 {offsets = [0, 256], sizes = [8, 128], strides = [1, 1]} : vector<8x512xf32> to vector<8x128xf32>
    %185 = math.tanh %184 : vector<8x128xf32>
    %186 = vector.extract_strided_slice %171 {offsets = [0, 384], sizes = [8, 128], strides = [1, 1]} : vector<8x512xf32> to vector<8x128xf32>
    %187 = arith.negf %186 : vector<8x128xf32>
    %188 = math.exp %187 : vector<8x128xf32>
    %cst_44 = arith.constant 1.000000e+00 : f32
    %189 = vector.broadcast %cst_44 : f32 to vector<8x128xf32>
    %190 = arith.addf %189, %188 : vector<8x128xf32>
    %191 = arith.divf %189, %190 : vector<8x128xf32>
    %192 = arith.mulf %183, %166 : vector<8x128xf32>
    %193 = arith.mulf %177, %185 : vector<8x128xf32>
    %194 = arith.addf %192, %193 : vector<8x128xf32>
    %195 = math.tanh %194 : vector<8x128xf32>
    %196 = arith.mulf %191, %195 : vector<8x128xf32>
    %c48 = arith.constant 48 : index
    %c0_45 = arith.constant 0 : index
    %197 = vector.load %arg8[%c48, %c0_45] : memref<64x1024xf32, #tpu.memory_space<vmem>>, vector<8x512xf32>
    %cst_46 = arith.constant dense<0.000000e+00> : vector<8x512xf32>
    %198 = tpu.matmul %196, %26, %cst_46 {dimension_numbers = #tpu.dot_dimension_numbers<[1], [0], [0], [1], [0, 0, 1, 1], [], []>} : vector<8x128xf32>, vector<128x512xf32>, vector<8x512xf32> -> vector<8x512xf32>
    %199 = arith.addf %197, %198 : vector<8x512xf32>
    %200 = vector.extract_strided_slice %199 {offsets = [0, 0], sizes = [8, 128], strides = [1, 1]} : vector<8x512xf32> to vector<8x128xf32>
    %201 = arith.negf %200 : vector<8x128xf32>
    %202 = math.exp %201 : vector<8x128xf32>
    %cst_47 = arith.constant 1.000000e+00 : f32
    %203 = vector.broadcast %cst_47 : f32 to vector<8x128xf32>
    %204 = arith.addf %203, %202 : vector<8x128xf32>
    %205 = arith.divf %203, %204 : vector<8x128xf32>
    %206 = vector.extract_strided_slice %199 {offsets = [0, 128], sizes = [8, 128], strides = [1, 1]} : vector<8x512xf32> to vector<8x128xf32>
    %207 = arith.negf %206 : vector<8x128xf32>
    %208 = math.exp %207 : vector<8x128xf32>
    %cst_48 = arith.constant 1.000000e+00 : f32
    %209 = vector.broadcast %cst_48 : f32 to vector<8x128xf32>
    %210 = arith.addf %209, %208 : vector<8x128xf32>
    %211 = arith.divf %209, %210 : vector<8x128xf32>
    %212 = vector.extract_strided_slice %199 {offsets = [0, 256], sizes = [8, 128], strides = [1, 1]} : vector<8x512xf32> to vector<8x128xf32>
    %213 = math.tanh %212 : vector<8x128xf32>
    %214 = vector.extract_strided_slice %199 {offsets = [0, 384], sizes = [8, 128], strides = [1, 1]} : vector<8x512xf32> to vector<8x128xf32>
    %215 = arith.negf %214 : vector<8x128xf32>
    %216 = math.exp %215 : vector<8x128xf32>
    %cst_49 = arith.constant 1.000000e+00 : f32
    %217 = vector.broadcast %cst_49 : f32 to vector<8x128xf32>
    %218 = arith.addf %217, %216 : vector<8x128xf32>
    %219 = arith.divf %217, %218 : vector<8x128xf32>
    %220 = arith.mulf %211, %194 : vector<8x128xf32>
    %221 = arith.mulf %205, %213 : vector<8x128xf32>
    %222 = arith.addf %220, %221 : vector<8x128xf32>
    %223 = math.tanh %222 : vector<8x128xf32>
    %224 = arith.mulf %219, %223 : vector<8x128xf32>
    %c56_50 = arith.constant 56 : index
    %c0_51 = arith.constant 0 : index
    %225 = vector.load %arg8[%c56_50, %c0_51] : memref<64x1024xf32, #tpu.memory_space<vmem>>, vector<8x512xf32>
    %cst_52 = arith.constant dense<0.000000e+00> : vector<8x512xf32>
    %226 = tpu.matmul %224, %26, %cst_52 {dimension_numbers = #tpu.dot_dimension_numbers<[1], [0], [0], [1], [0, 0, 1, 1], [], []>} : vector<8x128xf32>, vector<128x512xf32>, vector<8x512xf32> -> vector<8x512xf32>
    %227 = arith.addf %225, %226 : vector<8x512xf32>
    %228 = vector.extract_strided_slice %227 {offsets = [0, 0], sizes = [8, 128], strides = [1, 1]} : vector<8x512xf32> to vector<8x128xf32>
    %229 = arith.negf %228 : vector<8x128xf32>
    %230 = math.exp %229 : vector<8x128xf32>
    %cst_53 = arith.constant 1.000000e+00 : f32
    %231 = vector.broadcast %cst_53 : f32 to vector<8x128xf32>
    %232 = arith.addf %231, %230 : vector<8x128xf32>
    %233 = arith.divf %231, %232 : vector<8x128xf32>
    %234 = vector.extract_strided_slice %227 {offsets = [0, 128], sizes = [8, 128], strides = [1, 1]} : vector<8x512xf32> to vector<8x128xf32>
    %235 = arith.negf %234 : vector<8x128xf32>
    %236 = math.exp %235 : vector<8x128xf32>
    %cst_54 = arith.constant 1.000000e+00 : f32
    %237 = vector.broadcast %cst_54 : f32 to vector<8x128xf32>
    %238 = arith.addf %237, %236 : vector<8x128xf32>
    %239 = arith.divf %237, %238 : vector<8x128xf32>
    %240 = vector.extract_strided_slice %227 {offsets = [0, 256], sizes = [8, 128], strides = [1, 1]} : vector<8x512xf32> to vector<8x128xf32>
    %241 = math.tanh %240 : vector<8x128xf32>
    %242 = vector.extract_strided_slice %227 {offsets = [0, 384], sizes = [8, 128], strides = [1, 1]} : vector<8x512xf32> to vector<8x128xf32>
    %243 = arith.negf %242 : vector<8x128xf32>
    %244 = math.exp %243 : vector<8x128xf32>
    %cst_55 = arith.constant 1.000000e+00 : f32
    %245 = vector.broadcast %cst_55 : f32 to vector<8x128xf32>
    %246 = arith.addf %245, %244 : vector<8x128xf32>
    %247 = arith.divf %245, %246 : vector<8x128xf32>
    %248 = arith.mulf %239, %222 : vector<8x128xf32>
    %249 = arith.mulf %233, %241 : vector<8x128xf32>
    %250 = arith.addf %248, %249 : vector<8x128xf32>
    %251 = math.tanh %250 : vector<8x128xf32>
    %252 = arith.mulf %247, %251 : vector<8x128xf32>
    %253 = tpu.concatenate %252, %25 in 1 : vector<8x128xf32>, vector<8x128xf32> -> vector<8x256xf32>
    %c0_56 = arith.constant 0 : index
    %c0_57 = arith.constant 0 : index
    %254 = vector.load %arg5[%c0_56, %c0_57] : memref<256x128xf32, #tpu.memory_space<vmem>>, vector<256x128xf32>
    %cst_58 = arith.constant dense<0.000000e+00> : vector<8x128xf32>
    %255 = tpu.matmul %253, %254, %cst_58 {dimension_numbers = #tpu.dot_dimension_numbers<[1], [0], [0], [1], [0, 0, 1, 1], [], []>} : vector<8x256xf32>, vector<256x128xf32>, vector<8x128xf32> -> vector<8x128xf32>
    %c0_59 = arith.constant 0 : index
    %c0_60 = arith.constant 0 : index
    %256 = vector.load %arg6[%c0_59, %c0_60] : memref<1x128xf32, #tpu.memory_space<vmem>>, vector<1x128xf32>
    %257 = vector.broadcast %256 : vector<1x128xf32> to vector<8x128xf32>
    %258 = arith.addf %255, %257 : vector<8x128xf32>
    %c0_61 = arith.constant 0 : index
    %c0_62 = arith.constant 0 : index
    %c0_63 = arith.constant 0 : index
    %259 = vector.load %arg7[%c0_61, %c0_62, %c0_63] : memref<1x8x128xf32, #tpu.memory_space<vmem>>, vector<1x8x128xf32>
    %260 = vector.shape_cast %259 : vector<1x8x128xf32> to vector<8x128xf32>
    %261 = vector.shape_cast %258 : vector<8x128xf32> to vector<1x8x128xf32>
    tpu.vector_store %arg7[%c0_61, %c0_62, %c0_63], %261 {strides = array<i32>} : memref<1x8x128xf32, #tpu.memory_space<vmem>>, vector<1x8x128xf32>,
    return
  }
  func.func @transform_0(%arg0: i32) -> (i32, i32, i32) {
    %c0_i32 = arith.constant 0 : i32
    %c0_i32_0 = arith.constant 0 : i32
    %c0_i32_1 = arith.constant 0 : i32
    return %arg0, %c0_i32, %c0_i32_0 : i32, i32, i32
  }
  func.func @transform_1(%arg0: i32) -> (i32, i32) {
    %c0_i32 = arith.constant 0 : i32
    %c0_i32_0 = arith.constant 0 : i32
    %c0_i32_1 = arith.constant 0 : i32
    return %c0_i32, %c0_i32_0 : i32, i32
  }
  func.func @transform_2(%arg0: i32) -> (i32, i32) {
    %c0_i32 = arith.constant 0 : i32
    %c0_i32_0 = arith.constant 0 : i32
    %c0_i32_1 = arith.constant 0 : i32
    return %c0_i32, %c0_i32_0 : i32, i32
  }
  func.func @transform_3(%arg0: i32) -> (i32, i32) {
    %c0_i32 = arith.constant 0 : i32
    %c0_i32_0 = arith.constant 0 : i32
    %c0_i32_1 = arith.constant 0 : i32
    return %c0_i32, %c0_i32_0 : i32, i32
  }
  func.func @transform_4(%arg0: i32) -> (i32, i32) {
    %c0_i32 = arith.constant 0 : i32
    %c0_i32_0 = arith.constant 0 : i32
    %c0_i32_1 = arith.constant 0 : i32
    return %c0_i32, %c0_i32_0 : i32, i32
  }
  func.func @transform_5(%arg0: i32) -> (i32, i32) {
    %c0_i32 = arith.constant 0 : i32
    %c0_i32_0 = arith.constant 0 : i32
    %c0_i32_1 = arith.constant 0 : i32
    return %c0_i32, %c0_i32_0 : i32, i32
  }
  func.func @transform_6(%arg0: i32) -> (i32, i32, i32) {
    %c0_i32 = arith.constant 0 : i32
    %c0_i32_0 = arith.constant 0 : i32
    %c0_i32_1 = arith.constant 0 : i32
    return %arg0, %c0_i32, %c0_i32_0 : i32, i32, i32
  }
}

</mosaic_0001>

<bundles_post_ra>
// kernel: tpu_custom_call.1
= control target key start
LH: loop header
LB: loop body
LE: loop exit
PB: predicated region body
PF: predicated region fallthrough
CT: control target
= control target key end

     0   :  { %11 = vsyncpa [#allocation4], 0  ;;  %s3596_s0 = inlined_call_operand.vmem [shape: f32[1,64,32], index: 0, kind: input, shape index: {}]   ;;  %s3597_s1 = inlined_call_operand.hbm [shape: f32[32,1024], index: 1, kind: input, shape index: {}]   ;;  %s3598_s2 = inlined_call_operand.hbm [shape: f32[128,512], index: 2, kind: input, shape index: {}]   ;;  %s3599_s3 = inlined_call_operand.vmem [shape: f32[1,1024], index: 3, kind: input, shape index: {}]   ;;  %s3600_s4 = inlined_call_operand.hbm [shape: f32[256,128], index: 4, kind: input, shape index: {}]   ;;  %s3601_s5 = inlined_call_operand.vmem [shape: f32[1,128], index: 5, kind: input, shape index: {}]   ;;  %s3602_s6 = inlined_call_operand.hbm [shape: f32[1,8,128], index: 6, kind: output, shape index: {}]  }
   0x1   :  { %12 = vsyncpa [#allocation7], 0  ;;  %s33_s23 = sshll.u32 %s3598_s2, 4  ;;  %s34_s23 = int_to_ptr.hbm [resolvable:$true] %s33_s23 }
   0x2   :  { %13 = vsyncpa [#allocation5], 0  ;;  %s2386_s24 = smov [#allocation6]   ;;  %s20_s28 = sshll.u32 %s3597_s1, 4  ;;  %s21_s28 = int_to_ptr.hbm [resolvable:$true] %s20_s28 }
   0x3   :  { %s35_s25 = sshll.u32 %s2386_s24, 4  ;;  %s2387_s29 = smov 512   ;;  %s36_s25 = int_to_ptr.vmem [resolvable:$true] %s35_s25 }
   0x4   :  { %s2388_s30 = smov 32   ;;  %s2389_s7 = smov [#allocation3]  }
   0x5   :  { %41 = dma.hbm_to_vmem [thread:$0]  %s34_s23, 8192, %s36_s25, [#allocation7], %s2387_s29, %s2387_s29, %s2388_s30  }
   0x6   :  { %s22_s8 = sshll.u32 %s2389_s7, 4  ;;  %s2390_s9 = smov 1024   ;;  %s23_s8 = int_to_ptr.vmem [resolvable:$true] %s22_s8 }
   0x7   :  { %s2391_s10 = smov 64   ;;  %s48_s12 = sshll.u32 %s3600_s4, 4  ;;  %s49_s12 = int_to_ptr.hbm [resolvable:$true] %s48_s12 }
   0x8   :  { %28 = dma.hbm_to_vmem [thread:$0]  %s21_s28, 4096, %s23_s8, [#allocation4], %s2390_s9, %s2390_s9, %s2391_s10  }
   0x9   :  { %s2392_s13 = smov [#allocation8]   ;;  %s2393_s15 = smov 128  }
   0xa   :  { %s50_s14 = sshll.u32 %s2392_s13, 4  ;;  %s2394_s1 = smov 8   ;;  %s51_s14 = int_to_ptr.vmem [resolvable:$true] %s50_s14 }
   0xb   :  { %56 = dma.hbm_to_vmem [thread:$0]  %s49_s12, 4096, %s51_s14, [#allocation7], %s2393_s15, %s2393_s15, %s2394_s1  }
   0xc   :  { %2380 = dma.done.wait [#allocation4], 4096  }
   0xd   :  { %2381 = vsyncadd [#allocation4], 4294963200 }
   0xe   :  { %2382 = dma.done.wait [#allocation7], 12288  }
   0xf   :  { %2383 = vsyncadd [#allocation7], 4294955008  ;;  %v103_v0 = vld [vmem:[#allocation3 + $0xc0] sm:$0xff]  ;;  %v104_v1 = vld [vmem:[#allocation3 + $0xc8] sm:$0xff]  ;;  %vm129_vm0 = vcmask 261120   ;;  %s2396_s9 = smov [#allocation9]  }
  0x10   :  { %v95_v2 = vld [vmem:[#allocation3 + $0x80] sm:$0xff]  ;;  %166 = vmatpush.msra.mxu0 %v103_v0  ;;  %2048 = vmatpush.msra.mxu2 %v103_v0  ;;  %v96_v3 = vld [vmem:[#allocation3 + $0x88] sm:$0xff]  ;;  %v2449_v9 = vld [vmem:[%s3596_s0 + $0x30] sm:$0xff]  ;;  %s1945_s10 = sshll.u32 %s2396_s9, 4  ;;  %s1947_s12 = sshll.u32 %s3602_s6, 4  ;;  %s1946_s10 = int_to_ptr.vmem [resolvable:$true] %s1945_s10  ;;  %s1948_s12 = int_to_ptr.hbm [resolvable:$true] %s1947_s12 }
  0x11   :  { %207 = vmatpush.msra.mxu1 %v104_v1  ;;  %2052 = vmatpush.msra.mxu3 %v104_v1  ;;  %v87_v4 = vld [vmem:[#allocation3 + $0x40] sm:$0xff]  ;;  %v88_v5 = vld [vmem:[#allocation3 + $0x48] sm:$0xff]  ;;  %v106_v10 = vld [vmem:[#allocation3 + $0xd8] sm:$0xff] }
  0x12   :  { %167 = vmatpush.msra.mxu0 %v95_v2  ;;  %2049 = vmatpush.msra.mxu2 %v95_v2  ;;  %v79_v6 = vld [vmem:[#allocation3] sm:$0xff]  ;;  %v80_v7 = vld [vmem:[#allocation3 + $0x8] sm:$0xff]  ;;  %v105_v11 = vld [vmem:[#allocation3 + $0xd0] sm:$0xff] }
  0x13   :  { %208 = vmatpush.msra.mxu1 %v96_v3  ;;  %2053 = vmatpush.msra.mxu3 %v96_v3  ;;  %v2444_v8 = vld [vmem:[%s3596_s0] sm:$0xff]  ;;  %v108_v13 = vld [vmem:[#allocation3 + $0xe8] sm:$0xff]  ;;  %v98_v14 = vld [vmem:[#allocation3 + $0x98] sm:$0xff] }
  0x14   :  { %168 = vmatpush.msra.mxu0 %v87_v4  ;;  %2050 = vmatpush.msra.mxu2 %v87_v4  ;;  %v107_v12 = vld [vmem:[#allocation3 + $0xe0] sm:$0xff]  ;;  %v97_v15 = vld [vmem:[#allocation3 + $0x90] sm:$0xff]  ;;  %v100_v17 = vld [vmem:[#allocation3 + $0xa8] sm:$0xff] }
  0x15   :  { %209 = vmatpush.msra.mxu1 %v88_v5  ;;  %2054 = vmatpush.msra.mxu3 %v88_v5  ;;  %v99_v16 = vld [vmem:[#allocation3 + $0xa0] sm:$0xff]  ;;  %v90_v18 = vld [vmem:[#allocation3 + $0x58] sm:$0xff]  ;;  %v89_v19 = vld [vmem:[#allocation3 + $0x50] sm:$0xff] }
  0x16   :  { %169 = vmatpush.msra.mxu0 %v79_v6  ;;  %2051 = vmatpush.msra.mxu2 %v79_v6  ;;  %v2462_v20 = vld [vmem:[%s3596_s0 + $0x8] sm:$0xff]  ;;  %v2467_v21 = vld [vmem:[%s3596_s0 + $0x38] sm:$0xff]  ;;  %v81_v23 = vld [vmem:[#allocation3 + $0x10] sm:$0xff] }
  0x17   :  { %210 = vmatpush.msra.mxu1 %v80_v7  ;;  %2055 = vmatpush.msra.mxu3 %v80_v7  ;;  %v82_v22 = vld [vmem:[#allocation3 + $0x18] sm:$0xff]  ;;  %v109_v25 = vld [vmem:[#allocation3 + $0xf0] sm:$0xff]  ;;  %v91_v26 = vld [vmem:[#allocation3 + $0x60] sm:$0xff] }
  0x18   :  { %1958 = vmatmul.msk.f32.vlgmr.msra.gmra.mxu0 %vm129_vm0, %v2444_v8  ;;  %1964 = vmatmul.msk.f32.vlgmr.msra.gmra.mxu2 %vm129_vm0, %v2449_v9  ;;  %v110_v24 = vld [vmem:[#allocation3 + $0xf8] sm:$0xff]  ;;  %v92_v27 = vld [vmem:[#allocation3 + $0x68] sm:$0xff]  ;;  %v101_v29 = vld [vmem:[#allocation3 + $0xb0] sm:$0xff] }
  0x19   :  { %1966 = vmatmul.msk.f32.vlgmr.msra.gmra.mxu1 %vm129_vm0, %v2444_v8  ;;  %1972 = vmatmul.msk.f32.vlgmr.msra.gmra.mxu3 %vm129_vm0, %v2449_v9  ;;  %v102_v28 = vld [vmem:[#allocation3 + $0xb8] sm:$0xff]  ;;  %v83_v30 = vld [vmem:[#allocation3 + $0x20] sm:$0xff]  ;;  %v84_v31 = vld [vmem:[#allocation3 + $0x28] sm:$0xff] }
  0x1a   :  { %289 = vmatpush.msrb.mxu3 %v106_v10  ;;  %248 = vmatpush.msrb.mxu2 %v105_v11  ;;  %v2480_v32 = vld [vmem:[%s3596_s0 + $0x10] sm:$0xff]  ;;  %v94_v33 = vld [vmem:[#allocation3 + $0x78] sm:$0xff]  ;;  %v2506_v36 = vld [vmem:[%s3596_s0 + $0x20] sm:$0xff] }
  0x1b   :  { %330 = vmatpush.msrb.mxu0 %v107_v12  ;;  %371 = vmatpush.msrb.mxu1 %v108_v13  ;;  %v2493_v34 = vld [vmem:[%s3596_s0 + $0x18] sm:$0xff]  ;;  %v93_v35 = vld [vmem:[#allocation3 + $0x70] sm:$0xff]  ;;  %v2519_v38 = vld [vmem:[%s3596_s0 + $0x28] sm:$0xff] }
  0x1c   :  { %290 = vmatpush.msrb.mxu3 %v98_v14  ;;  %249 = vmatpush.msrb.mxu2 %v97_v15  ;;  %v86_v37 = vld [vmem:[#allocation3 + $0x38] sm:$0xff]  ;;  %v85_v39 = vld [vmem:[#allocation3 + $0x30] sm:$0xff]  ;;  %v2529_v40 = vld [vmem:[#allocation6 + $0x1e0] sm:$0xff] }
  0x1d   :  { %331 = vmatpush.msrb.mxu0 %v99_v16  ;;  %372 = vmatpush.msrb.mxu1 %v100_v17  ;;  %v2531_v41 = vld [vmem:[#allocation6 + $0x1e8] sm:$0xff]  ;;  %v2534_v42 = vld [vmem:[#allocation6 + $0x1c0] sm:$0xff]  ;;  %v2549_v44 = vld [vmem:[#allocation6 + $0x1f8] sm:$0xff] }
  0x1e   :  { %291 = vmatpush.msrb.mxu3 %v90_v18  ;;  %250 = vmatpush.msrb.mxu2 %v89_v19  ;;  %v2536_v43 = vld [vmem:[#allocation6 + $0x1c8] sm:$0xff]  ;;  %v2551_v45 = vld [vmem:[#allocation6 + $0x1a0] sm:$0xff]  ;;  %v2557_v47 = vld [vmem:[#allocation6 + $0x1d8] sm:$0xff] }
  0x1f   :  { %332 = vmatpush.msrb.mxu0 %v91_v26  ;;  %373 = vmatpush.msrb.mxu1 %v92_v27  ;;  %v2553_v46 = vld [vmem:[#allocation6 + $0x1a8] sm:$0xff]  ;;  %v2559_v48 = vld [vmem:[#allocation6 + $0x180] sm:$0xff]  ;;  %v2575_v50 = vld [vmem:[#allocation6 + $0x1b8] sm:$0xff] }
  0x20   :  { %1959 = vmatmul.msk.f32.gmra.mxu0 %vm129_vm0, %v2462_v20  ;;  %1965 = vmatmul.msk.f32.gmra.mxu2 %vm129_vm0, %v2467_v21  ;;  %v2561_v49 = vld [vmem:[#allocation6 + $0x188] sm:$0xff]  ;;  %v2577_v51 = vld [vmem:[#allocation6 + $0x160] sm:$0xff]  ;;  %v2583_v53 = vld [vmem:[#allocation6 + $0x1f0] sm:$0xff] }
  0x21   :  { %1967 = vmatmul.msk.f32.gmra.mxu1 %vm129_vm0, %v2462_v20  ;;  %1973 = vmatmul.msk.f32.gmra.mxu3 %vm129_vm0, %v2467_v21  ;;  %v2579_v52 = vld [vmem:[#allocation6 + $0x168] sm:$0xff]  ;;  %v2585_v54 = vld [vmem:[#allocation6 + $0x140] sm:$0xff]  ;;  %v2591_v56 = vld [vmem:[#allocation6 + $0x198] sm:$0xff] }
  0x22   :  { %292 = vmatpush.msrb.mxu3 %v82_v22  ;;  %251 = vmatpush.msrb.mxu2 %v81_v23  ;;  %v2587_v55 = vld [vmem:[#allocation6 + $0x148] sm:$0xff]  ;;  %v2593_v57 = vld [vmem:[#allocation6 + $0x120] sm:$0xff]  ;;  %v2599_v59 = vld [vmem:[#allocation6 + $0x1d0] sm:$0xff] }
  0x23   :  { %333 = vmatpush.msrb.mxu0 %v83_v30  ;;  %374 = vmatpush.msrb.mxu1 %v84_v31  ;;  %3691 = vst [vmem:[#allocation13_spill] sm:$0xff] %v2587_v55  ;;  %v2597_v58 = vld [vmem:[#allocation6 + $0x128] sm:$0xff]  ;;  %v2605_v60 = vld [vmem:[#allocation6 + $0x100] sm:$0xff]  ;;  %v2617_v62 = vld [vmem:[#allocation6 + $0x178] sm:$0xff] }
  0x24   :  { %453 = vmatpush.msra.mxu3 %v110_v24  ;;  %412 = vmatpush.msra.mxu2 %v109_v25  ;;  %3692 = vst [vmem:[#allocation14_spill] sm:$0xff] %v2593_v57  ;;  %v2607_v61 = vld [vmem:[#allocation6 + $0x108] sm:$0xff]  ;;  %v2619_v63 = vld [vmem:[#allocation6 + $0xe0] sm:$0xff]  ;;  %v2625_v1 = vld [vmem:[#allocation6 + $0x1b0] sm:$0xff] }
  0x25   :  { %659 = vmatpush.msra.mxu0 %v2529_v40  ;;  %679 = vmatpush.msra.mxu1 %v2531_v41  ;;  %3693 = vst [vmem:[#allocation15_spill] sm:$0xff] %v2597_v58  ;;  %v2621_v0 = vld [vmem:[#allocation6 + $0xe8] sm:$0xff]  ;;  %v2629_v2 = vld [vmem:[#allocation6 + $0xc0] sm:$0xff]  ;;  %v2633_v4 = vld [vmem:[#allocation6 + $0x158] sm:$0xff] }
  0x26   :  { %454 = vmatpush.msra.mxu3 %v102_v28  ;;  %413 = vmatpush.msra.mxu2 %v101_v29  ;;  %3694 = vst [vmem:[#allocation16_spill] sm:$0xff] %v2607_v61  ;;  %v2631_v3 = vld [vmem:[#allocation6 + $0xc8] sm:$0xff]  ;;  %v2637_v5 = vld [vmem:[#allocation6 + $0x190] sm:$0xff]  ;;  %v2643_v6 = vld [vmem:[#allocation6 + $0xa0] sm:$0xff] }
  0x27   :  { %660 = vmatpush.msra.mxu0 %v2534_v42  ;;  %680 = vmatpush.msra.mxu1 %v2536_v43  ;;  %3695 = vst [vmem:[#allocation17_spill] sm:$0xff] %v2621_v0  ;;  %v2645_v7 = vld [vmem:[#allocation6 + $0xa8] sm:$0xff]  ;;  %v2655_v10 = vld [vmem:[#allocation6 + $0x80] sm:$0xff]  ;;  %v2659_v12 = vld [vmem:[#allocation6 + $0x138] sm:$0xff] }
  0x28   :  { %1960 = vmatmul.msk.f32.gmra.mxu0 %vm129_vm0, %v2480_v32  ;;  %1974 = vmatmul.msk.f32.vlgmr.msrb.gmra.mxu2 %vm129_vm0, %v2444_v8  ;;  %v2657_v11 = vld [vmem:[#allocation6 + $0x88] sm:$0xff]  ;;  %v2663_v13 = vld [vmem:[#allocation6 + $0x170] sm:$0xff]  ;;  %v2666_v14 = vld [vmem:[#allocation6 + $0x60] sm:$0xff] }
  0x29   :  { %1968 = vmatmul.msk.f32.gmra.mxu1 %vm129_vm0, %v2480_v32  ;;  %1982 = vmatmul.msk.f32.vlgmr.msrb.gmra.mxu3 %vm129_vm0, %v2444_v8  ;;  %3696 = vst [vmem:[#allocation18_spill] sm:$0xff] %v2666_v14  ;;  %v2668_v15 = vld [vmem:[#allocation6 + $0x68] sm:$0xff]  ;;  %v2671_v16 = vld [vmem:[#allocation6 + $0x118] sm:$0xff]  ;;  %v2675_v17 = vld [vmem:[#allocation6 + $0x150] sm:$0xff] }
  0x2a   :  { %455 = vmatpush.msra.mxu3 %v94_v33  ;;  %414 = vmatpush.msra.mxu2 %v93_v35  ;;  %3697 = vst [vmem:[#allocation19_spill] sm:$0xff] %v2668_v15  ;;  %v2681_v18 = vld [vmem:[#allocation6 + $0x40] sm:$0xff]  ;;  %v2683_v19 = vld [vmem:[#allocation6 + $0x48] sm:$0xff]  ;;  %v2697_v24 = vld [vmem:[#allocation6 + $0xf8] sm:$0xff] }
  0x2b   :  { %661 = vmatpush.msra.mxu0 %v2551_v45  ;;  %681 = vmatpush.msra.mxu1 %v2553_v46  ;;  %3698 = vst [vmem:[#allocation20_spill] sm:$0xff] %v2681_v18  ;;  %v2689_v22 = vld [vmem:[#allocation6 + $0x20] sm:$0xff]  ;;  %v2695_v23 = vld [vmem:[#allocation6 + $0x28] sm:$0xff]  ;;  %v2699_v25 = vld [vmem:[#allocation6 + $0x130] sm:$0xff] }
  0x2c   :  { %456 = vmatpush.msra.mxu3 %v86_v37  ;;  %415 = vmatpush.msra.mxu2 %v85_v39  ;;  %3699 = vst [vmem:[#allocation21_spill] sm:$0xff] %v2683_v19  ;;  %v2703_v26 = vld [vmem:[#allocation6 + $0xd8] sm:$0xff]  ;;  %v2705_v27 = vld [vmem:[#allocation6 + $0x110] sm:$0xff]  ;;  %v2707_v28 = vld [vmem:[#allocation6] sm:$0xff] }
  0x2d   :  { %662 = vmatpush.msra.mxu0 %v2559_v48  ;;  %682 = vmatpush.msra.mxu1 %v2561_v49  ;;  %3700 = vst [vmem:[#allocation22_spill] sm:$0xff] %v2689_v22  ;;  %v2709_v29 = vld [vmem:[#allocation6 + $0x8] sm:$0xff]  ;;  %v2731_v30 = vld [vmem:[#allocation6 + $0xf0] sm:$0xff]  ;;  %v2733_v31 = vld [vmem:[#allocation6 + $0x98] sm:$0xff] }
  0x2e   :  { %719 = vmatpush.msrb.mxu3 %v2549_v44  ;;  %699 = vmatpush.msrb.mxu2 %v2583_v53  ;;  %3701 = vst [vmem:[#allocation23_spill] sm:$0xff] %v2695_v23  ;;  %v2754_v33 = vld [vmem:[#allocation6 + $0x78] sm:$0xff]  ;;  %v2756_v35 = vld [vmem:[#allocation6 + $0xb0] sm:$0xff] }
  0x2f   :  { %663 = vmatpush.msra.mxu0 %v2577_v51  ;;  %683 = vmatpush.msra.mxu1 %v2579_v52  ;;  %3702 = vst [vmem:[#allocation24_spill] sm:$0xff] %v2703_v26  ;;  %v2763_v37 = vld [vmem:[#allocation6 + $0x58] sm:$0xff] }
  0x30   :  { %1961 = vmatmul.msk.f32.gmra.mxu0 %vm129_vm0, %v2493_v34  ;;  %1975 = vmatmul.msk.f32.gmra.mxu2 %vm129_vm0, %v2462_v20  ;;  %3703 = vst [vmem:[#allocation25_spill] sm:$0xff] %v2707_v28  ;;  %v2780_v39 = vld [vmem:[#allocation6 + $0x38] sm:$0xff] }
  0x31   :  { %1969 = vmatmul.msk.f32.gmra.mxu1 %vm129_vm0, %v2493_v34  ;;  %1983 = vmatmul.msk.f32.gmra.mxu3 %vm129_vm0, %v2462_v20  ;;  %3704 = vst [vmem:[#allocation26_spill] sm:$0xff] %v2709_v29 }
  0x32   :  { %720 = vmatpush.msrb.mxu3 %v2557_v47  ;;  %664 = vmatpush.msra.mxu0 %v2585_v54  ;;  %3705 = vst [vmem:[#allocation27_spill] sm:$0xff] %v2754_v33 }
  0x33   :  { %684 = vmatpush.msra.mxu1 %v2587_v55  ;;  %700 = vmatpush.msrb.mxu2 %v2599_v59  ;;  %3706 = vst [vmem:[#allocation28_spill] sm:$0xff] %v2763_v37 }
  0x34   :  { %721 = vmatpush.msrb.mxu3 %v2575_v50  ;;  %665 = vmatpush.msra.mxu0 %v2593_v57  ;;  %3707 = vst [vmem:[#allocation29_spill] sm:$0xff] %v2780_v39 }
  0x35   :  { %685 = vmatpush.msra.mxu1 %v2597_v58  ;;  %701 = vmatpush.msrb.mxu2 %v2625_v1 }
  0x36   :  { %722 = vmatpush.msrb.mxu3 %v2591_v56  ;;  %666 = vmatpush.msra.mxu0 %v2605_v60 }
  0x37   :  { %686 = vmatpush.msra.mxu1 %v2607_v61  ;;  %702 = vmatpush.msrb.mxu2 %v2637_v5 }
  0x38   :  { %1962 = vmatmul.msk.f32.gmra.mxu0 %vm129_vm0, %v2506_v36  ;;  %1976 = vmatmul.msk.f32.gmra.mxu2 %vm129_vm0, %v2480_v32 }
  0x39   :  { %1970 = vmatmul.msk.f32.gmra.mxu1 %vm129_vm0, %v2506_v36  ;;  %1984 = vmatmul.msk.f32.gmra.mxu3 %vm129_vm0, %v2480_v32 }
  0x3a   :  { %723 = vmatpush.msrb.mxu3 %v2617_v62  ;;  %667 = vmatpush.msra.mxu0 %v2619_v63 }
  0x3b   :  { %687 = vmatpush.msra.mxu1 %v2621_v0  ;;  %703 = vmatpush.msrb.mxu2 %v2663_v13 }
  0x3c   :  { %724 = vmatpush.msrb.mxu3 %v2633_v4  ;;  %668 = vmatpush.msra.mxu0 %v2629_v2 }
  0x3d   :  { %688 = vmatpush.msra.mxu1 %v2631_v3  ;;  %704 = vmatpush.msrb.mxu2 %v2675_v17 }
  0x3e   :  { %669 = vmatpush.msra.mxu0 %v2643_v6  ;;  %725 = vmatpush.msrb.mxu3 %v2659_v12 }
  0x3f   :  { %689 = vmatpush.msra.mxu1 %v2645_v7  ;;  %705 = vmatpush.msrb.mxu2 %v2699_v25 }
  0x40   :  { %1963 = vmatmul.msk.f32.gmra.mxu0 %vm129_vm0, %v2519_v38  ;;  %1977 = vmatmul.msk.f32.gmra.mxu2 %vm129_vm0, %v2493_v34 }
  0x41   :  { %1971 = vmatmul.msk.f32.gmra.mxu1 %vm129_vm0, %v2519_v38  ;;  %1985 = vmatmul.msk.f32.gmra.mxu3 %vm129_vm0, %v2493_v34 }
  0x42   :  { %670 = vmatpush.msra.mxu0 %v2655_v10  ;;  %690 = vmatpush.msra.mxu1 %v2657_v11 }
  0x43   :  { %726 = vmatpush.msrb.mxu3 %v2671_v16  ;;  %706 = vmatpush.msrb.mxu2 %v2705_v27 }
  0x44   :  { %671 = vmatpush.msra.mxu0 %v2666_v14  ;;  %691 = vmatpush.msra.mxu1 %v2668_v15 }
  0x45   :  { %727 = vmatpush.msrb.mxu3 %v2697_v24  ;;  %707 = vmatpush.msrb.mxu2 %v2731_v30 }
  0x46   :  { %672 = vmatpush.msra.mxu0 %v2681_v18  ;;  %692 = vmatpush.msra.mxu1 %v2683_v19 }
  0x47   :  { %728 = vmatpush.msrb.mxu3 %v2703_v26 }
  0x48   :  { %1978 = vmatmul.msk.f32.gmra.mxu2 %vm129_vm0, %v2506_v36  ;;  %1990 = vmatmul.msk.f32.vlgmr.msrb.gmra.mxu0 %vm129_vm0, %v2444_v8 }
  0x49   :  { %1986 = vmatmul.msk.f32.gmra.mxu3 %vm129_vm0, %v2506_v36  ;;  %1998 = vmatmul.msk.f32.vlgmr.msrb.gmra.mxu1 %vm129_vm0, %v2444_v8 }
  0x4a   :  { %673 = vmatpush.msra.mxu0 %v2689_v22  ;;  %693 = vmatpush.msra.mxu1 %v2695_v23 }
  0x4c   :  { %674 = vmatpush.msra.mxu0 %v2707_v28  ;;  %694 = vmatpush.msra.mxu1 %v2709_v29 }
  0x4e   :  { %810 = vmatpush.msrb.mxu0 %v2529_v40  ;;  %830 = vmatpush.msrb.mxu1 %v2531_v41 }
  0x50   :  { %1979 = vmatmul.msk.f32.gmra.mxu2 %vm129_vm0, %v2519_v38  ;;  %1991 = vmatmul.msk.f32.gmra.mxu0 %vm129_vm0, %v2462_v20 }
  0x51   :  { %1987 = vmatmul.msk.f32.gmra.mxu3 %vm129_vm0, %v2519_v38  ;;  %1999 = vmatmul.msk.f32.gmra.mxu1 %vm129_vm0, %v2462_v20 }
  0x52   :  { %811 = vmatpush.msrb.mxu0 %v2534_v42  ;;  %831 = vmatpush.msrb.mxu1 %v2536_v43 }
  0x54   :  { %812 = vmatpush.msrb.mxu0 %v2551_v45  ;;  %832 = vmatpush.msrb.mxu1 %v2553_v46 }
  0x56   :  { %813 = vmatpush.msrb.mxu0 %v2559_v48  ;;  %833 = vmatpush.msrb.mxu1 %v2561_v49 }
  0x58   :  { %1980 = vmatmul.msk.f32.gmra.mxu2 %vm129_vm0, %v2449_v9  ;;  %1992 = vmatmul.msk.f32.gmra.mxu0 %vm129_vm0, %v2480_v32 }
  0x59   :  { %1988 = vmatmul.msk.f32.gmra.mxu3 %vm129_vm0, %v2449_v9  ;;  %2000 = vmatmul.msk.f32.gmra.mxu1 %vm129_vm0, %v2480_v32 }
  0x5a   :  { %814 = vmatpush.msrb.mxu0 %v2577_v51  ;;  %834 = vmatpush.msrb.mxu1 %v2579_v52 }
  0x5c   :  { %815 = vmatpush.msrb.mxu0 %v2585_v54  ;;  %835 = vmatpush.msrb.mxu1 %v2587_v55  ;;  %v2782_v55 = vld [vmem:[#allocation6 + $0x70] sm:$0xff] }
  0x5d   :  { %3708 = vst [vmem:[#allocation30_spill] sm:$0xff] %v2782_v55 }
  0x5e   :  { %816 = vmatpush.msrb.mxu0 %v2593_v57  ;;  %836 = vmatpush.msrb.mxu1 %v2597_v58  ;;  %v2786_v58 = vld [vmem:[#allocation6 + $0x50] sm:$0xff]  ;;  %v2791_v57 = vld [vmem:[#allocation6 + $0x18] sm:$0xff] }
  0x5f   :  { %3709 = vst [vmem:[#allocation31_spill] sm:$0xff] %v2786_v58 }
  0x60   :  { %1981 = vmatmul.msk.f32.gmra.mxu2 %vm129_vm0, %v2467_v21  ;;  %1993 = vmatmul.msk.f32.gmra.mxu0 %vm129_vm0, %v2493_v34  ;;  %3710 = vst [vmem:[#allocation32_spill] sm:$0xff] %v2791_v57 }
  0x61   :  { %1989 = vmatmul.msk.f32.gmra.mxu3 %vm129_vm0, %v2467_v21  ;;  %2001 = vmatmul.msk.f32.gmra.mxu1 %vm129_vm0, %v2493_v34 }
  0x62   :  { %817 = vmatpush.msrb.mxu0 %v2605_v60  ;;  %837 = vmatpush.msrb.mxu1 %v2607_v61  ;;  %v3613_v61 = vmov 0.0  }
  0x64   :  { %818 = vmatpush.msrb.mxu0 %v2619_v63  ;;  %838 = vmatpush.msrb.mxu1 %v2621_v0  ;;  %v2807_v0 = vld [vmem:[#allocation6 + $0x10] sm:$0xff] }
  0x65   :  { %3712 = vst [vmem:[#allocation34_spill] sm:$0xff] %v2807_v0 }
  0x66   :  { %819 = vmatpush.msrb.mxu0 %v2629_v2  ;;  %839 = vmatpush.msrb.mxu1 %v2631_v3 }
  0x68   :  { %1994 = vmatmul.msk.f32.gmra.mxu0 %vm129_vm0, %v2506_v36  ;;  %2006 = vmatmul.msk.f32.vlgmr.msra.gmra.mxu2 %vm129_vm0, %v2444_v8 }
  0x69   :  { %2002 = vmatmul.msk.f32.gmra.mxu1 %vm129_vm0, %v2506_v36  ;;  %2014 = vmatmul.msk.f32.vlgmr.msra.gmra.mxu3 %vm129_vm0, %v2444_v8  ;;  %v2729_v8 = vld [vmem:[#allocation6 + $0xb8] sm:$0xff] }
  0x6a   :  { %729 = vmatpush.msrb.mxu3 %v2729_v8  ;;  %820 = vmatpush.msrb.mxu0 %v2643_v6 }
  0x6b   :  { %840 = vmatpush.msrb.mxu1 %v2645_v7 }
  0x6c   :  { %730 = vmatpush.msrb.mxu3 %v2733_v31  ;;  %821 = vmatpush.msrb.mxu0 %v2655_v10 }
  0x6d   :  { %841 = vmatpush.msrb.mxu1 %v2657_v11 }
  0x6e   :  { %731 = vmatpush.msrb.mxu3 %v2754_v33  ;;  %822 = vmatpush.msrb.mxu0 %v2666_v14 }
  0x6f   :  { %842 = vmatpush.msrb.mxu1 %v2668_v15 }
  0x70   :  { %1995 = vmatmul.msk.f32.gmra.mxu0 %vm129_vm0, %v2519_v38  ;;  %2007 = vmatmul.msk.f32.gmra.mxu2 %vm129_vm0, %v2462_v20 }
  0x71   :  { %2003 = vmatmul.msk.f32.gmra.mxu1 %vm129_vm0, %v2519_v38  ;;  %2015 = vmatmul.msk.f32.gmra.mxu3 %vm129_vm0, %v2462_v20  ;;  %v2742_v20 = vld [vmem:[#allocation6 + $0xd0] sm:$0xff] }
  0x72   :  { %708 = vmatpush.msrb.mxu2 %v2742_v20  ;;  %732 = vmatpush.msrb.mxu3 %v2763_v37 }
  0x73   :  { %823 = vmatpush.msrb.mxu0 %v2681_v18  ;;  %843 = vmatpush.msrb.mxu1 %v2683_v19 }
  0x74   :  { %709 = vmatpush.msrb.mxu2 %v2756_v35  ;;  %733 = vmatpush.msrb.mxu3 %v2780_v39 }
  0x75   :  { %824 = vmatpush.msrb.mxu0 %v2689_v22  ;;  %844 = vmatpush.msrb.mxu1 %v2695_v23 }
  0x76   :  { %734 = vmatpush.msrb.mxu3 %v2791_v57 }
  0x77   :  { %825 = vmatpush.msrb.mxu0 %v2707_v28  ;;  %845 = vmatpush.msrb.mxu1 %v2709_v29 }
  0x78   :  { %1996 = vmatmul.msk.f32.gmra.mxu0 %vm129_vm0, %v2449_v9  ;;  %2008 = vmatmul.msk.f32.gmra.mxu2 %vm129_vm0, %v2480_v32 }
  0x79   :  { %2004 = vmatmul.msk.f32.gmra.mxu1 %vm129_vm0, %v2449_v9  ;;  %2016 = vmatmul.msk.f32.gmra.mxu3 %vm129_vm0, %v2480_v32  ;;  %v2768_v32 = vld [vmem:[#allocation6 + $0x90] sm:$0xff] }
  0x7a   :  { %710 = vmatpush.msrb.mxu2 %v2768_v32  ;;  %870 = vmatpush.msra.mxu3 %v2549_v44 }
  0x7c   :  { %711 = vmatpush.msrb.mxu2 %v2782_v55  ;;  %871 = vmatpush.msra.mxu3 %v2557_v47 }
  0x7e   :  { %712 = vmatpush.msrb.mxu2 %v2786_v58  ;;  %872 = vmatpush.msra.mxu3 %v2575_v50 }
  0x80   :  { %1997 = vmatmul.msk.f32.gmra.mxu0 %vm129_vm0, %v2467_v21  ;;  %2009 = vmatmul.msk.f32.gmra.mxu2 %vm129_vm0, %v2493_v34 }
  0x81   :  { %2005 = vmatmul.msk.f32.gmra.mxu1 %vm129_vm0, %v2467_v21  ;;  %2017 = vmatmul.msk.f32.gmra.mxu3 %vm129_vm0, %v2493_v34  ;;  %v2797_v34 = vld [vmem:[#allocation6 + $0x30] sm:$0xff] }
  0x82   :  { %3711 = vst [vmem:[#allocation33_spill] sm:$0xff] %v2797_v34  ;;  %713 = vmatpush.msrb.mxu2 %v2797_v34  ;;  %873 = vmatpush.msra.mxu3 %v2591_v56 }
  0x84   :  { %714 = vmatpush.msrb.mxu2 %v2807_v0  ;;  %874 = vmatpush.msra.mxu3 %v2617_v62 }
  0x86   :  { %850 = vmatpush.msra.mxu2 %v2583_v53  ;;  %875 = vmatpush.msra.mxu3 %v2633_v4 }
  0x88   :  { %2010 = vmatmul.msk.f32.gmra.mxu2 %vm129_vm0, %v2506_v36  ;;  %675 = vmatmul.f32.vlgmr.msra.gmra.mxu0 %v3613_v61 }
  0x89   :  { %2018 = vmatmul.msk.f32.gmra.mxu3 %vm129_vm0, %v2506_v36  ;;  %695 = vmatmul.f32.vlgmr.msra.gmra.mxu1 %v3613_v61  ;;  %v2852_v61 = vld [vmem:[%s3599_s3] sm:$0xff] }
  0x8a   :  { %851 = vmatpush.msra.mxu2 %v2599_v59  ;;  %876 = vmatpush.msra.mxu3 %v2659_v12  ;;  %v2868_v23 = vperm.slane %v2852_v61, 1 }
  0x8b   :  { %961 = vmatpush.msra.mxu0 %v2529_v40  ;;  %981 = vmatpush.msra.mxu1 %v2531_v41 }
  0x8c   :  { %852 = vmatpush.msra.mxu2 %v2625_v1  ;;  %877 = vmatpush.msra.mxu3 %v2671_v16  ;;  %3718 = vst [vmem:[#allocation40_spill] sm:$0xff] %v2868_v23 }
  0x8d   :  { %962 = vmatpush.msra.mxu0 %v2534_v42  ;;  %982 = vmatpush.msra.mxu1 %v2536_v43 }
  0x8e   :  { %853 = vmatpush.msra.mxu2 %v2637_v5  ;;  %878 = vmatpush.msra.mxu3 %v2697_v24 }
  0x8f   :  { %963 = vmatpush.msra.mxu0 %v2551_v45  ;;  %983 = vmatpush.msra.mxu1 %v2553_v46  ;;  %v3725_v46 = vmov 0.0  }
  0x90   :  { %2011 = vmatmul.msk.f32.gmra.mxu2 %vm129_vm0, %v2519_v38  ;;  %879 = vmatpush.msra.mxu3 %v2703_v26 }
  0x91   :  { %2019 = vmatmul.msk.f32.gmra.mxu3 %vm129_vm0, %v2519_v38  ;;  %854 = vmatpush.msra.mxu2 %v2663_v13 }
  0x92   :  { %880 = vmatpush.msra.mxu3 %v2729_v8  ;;  %964 = vmatpush.msra.mxu0 %v2559_v48  ;;  %v3726_v48 = vld [vmem:[#allocation13_spill] sm:$0xff] }
  0x93   :  { %855 = vmatpush.msra.mxu2 %v2675_v17  ;;  %984 = vmatpush.msra.mxu1 %v2561_v49 }
  0x94   :  { %881 = vmatpush.msra.mxu3 %v2733_v31  ;;  %965 = vmatpush.msra.mxu0 %v2577_v51  ;;  %v3727_v51 = vld [vmem:[#allocation14_spill] sm:$0xff] }
  0x95   :  { %v2833_v36 = vpop.f32.mrf.mxu0  ;;  %856 = vmatpush.msra.mxu2 %v2699_v25  ;;  %985 = vmatpush.msra.mxu1 %v2579_v52 }
  0x96   :  { %3713 = vst [vmem:[#allocation35_spill] sm:$0xff] %v2833_v36  ;;  %v2837_v38 = vpop.f32.mrf.mxu1  ;;  %v2861_v36 = vperm.slane %v2852_v61, 0  ;;  %882 = vmatpush.msra.mxu3 %v2754_v33  ;;  %966 = vmatpush.msra.mxu0 %v2585_v54 }
  0x97   :  { %3714 = vst [vmem:[#allocation36_spill] sm:$0xff] %v2837_v38  ;;  %857 = vmatpush.msra.mxu2 %v2705_v27  ;;  %986 = vmatpush.msra.mxu1 %v3726_v48 }
  0x98   :  { %2012 = vmatmul.msk.f32.gmra.mxu2 %vm129_vm0, %v2449_v9  ;;  %3716 = vst [vmem:[#allocation38_spill] sm:$0xff] %v2861_v36  ;;  %883 = vmatpush.msra.mxu3 %v2763_v37 }
  0x99   :  { %2020 = vmatmul.msk.f32.gmra.mxu3 %vm129_vm0, %v2449_v9  ;;  %858 = vmatpush.msra.mxu2 %v2731_v30 }
  0x9a   :  { %884 = vmatpush.msra.mxu3 %v2780_v39  ;;  %967 = vmatpush.msra.mxu0 %v3727_v51 }
  0x9b   :  { %v2856_v38 = vpop.f32.mrf.mxu2  ;;  %859 = vmatpush.msra.mxu2 %v2742_v20 }
  0x9c   :  { %3715 = vst [vmem:[#allocation37_spill] sm:$0xff] %v2856_v38  ;;  %v2863_v9 = vpop.f32.mrf.mxu3  ;;  %885 = vmatpush.msra.mxu3 %v2791_v57  ;;  %968 = vmatpush.msra.mxu0 %v2605_v60 }
  0x9d   :  { %3717 = vst [vmem:[#allocation39_spill] sm:$0xff] %v2863_v9  ;;  %v174_v26 = vpop.f32.mrf.mxu0  ;;  %860 = vmatpush.msra.mxu2 %v2756_v35 }
  0x9e   :  { %v2873_v38 = vadd.f32 %v174_v26, %v2861_v36  ;;  %v215_v29 = vpop.f32.mrf.mxu1  ;;  %969 = vmatpush.msra.mxu0 %v2619_v63 }
  0x9f   :  { %v2878_v9 = vadd.f32 %v215_v29, %v2868_v23  ;;  %861 = vmatpush.msra.mxu2 %v2768_v32  ;;  %v3728_v29 = vld [vmem:[#allocation15_spill] sm:$0xff] }
  0xa0   :  { %3719 = vst [vmem:[#allocation41_spill] sm:$0xff] %v2873_v38  ;;  %2013 = vmatmul.msk.f32.gmra.mxu2 %vm129_vm0, %v2467_v21  ;;  %987 = vmatpush.msra.mxu1 %v3728_v29 }
  0xa1   :  { %3720 = vst [vmem:[#allocation42_spill] sm:$0xff] %v2878_v9  ;;  %2021 = vmatmul.msk.f32.gmra.mxu3 %vm129_vm0, %v2467_v21  ;;  %862 = vmatpush.msra.mxu2 %v2782_v55 }
  0xa2   :  { %970 = vmatpush.msra.mxu0 %v2629_v2 }
  0xa3   :  { %v2890_v40 = vpop.f32.mrf.mxu2  ;;  %863 = vmatpush.msra.mxu2 %v2786_v58 }
  0xa4   :  { %3721 = vst [vmem:[#allocation43_spill] sm:$0xff] %v2890_v40  ;;  %v2894_v41 = vpop.f32.mrf.mxu3  ;;  %971 = vmatpush.msra.mxu0 %v2643_v6 }
  0xa5   :  { %3722 = vst [vmem:[#allocation44_spill] sm:$0xff] %v2894_v41  ;;  %v177_v42 = vpop.f32.mrf.mxu0  ;;  %864 = vmatpush.msra.mxu2 %v2797_v34 }
  0xa6   :  { %v2901_v21 = vadd.f32 %v177_v42, %v2861_v36  ;;  %v218_v43 = vpop.f32.mrf.mxu1  ;;  %972 = vmatpush.msra.mxu0 %v2655_v10 }
  0xa7   :  { %v2906_v45 = vadd.f32 %v218_v43, %v2868_v23  ;;  %865 = vmatpush.msra.mxu2 %v2807_v0 }
  0xa8   :  { %3723 = vst [vmem:[#allocation45_spill] sm:$0xff] %v2901_v21  ;;  %715 = vmatmul.f32.vlgmr.msrb.gmra.mxu2 %v3725_v46  ;;  %973 = vmatpush.msra.mxu0 %v2666_v14 }
  0xa9   :  { %3724 = vst [vmem:[#allocation46_spill] sm:$0xff] %v2906_v45  ;;  %735 = vmatmul.f32.vlgmr.msrb.gmra.mxu3 %v3725_v46  ;;  %1001 = vmatpush.msrb.mxu2 %v2583_v53  ;;  %v3731_v46 = vld [vmem:[#allocation16_spill] sm:$0xff] }
  0xaa   :  { %1021 = vmatpush.msrb.mxu3 %v2549_v44  ;;  %988 = vmatpush.msra.mxu1 %v3731_v46 }
  0xab   :  { %v2916_v49 = vpop.f32.mrf.mxu2  ;;  %1002 = vmatpush.msrb.mxu2 %v2599_v59  ;;  %974 = vmatpush.msra.mxu0 %v2681_v18 }
  0xac   :  { %v2920_v26 = vpop.f32.mrf.mxu3  ;;  %1022 = vmatpush.msrb.mxu3 %v2557_v47  ;;  %v3732_v47 = vld [vmem:[#allocation17_spill] sm:$0xff] }
  0xad   :  { %v180_v52 = vpop.f32.mrf.mxu0  ;;  %1003 = vmatpush.msrb.mxu2 %v2625_v1  ;;  %989 = vmatpush.msra.mxu1 %v3732_v47 }
  0xae   :  { %v2927_v44 = vadd.f32 %v180_v52, %v2861_v36  ;;  %v221_v42 = vpop.f32.mrf.mxu1  ;;  %1023 = vmatpush.msrb.mxu3 %v2575_v50  ;;  %v2941_v52 = vperm.slane %v2852_v61, 2  ;;  %975 = vmatpush.msra.mxu0 %v2689_v22 }
  0xaf   :  { %v2932_v43 = vadd.f32 %v221_v42, %v2868_v23  ;;  %1004 = vmatpush.msrb.mxu2 %v2637_v5  ;;  %v2946_v42 = vperm.slane %v2852_v61, 3  ;;  %990 = vmatpush.msra.mxu1 %v2631_v3 }
  0xb0   :  { %3729 = vst [vmem:[#allocation13_spill] sm:$0xff] %v2927_v44  ;;  %1024 = vmatpush.msrb.mxu3 %v2591_v56  ;;  %976 = vmatpush.msra.mxu0 %v2707_v28 }
  0xb1   :  { %3730 = vst [vmem:[#allocation14_spill] sm:$0xff] %v2932_v43  ;;  %1005 = vmatpush.msrb.mxu2 %v2663_v13  ;;  %991 = vmatpush.msra.mxu1 %v2645_v7 }
  0xb2   :  { %1025 = vmatpush.msrb.mxu3 %v2617_v62 }
  0xb3   :  { %v256_v41 = vpop.f32.mrf.mxu2  ;;  %1006 = vmatpush.msrb.mxu2 %v2675_v17  ;;  %992 = vmatpush.msra.mxu1 %v2657_v11 }
  0xb4   :  { %v2951_v40 = vadd.f32 %v256_v41, %v2941_v52  ;;  %v297_v43 = vpop.f32.mrf.mxu3  ;;  %1026 = vmatpush.msrb.mxu3 %v2633_v4 }
  0xb5   :  { %v2956_v44 = vadd.f32 %v297_v43, %v2946_v42  ;;  %v183_v45 = vpop.f32.mrf.mxu0  ;;  %1007 = vmatpush.msrb.mxu2 %v2699_v25  ;;  %993 = vmatpush.msra.mxu1 %v2668_v15 }
  0xb6   :  { %3733 = vst [vmem:[#allocation15_spill] sm:$0xff] %v2951_v40  ;;  %v2961_v21 = vadd.f32 %v183_v45, %v2861_v36  ;;  %v224_v9 = vpop.f32.mrf.mxu1  ;;  %1027 = vmatpush.msrb.mxu3 %v2659_v12 }
  0xb7   :  { %3734 = vst [vmem:[#allocation16_spill] sm:$0xff] %v2956_v44  ;;  %v2966_v41 = vadd.f32 %v224_v9, %v2868_v23  ;;  %1008 = vmatpush.msrb.mxu2 %v2705_v27  ;;  %994 = vmatpush.msra.mxu1 %v2683_v19  ;;  %v3740_v44 = vld [vmem:[#allocation23_spill] sm:$0xff] }
  0xb8   :  { %3735 = vst [vmem:[#allocation17_spill] sm:$0xff] %v2961_v21  ;;  %1028 = vmatpush.msrb.mxu3 %v2671_v16 }
  0xb9   :  { %3736 = vst [vmem:[#allocation47_spill] sm:$0xff] %v2966_v41  ;;  %1009 = vmatpush.msrb.mxu2 %v2731_v30  ;;  %v3738_v41 = vld [vmem:[#allocation24_spill] sm:$0xff]  ;;  %995 = vmatpush.msra.mxu1 %v3740_v44 }
  0xba   :  { %1029 = vmatpush.msrb.mxu3 %v2697_v24 }
  0xbb   :  { %v259_v45 = vpop.f32.mrf.mxu2  ;;  %1010 = vmatpush.msrb.mxu2 %v2742_v20 }
  0xbc   :  { %v2979_v9 = vadd.f32 %v259_v45, %v2941_v52  ;;  %v300_v43 = vpop.f32.mrf.mxu3  ;;  %1030 = vmatpush.msrb.mxu3 %v3738_v41 }
  0xbd   :  { %v2984_v21 = vadd.f32 %v300_v43, %v2946_v42  ;;  %v186_v40 = vpop.f32.mrf.mxu0  ;;  %1011 = vmatpush.msrb.mxu2 %v2756_v35 }
  0xbe   :  { %3737 = vst [vmem:[#allocation48_spill] sm:$0xff] %v2979_v9  ;;  %v2989_v38 = vadd.f32 %v186_v40, %v2861_v36  ;;  %v227_v22 = vpop.f32.mrf.mxu1  ;;  %1031 = vmatpush.msrb.mxu3 %v2729_v8  ;;  %v3743_v9 = vld [vmem:[#allocation26_spill] sm:$0xff] }
  0xbf   :  { %3739 = vst [vmem:[#allocation24_spill] sm:$0xff] %v2984_v21  ;;  %v2994_v45 = vadd.f32 %v227_v22, %v2868_v23  ;;  %996 = vmatpush.msra.mxu1 %v3743_v9  ;;  %1012 = vmatpush.msrb.mxu2 %v2768_v32 }
  0xc0   :  { %3741 = vst [vmem:[#allocation49_spill] sm:$0xff] %v2989_v38  ;;  %1032 = vmatpush.msrb.mxu3 %v2733_v31 }
  0xc1   :  { %3742 = vst [vmem:[#allocation50_spill] sm:$0xff] %v2994_v45  ;;  %1013 = vmatpush.msrb.mxu2 %v2782_v55 }
  0xc2   :  { %1033 = vmatpush.msrb.mxu3 %v2754_v33 }
  0xc3   :  { %v262_v40 = vpop.f32.mrf.mxu2  ;;  %1014 = vmatpush.msrb.mxu2 %v2786_v58 }
  0xc4   :  { %v3002_v43 = vadd.f32 %v262_v40, %v2941_v52  ;;  %v303_v38 = vpop.f32.mrf.mxu3  ;;  %1034 = vmatpush.msrb.mxu3 %v2763_v37 }
  0xc5   :  { %v3007_v22 = vadd.f32 %v303_v38, %v2946_v42  ;;  %v335_v45 = vpop.f32.mrf.mxu0  ;;  %1015 = vmatpush.msrb.mxu2 %v2797_v34 }
  0xc6   :  { %3744 = vst [vmem:[#allocation51_spill] sm:$0xff] %v3002_v43  ;;  %v376_v21 = vpop.f32.mrf.mxu1  ;;  %1035 = vmatpush.msrb.mxu3 %v2780_v39 }
  0xc7   :  { %3745 = vst [vmem:[#allocation52_spill] sm:$0xff] %v3007_v22  ;;  %1016 = vmatpush.msrb.mxu2 %v2807_v0 }
  0xc8   :  { %1036 = vmatpush.msrb.mxu3 %v2791_v57 }
  0xcb   :  { %v265_v40 = vpop.f32.mrf.mxu2 }
  0xcc   :  { %v3015_v43 = vadd.f32 %v265_v40, %v2941_v52  ;;  %v306_v9 = vpop.f32.mrf.mxu3 }
  0xcd   :  { %v3018_v38 = vadd.f32 %v306_v9, %v2946_v42  ;;  %v338_v45 = vpop.f32.mrf.mxu0 }
  0xce   :  { %3746 = vst [vmem:[#allocation53_spill] sm:$0xff] %v3015_v43  ;;  %v379_v21 = vpop.f32.mrf.mxu1 }
  0xcf   :  { %3747 = vst [vmem:[#allocation54_spill] sm:$0xff] %v3018_v38 }
  0xd3   :  { %v268_v22 = vpop.f32.mrf.mxu2 }
  0xd4   :  { %v3021_v28 = vadd.f32 %v268_v22, %v2941_v52  ;;  %v309_v39 = vpop.f32.mrf.mxu3 }
  0xd5   :  { %v3024_v34 = vadd.f32 %v309_v39, %v2946_v42  ;;  %v341_v57 = vpop.f32.mrf.mxu0 }
  0xd6   :  { %3748 = vst [vmem:[#allocation55_spill] sm:$0xff] %v3021_v28  ;;  %v382_v0 = vpop.f32.mrf.mxu1 }
  0xd7   :  { %3749 = vst [vmem:[#allocation56_spill] sm:$0xff] %v3024_v34 }
  0xdb   :  { %v271_v44 = vpop.f32.mrf.mxu2 }
  0xdc   :  { %v3027_v40 = vadd.f32 %v271_v44, %v2941_v52  ;;  %v312_v43 = vpop.f32.mrf.mxu3 }
  0xdd   :  { %v3030_v9 = vadd.f32 %v312_v43, %v2946_v42  ;;  %v344_v45 = vpop.f32.mrf.mxu0 }
  0xde   :  { %3750 = vst [vmem:[#allocation57_spill] sm:$0xff] %v3027_v40  ;;  %v385_v21 = vpop.f32.mrf.mxu1  ;;  %v117_v45 = vperm.slane %v2852_v61, 4 }
  0xdf   :  { %3751 = vst [vmem:[#allocation58_spill] sm:$0xff] %v3030_v9 }
  0xe3   :  { %v274_v38 = vpop.f32.mrf.mxu2 }
  0xe4   :  { %v3033_v22 = vadd.f32 %v274_v38, %v2941_v52  ;;  %v315_v28 = vpop.f32.mrf.mxu3 }
  0xe5   :  { %v3036_v39 = vadd.f32 %v315_v28, %v2946_v42  ;;  %v347_v57 = vpop.f32.mrf.mxu0 }
  0xe6   :  { %3752 = vst [vmem:[#allocation59_spill] sm:$0xff] %v3033_v22  ;;  %v388_v0 = vpop.f32.mrf.mxu1  ;;  %v3754_v57 = vld [vmem:[#allocation35_spill] sm:$0xff] }
  0xe7   :  { %3753 = vst [vmem:[#allocation60_spill] sm:$0xff] %v3036_v39 }
  0xeb   :  { %v417_v34 = vpop.f32.mrf.mxu2 }
  0xec   :  { %v458_v37 = vpop.f32.mrf.mxu3  ;;  %v172_v34 = vadd.f32 %v3754_v57, %v2861_v36 }
  0xed   :  { %v350_v44 = vpop.f32.mrf.mxu0 }
  0xee   :  { %v391_v40 = vpop.f32.mrf.mxu1 }
  0xef   :  { %v3755_v40 = vld [vmem:[#allocation36_spill] sm:$0xff] }
  0xf3   :  { %v420_v58 = vpop.f32.mrf.mxu2 }
  0xf4   :  { %v461_v19 = vpop.f32.mrf.mxu3  ;;  %v213_v58 = vadd.f32 %v3755_v40, %v2868_v23 }
  0xf5   :  { %v353_v43 = vpop.f32.mrf.mxu0 }
  0xf6   :  { %v394_v9 = vpop.f32.mrf.mxu1 }
  0xfb   :  { %v423_v21 = vpop.f32.mrf.mxu2 }
  0xfc   :  { %v464_v18 = vpop.f32.mrf.mxu3 }
  0xfd   :  { %v356_v38 = vpop.f32.mrf.mxu0 }
  0xfe   :  { %v357_v22 = vadd.f32 %v356_v38, %v117_v45  ;;  %v397_v33 = vpop.f32.mrf.mxu1 }
 0x100   :  { %v2022_v55 = vmul.f32 -1.442695, %v357_v22 }
 0x102   :  { %2068 = vpow2.f32 %v2022_v55 }
 0x103   :  { %v426_v28 = vpop.f32.mrf.mxu2 }
 0x104   :  { %v467_v37 = vpop.f32.mrf.mxu3 }
 0x105   :  { %v676_v19 = vpop.f32.mrf.mxu0 }
 0x106   :  { %v739_v0 = vadd.f32 %v676_v19, %v172_v34  ;;  %v696_v9 = vpop.f32.mrf.mxu1 }
 0x107   :  { %v740_v44 = vadd.f32 %v696_v9, %v213_v58 }
 0x108   :  { %v2024_v43 = vmul.f32 -1.442695, %v739_v0  ;;  %v2069_v21 = vpop.eup %2068 }
 0x109   :  { %v2025_v18 = vmul.f32 -1.442695, %v740_v44  ;;  %v552_v33 = vadd.f32 1.0, %v2069_v21 }
 0x10a   :  { %2070 = vpow2.f32 %v2024_v43 }
 0x10b   :  { %v429_v45 = vpop.f32.mrf.mxu2  ;;  %2072 = vpow2.f32 %v2025_v18  ;;  %v119_v18 = vperm.slane %v2852_v61, 6  ;;  %vm558_vm1 = vweird.f32 %v552_v33  ;;  %v562_v23 = vand.u32 2147483647, %v552_v33 }
 0x10c   :  { %v470_v55 = vpop.f32.mrf.mxu3  ;;  %2074 = vrcp.f32 %v552_v33 }
 0x10d   :  { %vm563_vm4 = vcmp.eq.f32.partialorder %v562_v23, 8.507059e+37 }
 0x110   :  { %v2071_v22 = vpop.eup %2070 }
 0x111   :  { %v2073_v38 = vpop.eup %2072  ;;  %v3045_v37 = vadd.f32 1.0, %v2071_v22  ;;  %v120_v22 = vperm.slane %v2852_v61, 7 }
 0x112   :  { %v3043_v28 = vadd.f32 1.0, %v2073_v38  ;;  %v2075_v34 = vpop.eup %2074 }
 0x113   :  { %v432_v57 = vpop.f32.mrf.mxu2  ;;  %v554_v58 = vmul.f32 %v2075_v34, %v552_v33  ;;  %vm559_vm2 = vweird.f32 %v2075_v34  ;;  %vm752_vm9 = vweird.f32 %v3045_v37 }
 0x114   :  { %v473_v40 = vpop.f32.mrf.mxu3  ;;  %2076 = vrcp.f32 %v3043_v28  ;;  %vm3059_vm3 = vmor %vm558_vm1, %vm559_vm2  ;;  %vm771_vm5 = vweird.f32 %v3043_v28  ;;  %v777_v15 = vand.u32 2147483648, %v3043_v28 }
 0x115   :  { %2078 = vrcp.f32 %v3045_v37  ;;  %v555_v44 = vsub.f32 1.0, %v554_v58 }
 0x117   :  { %v556_v55 = vmul.f32 %v2075_v34, %v555_v44 }
 0x119   :  { %v557_v39 = vadd.f32 %v2075_v34, %v556_v55 }
 0x11a   :  { %v3049_v0 = vpop.eup %2076 }
 0x11b   :  { %v435_v19 = vpop.f32.mrf.mxu2  ;;  %v3051_v43 = vpop.eup %2078  ;;  %v767_v21 = vmul.f32 %v3049_v0, %v3043_v28  ;;  %vm772_vm6 = vweird.f32 %v3049_v0 }
 0x11c   :  { %v476_v9 = vpop.f32.mrf.mxu3  ;;  %v748_v45 = vmul.f32 %v3051_v43, %v3045_v37  ;;  %v564_v19 = vand.u32 2147483648, %v552_v33  ;;  %v254_v33 = vadd.f32 %v2916_v49, %v2941_v52  ;;  %vm753_vm7 = vweird.f32 %v3051_v43  ;;  %vm3081_vm8 = vmor %vm771_vm5, %vm772_vm6 }
 0x11d   :  { %v768_v38 = vsub.f32 1.0, %v767_v21  ;;  %v561_v21 = vsel %vm3059_vm3, %v2075_v34, %v557_v39  ;;  %v775_v39 = vand.u32 2147483647, %v3043_v28  ;;  %v758_v52 = vand.u32 2147483648, %v3045_v37  ;;  %vm754_vm10 = vmor %vm752_vm9, %vm753_vm7 }
 0x11e   :  { %v749_v9 = vsub.f32 1.0, %v748_v45  ;;  %v565_v61 = vor.u32 1.1754944e-38, %v564_v19  ;;  %v295_v45 = vadd.f32 %v2920_v26, %v2946_v42 }
 0x11f   :  { %v769_v44 = vmul.f32 %v3049_v0, %v768_v38  ;;  %vm776_vm11 = vcmp.eq.f32.partialorder %v775_v39, 8.507059e+37 }
 0x120   :  { %v566_v23 = vsel %vm563_vm4, %v565_v61, %v561_v21  ;;  %v759_v61 = vor.u32 1.1754944e-38, %v758_v52 }
 0x123   :  { %v438_v57 = vpop.f32.mrf.mxu2 }
 0x124   :  { %v439_v40 = vadd.f32 %v438_v57, %v119_v18  ;;  %v479_v58 = vpop.f32.mrf.mxu3  ;;  %v750_v18 = vmul.f32 %v3051_v43, %v749_v9  ;;  %v778_v9 = vor.u32 1.1754944e-38, %v777_v15 }
 0x125   :  { %v480_v36 = vadd.f32 %v479_v58, %v120_v22  ;;  %v770_v22 = vadd.f32 %v3049_v0, %v769_v44 }
 0x126   :  { %2080 = vtanh.f32 %v439_v40  ;;  %v751_v49 = vadd.f32 %v3051_v43, %v750_v18  ;;  %v756_v40 = vand.u32 2147483647, %v3045_v37 }
 0x127   :  { %v2023_v14 = vmul.f32 -1.442695, %v480_v36  ;;  %v774_v19 = vsel %vm3081_vm8, %v3049_v0, %v770_v22 }
 0x128   :  { %v755_v28 = vsel %vm754_vm10, %v3051_v43, %v751_v49  ;;  %v779_v21 = vsel %vm776_vm11, %v778_v9, %v774_v19  ;;  %vm757_vm12 = vcmp.eq.f32.partialorder %v756_v40, 8.507059e+37 }
 0x129   :  { %2082 = vpow2.f32 %v2023_v14 }
 0x12b   :  { %v716_v55 = vpop.f32.mrf.mxu2 }
 0x12c   :  { %v2081_v36 = vpop.eup %2080  ;;  %v741_v14 = vadd.f32 %v716_v55, %v254_v33  ;;  %v736_v34 = vpop.f32.mrf.mxu3  ;;  %v760_v33 = vsel %vm757_vm12, %v759_v61, %v755_v28 }
 0x12d   :  { %v588_v38 = vmul.f32 %v2081_v36, %v566_v23  ;;  %v742_v26 = vadd.f32 %v736_v34, %v295_v45  ;;  %v801_v45 = vmul.f32 0.0, %v779_v21 }
 0x12e   :  { %2084 = vtanh.f32 %v741_v14 }
 0x12f   :  { %v2083_v57 = vpop.eup %2082  ;;  %v2026_v58 = vmul.f32 -1.442695, %v742_v26 }
 0x130   :  { %v572_v44 = vadd.f32 1.0, %v2083_v57 }
 0x131   :  { %2086 = vpow2.f32 %v2026_v58 }
 0x132   :  { %2088 = vrcp.f32 %v572_v44  ;;  %v584_v43 = vand.u32 2147483648, %v572_v44  ;;  %v582_v39 = vand.u32 2147483647, %v572_v44  ;;  %vm578_vm14 = vweird.f32 %v572_v44 }
 0x134   :  { %v2085_v18 = vpop.eup %2084  ;;  %v585_v26 = vor.u32 1.1754944e-38, %v584_v43  ;;  %vm583_vm0 = vcmp.eq.f32.partialorder %v582_v39, 8.507059e+37  ;;  %v3116_v43 = vld [vmem:[#allocation6 + $0x1a0] sm:$0xff] }
 0x135   :  { %v802_v37 = vmul.f32 %v2085_v18, %v760_v33  ;;  %v3132_v39 = vld [vmem:[#allocation6 + $0x160] sm:$0xff] }
 0x137   :  { %v2087_v55 = vpop.eup %2086  ;;  %v3091_v36 = vadd.f32 %v802_v37, %v801_v45  ;;  %v3096_v37 = vld [vmem:[#allocation6 + $0x1e0] sm:$0xff] }
 0x138   :  { %v2089_v0 = vpop.eup %2088  ;;  %v785_v22 = vadd.f32 1.0, %v2087_v55  ;;  %v3099_v55 = vld [vmem:[#allocation6 + $0x1e8] sm:$0xff] }
 0x139   :  { %v574_v15 = vmul.f32 %v2089_v0, %v572_v44  ;;  %vm579_vm13 = vweird.f32 %v2089_v0 }
 0x13a   :  { %2090 = vrcp.f32 %v785_v22  ;;  %vm580_vm15 = vmor %vm578_vm14, %vm579_vm13  ;;  %v795_v28 = vand.u32 2147483647, %v785_v22  ;;  %vm791_vm2 = vweird.f32 %v785_v22 }
 0x13b   :  { %v575_v23 = vsub.f32 1.0, %v574_v15  ;;  %2092 = vtanh.f32 %v588_v38  ;;  %v797_v38 = vand.u32 2147483648, %v785_v22  ;;  %v3109_v15 = vld [vmem:[#allocation6 + $0x1c8] sm:$0xff] }
 0x13c   :  { %2094 = vtanh.f32 %v3091_v36  ;;  %vm796_vm4 = vcmp.eq.f32.partialorder %v795_v28, 8.507059e+37 }
 0x13d   :  { %v576_v14 = vmul.f32 %v2089_v0, %v575_v23  ;;  %v798_v44 = vor.u32 1.1754944e-38, %v797_v38  ;;  %v3113_v23 = vld [vmem:[#allocation6 + $0x1d8] sm:$0xff] }
 0x13f   :  { %v577_v34 = vadd.f32 %v2089_v0, %v576_v14  ;;  %v3124_v14 = vld [vmem:[#allocation6 + $0x180] sm:$0xff] }
 0x140   :  { %v2091_v49 = vpop.eup %2090 }
 0x141   :  { %v787_v52 = vmul.f32 %v2091_v49, %v785_v22  ;;  %v581_v42 = vsel %vm580_vm15, %v2089_v0, %v577_v34  ;;  %v2093_v57 = vpop.eup %2092  ;;  %vm792_vm1 = vweird.f32 %v2091_v49  ;;  %v3103_v0 = vld [vmem:[#allocation6 + $0x1f8] sm:$0xff]  ;;  %v3106_v22 = vld [vmem:[#allocation6 + $0x1c0] sm:$0xff]  ;;  %v3135_v34 = vld [vmem:[#allocation6 + $0x168] sm:$0xff] }
 0x142   :  { %v586_v40 = vsel %vm583_vm0, %v585_v26, %v581_v42  ;;  %vm793_vm3 = vmor %vm791_vm2, %vm792_vm1  ;;  %v2095_v18 = vpop.eup %2094 }
 0x143   :  { %v788_v19 = vsub.f32 1.0, %v787_v52  ;;  %v3093_v58 = vmul.f32 %v2093_v57, %v586_v40  ;;  %v3780_v52 = vld [vmem:[#allocation15_spill] sm:$0xff] }
 0x145   :  { %3760 = vst [vmem:[#allocation35_spill] sm:$0xff] %v3093_v58  ;;  %v789_v9 = vmul.f32 %v2091_v49, %v788_v19  ;;  %v3354_v58 = vld [vmem:[#allocation6 + $0x10] sm:$0xff] }
 0x146   :  { %3805 = vst [vmem:[#allocation64_spill] sm:$0xff] %v3354_v58 }
 0x147   :  { %v790_v61 = vadd.f32 %v2091_v49, %v789_v9 }
 0x149   :  { %v794_v21 = vsel %vm793_vm3, %v2091_v49, %v790_v61 }
 0x14a   :  { %v799_v33 = vsel %vm796_vm4, %v798_v44, %v794_v21 }
 0x14b   :  { %v805_v45 = vmul.f32 %v2095_v18, %v799_v33 }
 0x14d   :  { %826 = vmatmul.f32.vlgmr.msrb.gmra.mxu0 %v805_v45  ;;  %846 = vmatmul.f32.vlgmr.msrb.gmra.mxu1 %v805_v45 }
 0x14e   :  { %866 = vmatmul.f32.vlgmr.msra.gmra.mxu2 %v805_v45  ;;  %886 = vmatmul.f32.vlgmr.msra.gmra.mxu3 %v805_v45 }
 0x14f   :  { %1112 = vmatpush.msrb.mxu0 %v3096_v37  ;;  %1132 = vmatpush.msrb.mxu1 %v3099_v55 }
 0x150   :  { %1152 = vmatpush.msra.mxu2 %v2583_v53  ;;  %1172 = vmatpush.msra.mxu3 %v3103_v0  ;;  %v3119_v53 = vld [vmem:[#allocation6 + $0x1a8] sm:$0xff] }
 0x151   :  { %1113 = vmatpush.msrb.mxu0 %v3106_v22  ;;  %1133 = vmatpush.msrb.mxu1 %v3109_v15 }
 0x152   :  { %1153 = vmatpush.msra.mxu2 %v2599_v59  ;;  %1173 = vmatpush.msra.mxu3 %v3113_v23  ;;  %v3127_v59 = vld [vmem:[#allocation6 + $0x188] sm:$0xff] }
 0x153   :  { %1114 = vmatpush.msrb.mxu0 %v3116_v43  ;;  %1134 = vmatpush.msrb.mxu1 %v3119_v53 }
 0x154   :  { %1154 = vmatpush.msra.mxu2 %v2625_v1  ;;  %1174 = vmatpush.msra.mxu3 %v2575_v50  ;;  %v3761_v50 = vld [vmem:[#allocation18_spill] sm:$0xff]  ;;  %v3767_v1 = vld [vmem:[#allocation31_spill] sm:$0xff] }
 0x155   :  { %1115 = vmatpush.msrb.mxu0 %v3124_v14  ;;  %1135 = vmatpush.msrb.mxu1 %v3127_v59 }
 0x156   :  { %1155 = vmatpush.msra.mxu2 %v2637_v5  ;;  %1175 = vmatpush.msra.mxu3 %v2591_v56  ;;  %v3763_v56 = vld [vmem:[#allocation30_spill] sm:$0xff]  ;;  %v3771_v5 = vld [vmem:[#allocation33_spill] sm:$0xff] }
 0x157   :  { %1116 = vmatpush.msrb.mxu0 %v3132_v39  ;;  %1136 = vmatpush.msrb.mxu1 %v3135_v34 }
 0x158   :  { %1156 = vmatpush.msra.mxu2 %v2663_v13  ;;  %1176 = vmatpush.msra.mxu3 %v2617_v62  ;;  %v3765_v62 = vld [vmem:[#allocation20_spill] sm:$0xff] }
 0x159   :  { %1117 = vmatpush.msrb.mxu0 %v2585_v54  ;;  %1137 = vmatpush.msrb.mxu1 %v3726_v48  ;;  %v3762_v54 = vld [vmem:[#allocation19_spill] sm:$0xff] }
 0x15a   :  { %1157 = vmatpush.msra.mxu2 %v2675_v17  ;;  %1177 = vmatpush.msra.mxu3 %v2633_v4  ;;  %v3770_v4 = vld [vmem:[#allocation23_spill] sm:$0xff]  ;;  %v3777_v17 = vld [vmem:[#allocation41_spill] sm:$0xff] }
 0x15b   :  { %1118 = vmatpush.msrb.mxu0 %v3727_v51  ;;  %1138 = vmatpush.msrb.mxu1 %v3728_v29 }
 0x15c   :  { %1158 = vmatpush.msra.mxu2 %v2699_v25  ;;  %1178 = vmatpush.msra.mxu3 %v2659_v12  ;;  %v3776_v12 = vld [vmem:[#allocation32_spill] sm:$0xff]  ;;  %v3778_v25 = vld [vmem:[#allocation42_spill] sm:$0xff] }
 0x15d   :  { %1119 = vmatpush.msrb.mxu0 %v2605_v60  ;;  %1139 = vmatpush.msrb.mxu1 %v3731_v46  ;;  %v3764_v60 = vld [vmem:[#allocation27_spill] sm:$0xff] }
 0x15e   :  { %1159 = vmatpush.msra.mxu2 %v2705_v27  ;;  %1179 = vmatpush.msra.mxu3 %v2671_v16 }
 0x15f   :  { %1120 = vmatpush.msrb.mxu0 %v2619_v63  ;;  %1140 = vmatpush.msrb.mxu1 %v3732_v47  ;;  %v3766_v63 = vld [vmem:[#allocation21_spill] sm:$0xff] }
 0x160   :  { %1160 = vmatpush.msra.mxu2 %v2731_v30  ;;  %1180 = vmatpush.msra.mxu3 %v2697_v24 }
 0x161   :  { %1121 = vmatpush.msrb.mxu0 %v2629_v2  ;;  %1141 = vmatpush.msrb.mxu1 %v2631_v3  ;;  %v3768_v2 = vld [vmem:[#allocation28_spill] sm:$0xff]  ;;  %v3769_v3 = vld [vmem:[#allocation22_spill] sm:$0xff] }
 0x162   :  { %1161 = vmatpush.msra.mxu2 %v2742_v20  ;;  %1181 = vmatpush.msra.mxu3 %v3738_v41  ;;  %v3779_v20 = vld [vmem:[#allocation16_spill] sm:$0xff] }
 0x163   :  { %1122 = vmatpush.msrb.mxu0 %v2643_v6  ;;  %1142 = vmatpush.msrb.mxu1 %v2645_v7  ;;  %v3772_v6 = vld [vmem:[#allocation29_spill] sm:$0xff] }
 0x164   :  { %1162 = vmatpush.msra.mxu2 %v2756_v35  ;;  %1182 = vmatpush.msra.mxu3 %v2729_v8  ;;  %v3773_v7 = vld [vmem:[#allocation25_spill] sm:$0xff] }
 0x165   :  { %1123 = vmatpush.msrb.mxu0 %v2655_v10  ;;  %1143 = vmatpush.msrb.mxu1 %v2657_v11  ;;  %v3774_v10 = vld [vmem:[#allocation26_spill] sm:$0xff] }
 0x166   :  { %1163 = vmatpush.msra.mxu2 %v2768_v32  ;;  %1183 = vmatpush.msra.mxu3 %v2733_v31  ;;  %v3775_v11 = vld [vmem:[#allocation34_spill] sm:$0xff] }
 0x167   :  { %1124 = vmatpush.msrb.mxu0 %v3761_v50  ;;  %1144 = vmatpush.msrb.mxu1 %v3762_v54 }
 0x168   :  { %1164 = vmatpush.msra.mxu2 %v3763_v56  ;;  %1184 = vmatpush.msra.mxu3 %v3764_v60 }
 0x169   :  { %1125 = vmatpush.msrb.mxu0 %v3765_v62  ;;  %1145 = vmatpush.msrb.mxu1 %v3766_v63 }
 0x16a   :  { %1165 = vmatpush.msra.mxu2 %v3767_v1  ;;  %1185 = vmatpush.msra.mxu3 %v3768_v2 }
 0x16b   :  { %1126 = vmatpush.msrb.mxu0 %v3769_v3  ;;  %1146 = vmatpush.msrb.mxu1 %v3770_v4 }
 0x16c   :  { %1166 = vmatpush.msra.mxu2 %v3771_v5  ;;  %1186 = vmatpush.msra.mxu3 %v3772_v6 }
 0x16d   :  { %1127 = vmatpush.msrb.mxu0 %v3773_v7  ;;  %1147 = vmatpush.msrb.mxu1 %v3774_v10 }
 0x16e   :  { %1167 = vmatpush.msra.mxu2 %v3775_v11  ;;  %1187 = vmatpush.msra.mxu3 %v3776_v12 }
 0x1ca   :  { %v827_v13 = vpop.f32.mrf.mxu0  ;;  %v847_v16 = vpop.f32.mrf.mxu1 }
 0x1cb   :  { %v890_v24 = vadd.f32 %v827_v13, %v3777_v17  ;;  %v891_v27 = vadd.f32 %v847_v16, %v3778_v25 }
 0x1cd   :  { %v2027_v8 = vmul.f32 -1.442695, %v890_v24  ;;  %v2028_v30 = vmul.f32 -1.442695, %v891_v27 }
 0x1cf   :  { %2096 = vpow2.f32 %v2027_v8 }
 0x1d0   :  { %2098 = vpow2.f32 %v2028_v30  ;;  %v3200_v30 = vld [vmem:[#allocation6 + $0x1d0] sm:$0xff] }
 0x1d1   :  { %v887_v31 = vpop.f32.mrf.mxu3  ;;  %v867_v47 = vpop.f32.mrf.mxu2 }
 0x1d2   :  { %v893_v35 = vadd.f32 %v887_v31, %v3779_v20  ;;  %v892_v42 = vadd.f32 %v867_v47, %v3780_v52  ;;  %v3206_v31 = vld [vmem:[#allocation6 + $0x1b0] sm:$0xff]  ;;  %v3209_v20 = vld [vmem:[#allocation6 + $0x1b8] sm:$0xff] }
 0x1d3   :  { %v3234_v47 = vld [vmem:[#allocation6 + $0x150] sm:$0xff] }
 0x1d4   :  { %v2029_v32 = vmul.f32 -1.442695, %v893_v35  ;;  %v3214_v35 = vld [vmem:[#allocation6 + $0x190] sm:$0xff] }
 0x1d5   :  { %v2097_v48 = vpop.eup %2096  ;;  %v3246_v52 = vld [vmem:[#allocation6 + $0x130] sm:$0xff] }
 0x1d6   :  { %v2099_v51 = vpop.eup %2098  ;;  %v897_v29 = vadd.f32 1.0, %v2097_v48  ;;  %2100 = vpow2.f32 %v2029_v32  ;;  %v3217_v32 = vld [vmem:[#allocation6 + $0x198] sm:$0xff]  ;;  %v3222_v48 = vld [vmem:[#allocation6 + $0x170] sm:$0xff] }
 0x1d7   :  { %v916_v46 = vadd.f32 1.0, %v2099_v51  ;;  %v3225_v51 = vld [vmem:[#allocation6 + $0x178] sm:$0xff] }
 0x1d8   :  { %2102 = vrcp.f32 %v897_v29  ;;  %v909_v28 = vand.u32 2147483648, %v897_v29  ;;  %v907_v21 = vand.u32 2147483647, %v897_v29  ;;  %vm903_vm7 = vweird.f32 %v897_v29 }
 0x1d9   :  { %2104 = vrcp.f32 %v916_v46  ;;  %v928_v61 = vand.u32 2147483648, %v916_v46  ;;  %v926_v33 = vand.u32 2147483647, %v916_v46  ;;  %vm922_vm8 = vweird.f32 %v916_v46 }
 0x1da   :  { %v910_v54 = vor.u32 1.1754944e-38, %v909_v28  ;;  %vm908_vm11 = vcmp.eq.f32.partialorder %v907_v21, 8.507059e+37  ;;  %v3267_v28 = vld [vmem:[#allocation6 + $0xe8] sm:$0xff]  ;;  %v3276_v21 = vld [vmem:[#allocation6 + $0xc0] sm:$0xff] }
 0x1db   :  { %v929_v62 = vor.u32 1.1754944e-38, %v928_v61  ;;  %vm927_vm12 = vcmp.eq.f32.partialorder %v926_v33, 8.507059e+37  ;;  %v3270_v61 = vld [vmem:[#allocation6 + $0xf0] sm:$0xff] }
 0x1dc   :  { %v2101_v41 = vpop.eup %2100  ;;  %v3282_v33 = vld [vmem:[#allocation6 + $0xd0] sm:$0xff] }
 0x1dd   :  { %v936_v49 = vadd.f32 1.0, %v2101_v41  ;;  %v3237_v41 = vld [vmem:[#allocation6 + $0x158] sm:$0xff]  ;;  %3781 = vst [vmem:[#allocation36_spill] sm:$0xff] %v3282_v33 }
 0x1de   :  { %v2103_v26 = vpop.eup %2102 }
 0x1df   :  { %v2105_v57 = vpop.eup %2104  ;;  %v899_v40 = vmul.f32 %v2103_v26, %v897_v29  ;;  %2106 = vrcp.f32 %v936_v49  ;;  %vm904_vm5 = vweird.f32 %v2103_v26  ;;  %v948_v13 = vand.u32 2147483648, %v936_v49  ;;  %v3228_v29 = vld [vmem:[#allocation6 + $0x140] sm:$0xff] }
 0x1e0   :  { %v918_v19 = vmul.f32 %v2105_v57, %v916_v46  ;;  %2108 = vtanh.f32 %v892_v42  ;;  %vm923_vm6 = vweird.f32 %v2105_v57  ;;  %vm905_vm9 = vmor %vm903_vm7, %vm904_vm5  ;;  %vm942_vm14 = vweird.f32 %v936_v49  ;;  %v3231_v46 = vld [vmem:[#allocation6 + $0x148] sm:$0xff]  ;;  %v3249_v42 = vld [vmem:[#allocation6 + $0x138] sm:$0xff] }
 0x1e1   :  { %v900_v38 = vsub.f32 1.0, %v899_v40  ;;  %vm924_vm10 = vmor %vm922_vm8, %vm923_vm6  ;;  %v946_v16 = vand.u32 2147483647, %v936_v49  ;;  %v949_v24 = vor.u32 1.1754944e-38, %v948_v13  ;;  %v3255_v40 = vld [vmem:[#allocation6 + $0x108] sm:$0xff]  ;;  %v3333_v13 = vld [vmem:[#allocation6 + $0x58] sm:$0xff] }
 0x1e2   :  { %v919_v9 = vsub.f32 1.0, %v918_v19  ;;  %v3258_v19 = vld [vmem:[#allocation6 + $0x110] sm:$0xff]  ;;  %3798 = vst [vmem:[#allocation41_spill] sm:$0xff] %v3333_v13 }
 0x1e3   :  { %v901_v44 = vmul.f32 %v2103_v26, %v900_v38  ;;  %vm947_vm0 = vcmp.eq.f32.partialorder %v946_v16, 8.507059e+37  ;;  %v3261_v38 = vld [vmem:[#allocation6 + $0x118] sm:$0xff]  ;;  %v3336_v16 = vld [vmem:[#allocation6 + $0x20] sm:$0xff] }
 0x1e4   :  { %v920_v18 = vmul.f32 %v2105_v57, %v919_v9  ;;  %v3264_v9 = vld [vmem:[#allocation6 + $0xe0] sm:$0xff]  ;;  %3799 = vst [vmem:[#allocation42_spill] sm:$0xff] %v3336_v16 }
 0x1e5   :  { %v2107_v45 = vpop.eup %2106  ;;  %v902_v50 = vadd.f32 %v2103_v26, %v901_v44  ;;  %v3273_v44 = vld [vmem:[#allocation6 + $0xf8] sm:$0xff] }
 0x1e6   :  { %v921_v56 = vadd.f32 %v2105_v57, %v920_v18  ;;  %v938_v60 = vmul.f32 %v2107_v45, %v936_v49  ;;  %v2109_v1 = vpop.eup %2108  ;;  %vm943_vm13 = vweird.f32 %v2107_v45  ;;  %v3240_v49 = vld [vmem:[#allocation6 + $0x120] sm:$0xff]  ;;  %v3279_v18 = vld [vmem:[#allocation6 + $0xc8] sm:$0xff] }
 0x1e7   :  { %v906_v63 = vsel %vm905_vm9, %v2103_v26, %v902_v50  ;;  %vm944_vm15 = vmor %vm942_vm14, %vm943_vm13  ;;  %v3243_v26 = vld [vmem:[#allocation6 + $0x128] sm:$0xff]  ;;  %v3288_v50 = vld [vmem:[#allocation6 + $0xa0] sm:$0xff] }
 0x1e8   :  { %v911_v2 = vsel %vm908_vm11, %v910_v54, %v906_v63  ;;  %v925_v3 = vsel %vm924_vm10, %v2105_v57, %v921_v56  ;;  %v939_v4 = vsub.f32 1.0, %v938_v60  ;;  %v3252_v57 = vld [vmem:[#allocation6 + $0x100] sm:$0xff]  ;;  %3783 = vst [vmem:[#allocation19_spill] sm:$0xff] %v3288_v50  ;;  %v3291_v54 = vld [vmem:[#allocation6 + $0xa8] sm:$0xff]  ;;  %v3294_v56 = vld [vmem:[#allocation6 + $0xb0] sm:$0xff] }
 0x1e9   :  { %v930_v5 = vsel %vm927_vm12, %v929_v62, %v925_v3  ;;  %v953_v6 = vmul.f32 %v2109_v1, %v911_v2  ;;  %3784 = vst [vmem:[#allocation30_spill] sm:$0xff] %v3291_v54  ;;  %v3297_v60 = vld [vmem:[#allocation6 + $0xb8] sm:$0xff]  ;;  %v3300_v62 = vld [vmem:[#allocation6 + $0x80] sm:$0xff]  ;;  %v3303_v63 = vld [vmem:[#allocation6 + $0x88] sm:$0xff] }
 0x1ea   :  { %v952_v7 = vmul.f32 %v930_v5, %v3091_v36  ;;  %v940_v10 = vmul.f32 %v2107_v45, %v939_v4  ;;  %v3194_v36 = vld [vmem:[#allocation6 + $0x1f0] sm:$0xff]  ;;  %3785 = vst [vmem:[#allocation27_spill] sm:$0xff] %v3294_v56  ;;  %v3309_v2 = vld [vmem:[#allocation6 + $0x98] sm:$0xff]  ;;  %v3312_v3 = vld [vmem:[#allocation6 + $0x60] sm:$0xff] }
 0x1eb   :  { %3786 = vst [vmem:[#allocation20_spill] sm:$0xff] %v3297_v60  ;;  %v3306_v1 = vld [vmem:[#allocation6 + $0x90] sm:$0xff]  ;;  %v3315_v4 = vld [vmem:[#allocation6 + $0x68] sm:$0xff] }
 0x1ec   :  { %v3189_v11 = vadd.f32 %v953_v6, %v952_v7  ;;  %v941_v12 = vadd.f32 %v2107_v45, %v940_v10  ;;  %3787 = vst [vmem:[#allocation21_spill] sm:$0xff] %v3300_v62  ;;  %v3318_v5 = vld [vmem:[#allocation6 + $0x70] sm:$0xff]  ;;  %v3321_v6 = vld [vmem:[#allocation6 + $0x78] sm:$0xff]  ;;  %v3324_v7 = vld [vmem:[#allocation6 + $0x40] sm:$0xff] }
 0x1ed   :  { %3788 = vst [vmem:[#allocation31_spill] sm:$0xff] %v3303_v63  ;;  %v3327_v10 = vld [vmem:[#allocation6 + $0x48] sm:$0xff] }
 0x1ee   :  { %2110 = vtanh.f32 %v3189_v11  ;;  %v945_v17 = vsel %vm944_vm15, %v2107_v45, %v941_v12  ;;  %v3285_v45 = vld [vmem:[#allocation6 + $0xd8] sm:$0xff]  ;;  %3789 = vst [vmem:[#allocation28_spill] sm:$0xff] %v3306_v1  ;;  %v3330_v12 = vld [vmem:[#allocation6 + $0x50] sm:$0xff] }
 0x1ef   :  { %v950_v27 = vsel %vm947_vm0, %v949_v24, %v945_v17  ;;  %3782 = vst [vmem:[#allocation18_spill] sm:$0xff] %v3285_v45  ;;  %v3339_v17 = vld [vmem:[#allocation6 + $0x28] sm:$0xff]  ;;  %v3342_v24 = vld [vmem:[#allocation6 + $0x30] sm:$0xff] }
 0x1f0   :  { %3790 = vst [vmem:[#allocation22_spill] sm:$0xff] %v3309_v2 }
 0x1f1   :  { %3791 = vst [vmem:[#allocation23_spill] sm:$0xff] %v3312_v3 }
 0x1f2   :  { %3792 = vst [vmem:[#allocation33_spill] sm:$0xff] %v3315_v4 }
 0x1f3   :  { %3793 = vst [vmem:[#allocation29_spill] sm:$0xff] %v3318_v5 }
 0x1f4   :  { %v2111_v25 = vpop.eup %2110  ;;  %3794 = vst [vmem:[#allocation25_spill] sm:$0xff] %v3321_v6 }
 0x1f5   :  { %v956_v8 = vmul.f32 %v2111_v25, %v950_v27  ;;  %3795 = vst [vmem:[#allocation26_spill] sm:$0xff] %v3324_v7  ;;  %v3345_v25 = vld [vmem:[#allocation6 + $0x38] sm:$0xff]  ;;  %v3348_v27 = vld [vmem:[#allocation6] sm:$0xff] }
 0x1f6   :  { %3796 = vst [vmem:[#allocation34_spill] sm:$0xff] %v3327_v10 }
 0x1f7   :  { %977 = vmatmul.f32.vlgmr.msra.gmra.mxu0 %v956_v8  ;;  %997 = vmatmul.f32.vlgmr.msra.gmra.mxu1 %v956_v8  ;;  %3797 = vst [vmem:[#allocation32_spill] sm:$0xff] %v3330_v12 }
 0x1f8   :  { %1017 = vmatmul.f32.vlgmr.msrb.gmra.mxu2 %v956_v8  ;;  %1037 = vmatmul.f32.vlgmr.msrb.gmra.mxu3 %v956_v8  ;;  %3800 = vst [vmem:[#allocation16_spill] sm:$0xff] %v3339_v17  ;;  %v3351_v8 = vld [vmem:[#allocation6 + $0x8] sm:$0xff] }
 0x1f9   :  { %1263 = vmatpush.msra.mxu0 %v3096_v37  ;;  %1283 = vmatpush.msra.mxu1 %v3099_v55  ;;  %3801 = vst [vmem:[#allocation15_spill] sm:$0xff] %v3342_v24 }
 0x1fa   :  { %1303 = vmatpush.msrb.mxu2 %v3194_v36  ;;  %1323 = vmatpush.msrb.mxu3 %v3103_v0  ;;  %3802 = vst [vmem:[#allocation61_spill] sm:$0xff] %v3345_v25 }
 0x1fb   :  { %1264 = vmatpush.msra.mxu0 %v3106_v22  ;;  %1284 = vmatpush.msra.mxu1 %v3109_v15  ;;  %3803 = vst [vmem:[#allocation62_spill] sm:$0xff] %v3348_v27 }
 0x1fc   :  { %1304 = vmatpush.msrb.mxu2 %v3200_v30  ;;  %1324 = vmatpush.msrb.mxu3 %v3113_v23  ;;  %3804 = vst [vmem:[#allocation63_spill] sm:$0xff] %v3351_v8 }
 0x1fd   :  { %1265 = vmatpush.msra.mxu0 %v3116_v43  ;;  %1285 = vmatpush.msra.mxu1 %v3119_v53 }
 0x1fe   :  { %1305 = vmatpush.msrb.mxu2 %v3206_v31  ;;  %1325 = vmatpush.msrb.mxu3 %v3209_v20 }
 0x1ff   :  { %1266 = vmatpush.msra.mxu0 %v3124_v14  ;;  %1286 = vmatpush.msra.mxu1 %v3127_v59 }
 0x200   :  { %1306 = vmatpush.msrb.mxu2 %v3214_v35  ;;  %1326 = vmatpush.msrb.mxu3 %v3217_v32 }
 0x201   :  { %1267 = vmatpush.msra.mxu0 %v3132_v39  ;;  %1287 = vmatpush.msra.mxu1 %v3135_v34 }
 0x202   :  { %1307 = vmatpush.msrb.mxu2 %v3222_v48  ;;  %1327 = vmatpush.msrb.mxu3 %v3225_v51 }
 0x203   :  { %1268 = vmatpush.msra.mxu0 %v3228_v29  ;;  %1288 = vmatpush.msra.mxu1 %v3231_v46 }
 0x204   :  { %1308 = vmatpush.msrb.mxu2 %v3234_v47  ;;  %1328 = vmatpush.msrb.mxu3 %v3237_v41 }
 0x205   :  { %1269 = vmatpush.msra.mxu0 %v3240_v49  ;;  %1289 = vmatpush.msra.mxu1 %v3243_v26 }
 0x206   :  { %1309 = vmatpush.msrb.mxu2 %v3246_v52  ;;  %1329 = vmatpush.msrb.mxu3 %v3249_v42 }
 0x207   :  { %1270 = vmatpush.msra.mxu0 %v3252_v57  ;;  %1290 = vmatpush.msra.mxu1 %v3255_v40 }
 0x208   :  { %1310 = vmatpush.msrb.mxu2 %v3258_v19  ;;  %1330 = vmatpush.msrb.mxu3 %v3261_v38 }
 0x209   :  { %1271 = vmatpush.msra.mxu0 %v3264_v9  ;;  %1291 = vmatpush.msra.mxu1 %v3267_v28 }
 0x20a   :  { %1311 = vmatpush.msrb.mxu2 %v3270_v61  ;;  %1331 = vmatpush.msrb.mxu3 %v3273_v44 }
 0x20b   :  { %1272 = vmatpush.msra.mxu0 %v3276_v21  ;;  %1292 = vmatpush.msra.mxu1 %v3279_v18 }
 0x20c   :  { %1312 = vmatpush.msrb.mxu2 %v3282_v33  ;;  %1332 = vmatpush.msrb.mxu3 %v3285_v45 }
 0x20d   :  { %1273 = vmatpush.msra.mxu0 %v3288_v50  ;;  %1293 = vmatpush.msra.mxu1 %v3291_v54 }
 0x20e   :  { %1313 = vmatpush.msrb.mxu2 %v3294_v56  ;;  %1333 = vmatpush.msrb.mxu3 %v3297_v60 }
 0x20f   :  { %1274 = vmatpush.msra.mxu0 %v3300_v62  ;;  %1294 = vmatpush.msra.mxu1 %v3303_v63 }
 0x210   :  { %1314 = vmatpush.msrb.mxu2 %v3306_v1  ;;  %1334 = vmatpush.msrb.mxu3 %v3309_v2 }
 0x211   :  { %1275 = vmatpush.msra.mxu0 %v3312_v3  ;;  %1295 = vmatpush.msra.mxu1 %v3315_v4 }
 0x212   :  { %1315 = vmatpush.msrb.mxu2 %v3318_v5  ;;  %1335 = vmatpush.msrb.mxu3 %v3321_v6 }
 0x213   :  { %1276 = vmatpush.msra.mxu0 %v3324_v7  ;;  %1296 = vmatpush.msra.mxu1 %v3327_v10 }
 0x214   :  { %1316 = vmatpush.msrb.mxu2 %v3330_v12  ;;  %1336 = vmatpush.msrb.mxu3 %v3333_v13  ;;  %v3807_v13 = vld [vmem:[#allocation45_spill] sm:$0xff]  ;;  %v3808_v12 = vld [vmem:[#allocation46_spill] sm:$0xff] }
 0x215   :  { %1277 = vmatpush.msra.mxu0 %v3336_v16  ;;  %1297 = vmatpush.msra.mxu1 %v3339_v17  ;;  %v3357_v17 = vld [vmem:[#allocation6 + $0x18] sm:$0xff] }
 0x216   :  { %1317 = vmatpush.msrb.mxu2 %v3342_v24  ;;  %1337 = vmatpush.msrb.mxu3 %v3345_v25  ;;  %3806 = vst [vmem:[#allocation65_spill] sm:$0xff] %v3357_v17 }
 0x217   :  { %1278 = vmatpush.msra.mxu0 %v3348_v27  ;;  %1298 = vmatpush.msra.mxu1 %v3351_v8  ;;  %v3809_v8 = vld [vmem:[#allocation24_spill] sm:$0xff] }
 0x218   :  { %1318 = vmatpush.msrb.mxu2 %v3354_v58  ;;  %1338 = vmatpush.msrb.mxu3 %v3357_v17 }
 0x274   :  { %v978_v24 = vpop.f32.mrf.mxu0  ;;  %v998_v16 = vpop.f32.mrf.mxu1 }
 0x275   :  { %v1041_v25 = vadd.f32 %v978_v24, %v3807_v13  ;;  %v1042_v10 = vadd.f32 %v998_v16, %v3808_v12  ;;  %v3810_v12 = vld [vmem:[#allocation48_spill] sm:$0xff] }
 0x277   :  { %v2030_v7 = vmul.f32 -1.442695, %v1041_v25  ;;  %v2031_v27 = vmul.f32 -1.442695, %v1042_v10 }
 0x279   :  { %2112 = vpow2.f32 %v2030_v7 }
 0x27a   :  { %2114 = vpow2.f32 %v2031_v27 }
 0x27b   :  { %v1038_v6 = vpop.f32.mrf.mxu3  ;;  %v1018_v17 = vpop.f32.mrf.mxu2 }
 0x27c   :  { %v1044_v5 = vadd.f32 %v1038_v6, %v3809_v8  ;;  %v1043_v16 = vadd.f32 %v1018_v17, %v3810_v12 }
 0x27e   :  { %v2032_v4 = vmul.f32 -1.442695, %v1044_v5 }
 0x27f   :  { %v2113_v3 = vpop.eup %2112 }
 0x280   :  { %v2115_v58 = vpop.eup %2114  ;;  %v1048_v2 = vadd.f32 1.0, %v2113_v3  ;;  %2116 = vpow2.f32 %v2032_v4 }
 0x281   :  { %v1067_v1 = vadd.f32 1.0, %v2115_v58 }
 0x282   :  { %2118 = vrcp.f32 %v1048_v2  ;;  %v1060_v5 = vand.u32 2147483648, %v1048_v2  ;;  %v1058_v58 = vand.u32 2147483647, %v1048_v2  ;;  %vm1054_vm3 = vweird.f32 %v1048_v2 }
 0x283   :  { %2120 = vrcp.f32 %v1067_v1  ;;  %v1079_v8 = vand.u32 2147483648, %v1067_v1  ;;  %v1077_v62 = vand.u32 2147483647, %v1067_v1  ;;  %vm1073_vm4 = vweird.f32 %v1067_v1 }
 0x284   :  { %v1061_v17 = vor.u32 1.1754944e-38, %v1060_v5  ;;  %vm1059_vm7 = vcmp.eq.f32.partialorder %v1058_v58, 8.507059e+37 }
 0x285   :  { %vm1078_vm8 = vcmp.eq.f32.partialorder %v1077_v62, 8.507059e+37 }
 0x286   :  { %v2117_v63 = vpop.eup %2116 }
 0x287   :  { %v1087_v13 = vadd.f32 1.0, %v2117_v63 }
 0x288   :  { %v2119_v24 = vpop.eup %2118 }
 0x289   :  { %v2121_v10 = vpop.eup %2120  ;;  %v1050_v7 = vmul.f32 %v2119_v24, %v1048_v2  ;;  %2122 = vrcp.f32 %v1087_v13  ;;  %vm1055_vm1 = vweird.f32 %v2119_v24  ;;  %v1099_v5 = vand.u32 2147483648, %v1087_v13 }
 0x28a   :  { %v1069_v25 = vmul.f32 %v2121_v10, %v1067_v1  ;;  %2124 = vtanh.f32 %v1043_v16  ;;  %vm1074_vm2 = vweird.f32 %v2121_v10  ;;  %vm1056_vm5 = vmor %vm1054_vm3, %vm1055_vm1  ;;  %vm1093_vm10 = vweird.f32 %v1087_v13 }
 0x28b   :  { %v1051_v27 = vsub.f32 1.0, %v1050_v7  ;;  %vm1075_vm6 = vmor %vm1073_vm4, %vm1074_vm2  ;;  %v1080_v7 = vor.u32 1.1754944e-38, %v1079_v8  ;;  %v1100_v58 = vor.u32 1.1754944e-38, %v1099_v5  ;;  %v3829_v5 = vld [vmem:[#allocation42_spill] sm:$0xff] }
 0x28c   :  { %v1070_v6 = vsub.f32 1.0, %v1069_v25 }
 0x28d   :  { %v1052_v3 = vmul.f32 %v2119_v24, %v1051_v27 }
 0x28e   :  { %v1071_v4 = vmul.f32 %v2121_v10, %v1070_v6 }
 0x28f   :  { %v2123_v60 = vpop.eup %2122  ;;  %v1053_v63 = vadd.f32 %v2119_v24, %v1052_v3 }
 0x290   :  { %v1072_v12 = vadd.f32 %v2121_v10, %v1071_v4  ;;  %v1089_v56 = vmul.f32 %v2123_v60, %v1087_v13  ;;  %v2125_v16 = vpop.eup %2124  ;;  %vm1094_vm9 = vweird.f32 %v2123_v60  ;;  %v3818_v4 = vld [vmem:[#allocation31_spill] sm:$0xff] }
 0x291   :  { %v1057_v25 = vsel %vm1056_vm5, %v2119_v24, %v1053_v63  ;;  %v1097_v24 = vand.u32 2147483647, %v1087_v13  ;;  %vm1095_vm11 = vmor %vm1093_vm10, %vm1094_vm9  ;;  %v3817_v13 = vld [vmem:[#allocation21_spill] sm:$0xff]  ;;  %v3819_v63 = vld [vmem:[#allocation28_spill] sm:$0xff] }
 0x292   :  { %v1062_v54 = vsel %vm1059_vm7, %v1061_v17, %v1057_v25  ;;  %v1076_v27 = vsel %vm1075_vm6, %v2121_v10, %v1072_v12  ;;  %v1090_v50 = vsub.f32 1.0, %v1089_v56  ;;  %v3820_v17 = vld [vmem:[#allocation22_spill] sm:$0xff]  ;;  %v3821_v12 = vld [vmem:[#allocation23_spill] sm:$0xff]  ;;  %v3823_v25 = vld [vmem:[#allocation29_spill] sm:$0xff] }
 0x293   :  { %v1081_v6 = vsel %vm1078_vm8, %v1080_v7, %v1076_v27  ;;  %v1104_v45 = vmul.f32 %v2125_v16, %v1062_v54  ;;  %vm1098_vm12 = vcmp.eq.f32.partialorder %v1097_v24, 8.507059e+37  ;;  %v3815_v54 = vld [vmem:[#allocation27_spill] sm:$0xff]  ;;  %v3822_v7 = vld [vmem:[#allocation33_spill] sm:$0xff]  ;;  %v3825_v27 = vld [vmem:[#allocation26_spill] sm:$0xff] }
 0x294   :  { %v1103_v33 = vmul.f32 %v1081_v6, %v3189_v11  ;;  %v1091_v3 = vmul.f32 %v2123_v60, %v1090_v50  ;;  %v3811_v11 = vld [vmem:[#allocation36_spill] sm:$0xff]  ;;  %v3814_v50 = vld [vmem:[#allocation30_spill] sm:$0xff]  ;;  %v3824_v16 = vld [vmem:[#allocation25_spill] sm:$0xff] }
 0x295   :  { %v3826_v6 = vld [vmem:[#allocation34_spill] sm:$0xff]  ;;  %v3830_v24 = vld [vmem:[#allocation16_spill] sm:$0xff] }
 0x296   :  { %v3365_v2 = vadd.f32 %v1104_v45, %v1103_v33  ;;  %v1092_v1 = vadd.f32 %v2123_v60, %v1091_v3  ;;  %v3812_v33 = vld [vmem:[#allocation18_spill] sm:$0xff]  ;;  %v3813_v45 = vld [vmem:[#allocation19_spill] sm:$0xff]  ;;  %v3827_v3 = vld [vmem:[#allocation32_spill] sm:$0xff] }
 0x298   :  { %2126 = vtanh.f32 %v3365_v2  ;;  %v1096_v8 = vsel %vm1095_vm11, %v2123_v60, %v1092_v1  ;;  %v3816_v60 = vld [vmem:[#allocation20_spill] sm:$0xff]  ;;  %v3828_v1 = vld [vmem:[#allocation41_spill] sm:$0xff] }
 0x299   :  { %v1101_v56 = vsel %vm1098_vm12, %v1100_v58, %v1096_v8  ;;  %v3831_v8 = vld [vmem:[#allocation15_spill] sm:$0xff]  ;;  %v3832_v58 = vld [vmem:[#allocation61_spill] sm:$0xff] }
 0x29e   :  { %v2127_v62 = vpop.eup %2126 }
 0x29f   :  { %v1107_v10 = vmul.f32 %v2127_v62, %v1101_v56  ;;  %v3833_v62 = vld [vmem:[#allocation62_spill] sm:$0xff]  ;;  %v3834_v56 = vld [vmem:[#allocation63_spill] sm:$0xff] }
 0x2a1   :  { %1128 = vmatmul.f32.vlgmr.msrb.gmra.mxu0 %v1107_v10  ;;  %1148 = vmatmul.f32.vlgmr.msrb.gmra.mxu1 %v1107_v10 }
 0x2a2   :  { %1168 = vmatmul.f32.vlgmr.msra.gmra.mxu2 %v1107_v10  ;;  %1188 = vmatmul.f32.vlgmr.msra.gmra.mxu3 %v1107_v10  ;;  %v3835_v10 = vld [vmem:[#allocation64_spill] sm:$0xff] }
 0x2a3   :  { %1414 = vmatpush.msrb.mxu0 %v3096_v37  ;;  %1434 = vmatpush.msrb.mxu1 %v3099_v55 }
 0x2a4   :  { %1454 = vmatpush.msra.mxu2 %v3194_v36  ;;  %1474 = vmatpush.msra.mxu3 %v3103_v0 }
 0x2a5   :  { %1415 = vmatpush.msrb.mxu0 %v3106_v22  ;;  %1435 = vmatpush.msrb.mxu1 %v3109_v15 }
 0x2a6   :  { %1455 = vmatpush.msra.mxu2 %v3200_v30  ;;  %1475 = vmatpush.msra.mxu3 %v3113_v23 }
 0x2a7   :  { %1416 = vmatpush.msrb.mxu0 %v3116_v43  ;;  %1436 = vmatpush.msrb.mxu1 %v3119_v53 }
 0x2a8   :  { %1456 = vmatpush.msra.mxu2 %v3206_v31  ;;  %1476 = vmatpush.msra.mxu3 %v3209_v20 }
 0x2a9   :  { %1417 = vmatpush.msrb.mxu0 %v3124_v14  ;;  %1437 = vmatpush.msrb.mxu1 %v3127_v59 }
 0x2aa   :  { %1457 = vmatpush.msra.mxu2 %v3214_v35  ;;  %1477 = vmatpush.msra.mxu3 %v3217_v32 }
 0x2ab   :  { %1418 = vmatpush.msrb.mxu0 %v3132_v39  ;;  %1438 = vmatpush.msrb.mxu1 %v3135_v34 }
 0x2ac   :  { %1458 = vmatpush.msra.mxu2 %v3222_v48  ;;  %1478 = vmatpush.msra.mxu3 %v3225_v51 }
 0x2ad   :  { %1419 = vmatpush.msrb.mxu0 %v3228_v29  ;;  %1439 = vmatpush.msrb.mxu1 %v3231_v46 }
 0x2ae   :  { %1459 = vmatpush.msra.mxu2 %v3234_v47  ;;  %1479 = vmatpush.msra.mxu3 %v3237_v41 }
 0x2af   :  { %1420 = vmatpush.msrb.mxu0 %v3240_v49  ;;  %1440 = vmatpush.msrb.mxu1 %v3243_v26 }
 0x2b0   :  { %1460 = vmatpush.msra.mxu2 %v3246_v52  ;;  %1480 = vmatpush.msra.mxu3 %v3249_v42 }
 0x2b1   :  { %1421 = vmatpush.msrb.mxu0 %v3252_v57  ;;  %1441 = vmatpush.msrb.mxu1 %v3255_v40 }
 0x2b2   :  { %1461 = vmatpush.msra.mxu2 %v3258_v19  ;;  %1481 = vmatpush.msra.mxu3 %v3261_v38 }
 0x2b3   :  { %1422 = vmatpush.msrb.mxu0 %v3264_v9  ;;  %1442 = vmatpush.msrb.mxu1 %v3267_v28 }
 0x2b4   :  { %1462 = vmatpush.msra.mxu2 %v3270_v61  ;;  %1482 = vmatpush.msra.mxu3 %v3273_v44 }
 0x2b5   :  { %1423 = vmatpush.msrb.mxu0 %v3276_v21  ;;  %1443 = vmatpush.msrb.mxu1 %v3279_v18 }
 0x2b6   :  { %1463 = vmatpush.msra.mxu2 %v3811_v11  ;;  %1483 = vmatpush.msra.mxu3 %v3812_v33 }
 0x2b7   :  { %1424 = vmatpush.msrb.mxu0 %v3813_v45  ;;  %1444 = vmatpush.msrb.mxu1 %v3814_v50 }
 0x2b8   :  { %1464 = vmatpush.msra.mxu2 %v3815_v54  ;;  %1484 = vmatpush.msra.mxu3 %v3816_v60 }
 0x2b9   :  { %1425 = vmatpush.msrb.mxu0 %v3817_v13  ;;  %1445 = vmatpush.msrb.mxu1 %v3818_v4 }
 0x2ba   :  { %1465 = vmatpush.msra.mxu2 %v3819_v63  ;;  %1485 = vmatpush.msra.mxu3 %v3820_v17 }
 0x2bb   :  { %1426 = vmatpush.msrb.mxu0 %v3821_v12  ;;  %1446 = vmatpush.msrb.mxu1 %v3822_v7 }
 0x2bc   :  { %1466 = vmatpush.msra.mxu2 %v3823_v25  ;;  %1486 = vmatpush.msra.mxu3 %v3824_v16  ;;  %v3837_v16 = vld [vmem:[#allocation13_spill] sm:$0xff]  ;;  %v3838_v25 = vld [vmem:[#allocation14_spill] sm:$0xff] }
 0x2bd   :  { %1427 = vmatpush.msrb.mxu0 %v3825_v27  ;;  %1447 = vmatpush.msrb.mxu1 %v3826_v6  ;;  %v3836_v27 = vld [vmem:[#allocation65_spill] sm:$0xff] }
 0x2be   :  { %1467 = vmatpush.msra.mxu2 %v3827_v3  ;;  %1487 = vmatpush.msra.mxu3 %v3828_v1 }
 0x2bf   :  { %1428 = vmatpush.msrb.mxu0 %v3829_v5  ;;  %1448 = vmatpush.msrb.mxu1 %v3830_v24 }
 0x2c0   :  { %1468 = vmatpush.msra.mxu2 %v3831_v8  ;;  %1488 = vmatpush.msra.mxu3 %v3832_v58  ;;  %v3839_v58 = vld [vmem:[#allocation52_spill] sm:$0xff] }
 0x2c1   :  { %1429 = vmatpush.msrb.mxu0 %v3833_v62  ;;  %1449 = vmatpush.msrb.mxu1 %v3834_v56 }
 0x2c2   :  { %1469 = vmatpush.msra.mxu2 %v3835_v10  ;;  %1489 = vmatpush.msra.mxu3 %v3836_v27 }
 0x31e   :  { %v1129_v6 = vpop.f32.mrf.mxu0  ;;  %v1149_v3 = vpop.f32.mrf.mxu1 }
 0x31f   :  { %v1192_v1 = vadd.f32 %v1129_v6, %v3837_v16  ;;  %v1193_v5 = vadd.f32 %v1149_v3, %v3838_v25  ;;  %v3840_v25 = vld [vmem:[#allocation51_spill] sm:$0xff] }
 0x321   :  { %v2033_v7 = vmul.f32 -1.442695, %v1192_v1  ;;  %v2034_v24 = vmul.f32 -1.442695, %v1193_v5 }
 0x323   :  { %2128 = vpow2.f32 %v2033_v7 }
 0x324   :  { %2130 = vpow2.f32 %v2034_v24 }
 0x325   :  { %v1189_v8 = vpop.f32.mrf.mxu3  ;;  %v1169_v27 = vpop.f32.mrf.mxu2 }
 0x326   :  { %v1195_v12 = vadd.f32 %v1189_v8, %v3839_v58  ;;  %v1194_v3 = vadd.f32 %v1169_v27, %v3840_v25 }
 0x328   :  { %v2035_v62 = vmul.f32 -1.442695, %v1195_v12 }
 0x329   :  { %v2129_v17 = vpop.eup %2128 }
 0x32a   :  { %v2131_v56 = vpop.eup %2130  ;;  %v1199_v63 = vadd.f32 1.0, %v2129_v17  ;;  %2132 = vpow2.f32 %v2035_v62 }
 0x32b   :  { %v1218_v10 = vadd.f32 1.0, %v2131_v56 }
 0x32c   :  { %2134 = vrcp.f32 %v1199_v63  ;;  %v1211_v12 = vand.u32 2147483648, %v1199_v63  ;;  %v1209_v62 = vand.u32 2147483647, %v1199_v63  ;;  %vm1205_vm15 = vweird.f32 %v1199_v63 }
 0x32d   :  { %2136 = vrcp.f32 %v1218_v10  ;;  %v1230_v58 = vand.u32 2147483648, %v1218_v10  ;;  %v1228_v13 = vand.u32 2147483647, %v1218_v10  ;;  %vm1224_vm0 = vweird.f32 %v1218_v10 }
 0x32e   :  { %v1212_v27 = vor.u32 1.1754944e-38, %v1211_v12  ;;  %vm1210_vm3 = vcmp.eq.f32.partialorder %v1209_v62, 8.507059e+37 }
 0x32f   :  { %vm1229_vm4 = vcmp.eq.f32.partialorder %v1228_v13, 8.507059e+37 }
 0x330   :  { %v2133_v4 = vpop.eup %2132 }
 0x331   :  { %v1238_v16 = vadd.f32 1.0, %v2133_v4 }
 0x332   :  { %v2135_v6 = vpop.eup %2134 }
 0x333   :  { %v2137_v1 = vpop.eup %2136  ;;  %v1201_v7 = vmul.f32 %v2135_v6, %v1199_v63  ;;  %2138 = vrcp.f32 %v1238_v16  ;;  %vm1206_vm13 = vweird.f32 %v2135_v6  ;;  %v1250_v12 = vand.u32 2147483648, %v1238_v16 }
 0x334   :  { %v1220_v5 = vmul.f32 %v2137_v1, %v1218_v10  ;;  %2140 = vtanh.f32 %v1194_v3  ;;  %vm1225_vm14 = vweird.f32 %v2137_v1  ;;  %vm1207_vm1 = vmor %vm1205_vm15, %vm1206_vm13  ;;  %vm1244_vm6 = vweird.f32 %v1238_v16 }
 0x335   :  { %v1202_v24 = vsub.f32 1.0, %v1201_v7  ;;  %vm1226_vm2 = vmor %vm1224_vm0, %vm1225_vm14  ;;  %v1231_v7 = vor.u32 1.1754944e-38, %v1230_v58  ;;  %v1251_v62 = vor.u32 1.1754944e-38, %v1250_v12  ;;  %v3868_v12 = vld [vmem:[#allocation47_spill] sm:$0xff] }
 0x336   :  { %v1221_v8 = vsub.f32 1.0, %v1220_v5 }
 0x337   :  { %v1203_v17 = vmul.f32 %v2135_v6, %v1202_v24 }
 0x338   :  { %v1222_v56 = vmul.f32 %v2137_v1, %v1221_v8 }
 0x339   :  { %v2139_v60 = vpop.eup %2138  ;;  %v1204_v4 = vadd.f32 %v2135_v6, %v1203_v17 }
 0x33a   :  { %v1223_v25 = vadd.f32 %v2137_v1, %v1222_v56  ;;  %v1240_v54 = vmul.f32 %v2139_v60, %v1238_v16  ;;  %v2141_v3 = vpop.eup %2140  ;;  %vm1245_vm5 = vweird.f32 %v2139_v60  ;;  %v3860_v56 = vld [vmem:[#allocation16_spill] sm:$0xff] }
 0x33b   :  { %v1208_v5 = vsel %vm1207_vm1, %v2135_v6, %v1204_v4  ;;  %v1248_v6 = vand.u32 2147483647, %v1238_v16  ;;  %vm1246_vm7 = vmor %vm1244_vm6, %vm1245_vm5  ;;  %v3859_v16 = vld [vmem:[#allocation42_spill] sm:$0xff]  ;;  %v3861_v4 = vld [vmem:[#allocation15_spill] sm:$0xff] }
 0x33c   :  { %v1213_v50 = vsel %vm1210_vm3, %v1212_v27, %v1208_v5  ;;  %v1227_v24 = vsel %vm1226_vm2, %v2137_v1, %v1223_v25  ;;  %v1241_v45 = vsub.f32 1.0, %v1240_v54  ;;  %v3862_v27 = vld [vmem:[#allocation61_spill] sm:$0xff]  ;;  %v3863_v25 = vld [vmem:[#allocation62_spill] sm:$0xff]  ;;  %v3865_v5 = vld [vmem:[#allocation64_spill] sm:$0xff] }
 0x33d   :  { %v1232_v8 = vsel %vm1229_vm4, %v1231_v7, %v1227_v24  ;;  %v1255_v33 = vmul.f32 %v2141_v3, %v1213_v50  ;;  %vm1249_vm8 = vcmp.eq.f32.partialorder %v1248_v6, 8.507059e+37  ;;  %v3857_v50 = vld [vmem:[#allocation32_spill] sm:$0xff]  ;;  %v3864_v7 = vld [vmem:[#allocation63_spill] sm:$0xff]  ;;  %v3866_v3 = vld [vmem:[#allocation65_spill] sm:$0xff] }
 0x33e   :  { %v1254_v11 = vmul.f32 %v1232_v8, %v3365_v2  ;;  %v1242_v17 = vmul.f32 %v2139_v60, %v1241_v45  ;;  %v3853_v2 = vld [vmem:[#allocation29_spill] sm:$0xff]  ;;  %v3856_v45 = vld [vmem:[#allocation34_spill] sm:$0xff] }
 0x340   :  { %v3437_v63 = vadd.f32 %v1255_v33, %v1254_v11  ;;  %v1243_v10 = vadd.f32 %v2139_v60, %v1242_v17  ;;  %v3854_v11 = vld [vmem:[#allocation25_spill] sm:$0xff]  ;;  %v3855_v33 = vld [vmem:[#allocation26_spill] sm:$0xff] }
 0x341   :  { %v3867_v17 = vld [vmem:[#allocation17_spill] sm:$0xff] }
 0x342   :  { %2142 = vtanh.f32 %v3437_v63  ;;  %v1247_v58 = vsel %vm1246_vm7, %v2139_v60, %v1243_v10  ;;  %v3858_v60 = vld [vmem:[#allocation41_spill] sm:$0xff] }
 0x343   :  { %v1252_v54 = vsel %vm1249_vm8, %v1251_v62, %v1247_v58 }
 0x348   :  { %v2143_v13 = vpop.eup %2142 }
 0x349   :  { %v1258_v1 = vmul.f32 %v2143_v13, %v1252_v54  ;;  %v3869_v54 = vld [vmem:[#allocation54_spill] sm:$0xff] }
 0x34b   :  { %1279 = vmatmul.f32.vlgmr.msra.gmra.mxu0 %v1258_v1  ;;  %1299 = vmatmul.f32.vlgmr.msra.gmra.mxu1 %v1258_v1 }
 0x34c   :  { %1319 = vmatmul.f32.vlgmr.msrb.gmra.mxu2 %v1258_v1  ;;  %1339 = vmatmul.f32.vlgmr.msrb.gmra.mxu3 %v1258_v1 }
 0x34d   :  { %1565 = vmatpush.msra.mxu0 %v3096_v37  ;;  %1585 = vmatpush.msra.mxu1 %v3099_v55  ;;  %v3841_v37 = vld [vmem:[#allocation36_spill] sm:$0xff]  ;;  %v3842_v55 = vld [vmem:[#allocation18_spill] sm:$0xff] }
 0x34e   :  { %1605 = vmatpush.msrb.mxu2 %v3194_v36  ;;  %1625 = vmatpush.msrb.mxu3 %v3103_v0  ;;  %v3843_v0 = vld [vmem:[#allocation19_spill] sm:$0xff] }
 0x34f   :  { %1566 = vmatpush.msra.mxu0 %v3106_v22  ;;  %1586 = vmatpush.msra.mxu1 %v3109_v15  ;;  %v3844_v22 = vld [vmem:[#allocation30_spill] sm:$0xff]  ;;  %v3845_v15 = vld [vmem:[#allocation27_spill] sm:$0xff] }
 0x350   :  { %1606 = vmatpush.msrb.mxu2 %v3200_v30  ;;  %1626 = vmatpush.msrb.mxu3 %v3113_v23  ;;  %v3846_v23 = vld [vmem:[#allocation20_spill] sm:$0xff] }
 0x351   :  { %1567 = vmatpush.msra.mxu0 %v3116_v43  ;;  %1587 = vmatpush.msra.mxu1 %v3119_v53  ;;  %v3847_v43 = vld [vmem:[#allocation21_spill] sm:$0xff]  ;;  %v3848_v53 = vld [vmem:[#allocation31_spill] sm:$0xff] }
 0x352   :  { %1607 = vmatpush.msrb.mxu2 %v3206_v31  ;;  %1627 = vmatpush.msrb.mxu3 %v3209_v20 }
 0x353   :  { %1568 = vmatpush.msra.mxu0 %v3124_v14  ;;  %1588 = vmatpush.msra.mxu1 %v3127_v59  ;;  %v3849_v14 = vld [vmem:[#allocation28_spill] sm:$0xff]  ;;  %v3850_v59 = vld [vmem:[#allocation22_spill] sm:$0xff] }
 0x354   :  { %1608 = vmatpush.msrb.mxu2 %v3214_v35  ;;  %1628 = vmatpush.msrb.mxu3 %v3217_v32 }
 0x355   :  { %1569 = vmatpush.msra.mxu0 %v3132_v39  ;;  %1589 = vmatpush.msra.mxu1 %v3135_v34  ;;  %v3851_v39 = vld [vmem:[#allocation23_spill] sm:$0xff]  ;;  %v3852_v34 = vld [vmem:[#allocation33_spill] sm:$0xff] }
 0x356   :  { %1609 = vmatpush.msrb.mxu2 %v3222_v48  ;;  %1629 = vmatpush.msrb.mxu3 %v3225_v51 }
 0x357   :  { %1570 = vmatpush.msra.mxu0 %v3228_v29  ;;  %1590 = vmatpush.msra.mxu1 %v3231_v46 }
 0x358   :  { %1610 = vmatpush.msrb.mxu2 %v3234_v47  ;;  %1630 = vmatpush.msrb.mxu3 %v3237_v41 }
 0x359   :  { %1571 = vmatpush.msra.mxu0 %v3240_v49  ;;  %1591 = vmatpush.msra.mxu1 %v3243_v26 }
 0x35a   :  { %1611 = vmatpush.msrb.mxu2 %v3246_v52  ;;  %1631 = vmatpush.msrb.mxu3 %v3249_v42 }
 0x35b   :  { %1572 = vmatpush.msra.mxu0 %v3252_v57  ;;  %1592 = vmatpush.msra.mxu1 %v3255_v40 }
 0x35c   :  { %1612 = vmatpush.msrb.mxu2 %v3258_v19  ;;  %1632 = vmatpush.msrb.mxu3 %v3261_v38 }
 0x35d   :  { %1573 = vmatpush.msra.mxu0 %v3264_v9  ;;  %1593 = vmatpush.msra.mxu1 %v3267_v28 }
 0x35e   :  { %1613 = vmatpush.msrb.mxu2 %v3270_v61  ;;  %1633 = vmatpush.msrb.mxu3 %v3273_v44 }
 0x35f   :  { %1574 = vmatpush.msra.mxu0 %v3276_v21  ;;  %1594 = vmatpush.msra.mxu1 %v3279_v18 }
 0x360   :  { %1614 = vmatpush.msrb.mxu2 %v3841_v37  ;;  %1634 = vmatpush.msrb.mxu3 %v3842_v55 }
 0x361   :  { %1575 = vmatpush.msra.mxu0 %v3843_v0  ;;  %1595 = vmatpush.msra.mxu1 %v3844_v22 }
 0x362   :  { %1615 = vmatpush.msrb.mxu2 %v3845_v15  ;;  %1635 = vmatpush.msrb.mxu3 %v3846_v23 }
 0x363   :  { %1576 = vmatpush.msra.mxu0 %v3847_v43  ;;  %1596 = vmatpush.msra.mxu1 %v3848_v53 }
 0x364   :  { %1616 = vmatpush.msrb.mxu2 %v3849_v14  ;;  %1636 = vmatpush.msrb.mxu3 %v3850_v59 }
 0x365   :  { %1577 = vmatpush.msra.mxu0 %v3851_v39  ;;  %1597 = vmatpush.msra.mxu1 %v3852_v34 }
 0x366   :  { %1617 = vmatpush.msrb.mxu2 %v3853_v2  ;;  %1637 = vmatpush.msrb.mxu3 %v3854_v11 }
 0x367   :  { %1578 = vmatpush.msra.mxu0 %v3855_v33  ;;  %1598 = vmatpush.msra.mxu1 %v3856_v45 }
 0x368   :  { %1618 = vmatpush.msrb.mxu2 %v3857_v50  ;;  %1638 = vmatpush.msrb.mxu3 %v3858_v60 }
 0x369   :  { %1579 = vmatpush.msra.mxu0 %v3859_v16  ;;  %1599 = vmatpush.msra.mxu1 %v3860_v56 }
 0x36a   :  { %1619 = vmatpush.msrb.mxu2 %v3861_v4  ;;  %1639 = vmatpush.msrb.mxu3 %v3862_v27 }
 0x36b   :  { %1580 = vmatpush.msra.mxu0 %v3863_v25  ;;  %1600 = vmatpush.msra.mxu1 %v3864_v7 }
 0x36c   :  { %1620 = vmatpush.msrb.mxu2 %v3865_v5  ;;  %1640 = vmatpush.msrb.mxu3 %v3866_v3 }
 0x3c8   :  { %v1280_v24 = vpop.f32.mrf.mxu0  ;;  %v1300_v8 = vpop.f32.mrf.mxu1 }
 0x3c9   :  { %v1343_v10 = vadd.f32 %v1280_v24, %v3867_v17  ;;  %v1344_v6 = vadd.f32 %v1300_v8, %v3868_v12  ;;  %v3870_v8 = vld [vmem:[#allocation53_spill] sm:$0xff] }
 0x3cb   :  { %v2036_v58 = vmul.f32 -1.442695, %v1343_v10  ;;  %v2037_v62 = vmul.f32 -1.442695, %v1344_v6 }
 0x3cd   :  { %2144 = vpow2.f32 %v2036_v58 }
 0x3ce   :  { %2146 = vpow2.f32 %v2037_v62 }
 0x3cf   :  { %v1340_v13 = vpop.f32.mrf.mxu3  ;;  %v1320_v3 = vpop.f32.mrf.mxu2 }
 0x3d0   :  { %v1346_v1 = vadd.f32 %v1340_v13, %v3869_v54  ;;  %v1345_v10 = vadd.f32 %v1320_v3, %v3870_v8 }
 0x3d2   :  { %v2038_v25 = vmul.f32 -1.442695, %v1346_v1 }
 0x3d3   :  { %v2145_v27 = vpop.eup %2144 }
 0x3d4   :  { %v2147_v7 = vpop.eup %2146  ;;  %v1350_v4 = vadd.f32 1.0, %v2145_v27  ;;  %2148 = vpow2.f32 %v2038_v25 }
 0x3d5   :  { %v1369_v5 = vadd.f32 1.0, %v2147_v7 }
 0x3d6   :  { %2150 = vrcp.f32 %v1350_v4  ;;  %v1362_v54 = vand.u32 2147483648, %v1350_v4  ;;  %v1360_v25 = vand.u32 2147483647, %v1350_v4  ;;  %vm1356_vm11 = vweird.f32 %v1350_v4 }
 0x3d7   :  { %2152 = vrcp.f32 %v1369_v5  ;;  %v1381_v1 = vand.u32 2147483648, %v1369_v5  ;;  %v1379_v56 = vand.u32 2147483647, %v1369_v5  ;;  %vm1375_vm12 = vweird.f32 %v1369_v5 }
 0x3d8   :  { %v1363_v3 = vor.u32 1.1754944e-38, %v1362_v54  ;;  %vm1361_vm15 = vcmp.eq.f32.partialorder %v1360_v25, 8.507059e+37 }
 0x3d9   :  { %vm1380_vm0 = vcmp.eq.f32.partialorder %v1379_v56, 8.507059e+37 }
 0x3da   :  { %v2149_v16 = vpop.eup %2148 }
 0x3db   :  { %v1389_v24 = vadd.f32 1.0, %v2149_v16 }
 0x3dc   :  { %v2151_v17 = vpop.eup %2150 }
 0x3dd   :  { %v2153_v12 = vpop.eup %2152  ;;  %v1352_v6 = vmul.f32 %v2151_v17, %v1350_v4  ;;  %2154 = vrcp.f32 %v1389_v24  ;;  %vm1357_vm9 = vweird.f32 %v2151_v17  ;;  %v1401_v54 = vand.u32 2147483648, %v1389_v24 }
 0x3de   :  { %v1371_v58 = vmul.f32 %v2153_v12, %v1369_v5  ;;  %2156 = vtanh.f32 %v1345_v10  ;;  %vm1376_vm10 = vweird.f32 %v2153_v12  ;;  %vm1358_vm13 = vmor %vm1356_vm11, %vm1357_vm9  ;;  %vm1395_vm2 = vweird.f32 %v1389_v24 }
 0x3df   :  { %v1353_v62 = vsub.f32 1.0, %v1352_v6  ;;  %vm1377_vm14 = vmor %vm1375_vm12, %vm1376_vm10  ;;  %v1382_v6 = vor.u32 1.1754944e-38, %v1381_v1  ;;  %v1402_v25 = vor.u32 1.1754944e-38, %v1401_v54 }
 0x3e0   :  { %v1372_v13 = vsub.f32 1.0, %v1371_v58 }
 0x3e1   :  { %v1354_v27 = vmul.f32 %v2151_v17, %v1353_v62 }
 0x3e2   :  { %v1373_v7 = vmul.f32 %v2153_v12, %v1372_v13 }
 0x3e3   :  { %v2155_v60 = vpop.eup %2154  ;;  %v1355_v16 = vadd.f32 %v2151_v17, %v1354_v27 }
 0x3e4   :  { %v1374_v8 = vadd.f32 %v2153_v12, %v1373_v7  ;;  %v1391_v50 = vmul.f32 %v2155_v60, %v1389_v24  ;;  %v2157_v10 = vpop.eup %2156  ;;  %vm1396_vm1 = vweird.f32 %v2155_v60  ;;  %v2279_v7 = vld [vmem:[#allocation6 + $0x1a0] sm:$0xff] }
 0x3e5   :  { %v1359_v58 = vsel %vm1358_vm13, %v2151_v17, %v1355_v16  ;;  %v1399_v17 = vand.u32 2147483647, %v1389_v24  ;;  %vm1397_vm3 = vmor %vm1395_vm2, %vm1396_vm1  ;;  %v2278_v24 = vld [vmem:[#allocation6 + $0x1a8] sm:$0xff] }
 0x3e6   :  { %v1364_v33 = vsel %vm1361_vm15, %v1363_v3, %v1359_v58  ;;  %v1378_v62 = vsel %vm1377_vm14, %v2153_v12, %v1374_v8  ;;  %v1392_v45 = vsub.f32 1.0, %v1391_v50  ;;  %v2280_v16 = vld [vmem:[#allocation6 + $0x188] sm:$0xff] }
 0x3e7   :  { %v1383_v13 = vsel %vm1380_vm0, %v1382_v6, %v1378_v62  ;;  %v1406_v11 = vmul.f32 %v2157_v10, %v1364_v33  ;;  %vm1400_vm4 = vcmp.eq.f32.partialorder %v1399_v17, 8.507059e+37  ;;  %v2275_v33 = vld [vmem:[#allocation6 + $0x1c8] sm:$0xff] }
 0x3e8   :  { %v1405_v2 = vmul.f32 %v1383_v13, %v3437_v63  ;;  %v1393_v27 = vmul.f32 %v2155_v60, %v1392_v45  ;;  %v2272_v63 = vld [vmem:[#allocation6 + $0x1e8] sm:$0xff]  ;;  %v2276_v45 = vld [vmem:[#allocation6 + $0x1c0] sm:$0xff] }
 0x3e9   :  { %v2282_v3 = vld [vmem:[#allocation6 + $0x168] sm:$0xff] }
 0x3ea   :  { %v3509_v4 = vadd.f32 %v1406_v11, %v1405_v2  ;;  %v1394_v5 = vadd.f32 %v2155_v60, %v1393_v27  ;;  %v2273_v2 = vld [vmem:[#allocation6 + $0x1e0] sm:$0xff]  ;;  %v2274_v11 = vld [vmem:[#allocation6 + $0x1f8] sm:$0xff] }
 0x3ec   :  { %2158 = vtanh.f32 %v3509_v4  ;;  %v1398_v1 = vsel %vm1397_vm3, %v2155_v60, %v1394_v5  ;;  %v2277_v60 = vld [vmem:[#allocation6 + $0x1d8] sm:$0xff] }
 0x3ed   :  { %v1403_v50 = vsel %vm1400_vm4, %v1402_v25, %v1398_v1 }
 0x3f2   :  { %v2159_v56 = vpop.eup %2158 }
 0x3f3   :  { %v1409_v12 = vmul.f32 %v2159_v56, %v1403_v50 }
 0x3f5   :  { %1430 = vmatmul.f32.vlgmr.msrb.gmra.mxu0 %v1409_v12  ;;  %1450 = vmatmul.f32.vlgmr.msrb.gmra.mxu1 %v1409_v12 }
 0x3f6   :  { %1470 = vmatmul.f32.vlgmr.msra.gmra.mxu2 %v1409_v12  ;;  %1490 = vmatmul.f32.vlgmr.msra.gmra.mxu3 %v1409_v12 }
 0x3f7   :  { %1736 = vmatpush.msrb.mxu1 %v2272_v63  ;;  %1716 = vmatpush.msrb.mxu0 %v2273_v2 }
 0x3f8   :  { %1756 = vmatpush.msra.mxu2 %v3194_v36  ;;  %1776 = vmatpush.msra.mxu3 %v2274_v11  ;;  %v2281_v36 = vld [vmem:[#allocation6 + $0x180] sm:$0xff] }
 0x3f9   :  { %1737 = vmatpush.msrb.mxu1 %v2275_v33  ;;  %1717 = vmatpush.msrb.mxu0 %v2276_v45 }
 0x3fa   :  { %1757 = vmatpush.msra.mxu2 %v3200_v30  ;;  %1777 = vmatpush.msra.mxu3 %v2277_v60  ;;  %v2283_v30 = vld [vmem:[#allocation6 + $0x160] sm:$0xff] }
 0x3fb   :  { %1738 = vmatpush.msrb.mxu1 %v2278_v24  ;;  %1718 = vmatpush.msrb.mxu0 %v2279_v7 }
 0x3fc   :  { %1758 = vmatpush.msra.mxu2 %v3206_v31  ;;  %1778 = vmatpush.msra.mxu3 %v3209_v20  ;;  %v3871_v31 = vld [vmem:[#allocation29_spill] sm:$0xff] }
 0x3fd   :  { %1739 = vmatpush.msrb.mxu1 %v2280_v16  ;;  %1719 = vmatpush.msrb.mxu0 %v2281_v36  ;;  %v3872_v20 = vld [vmem:[#allocation25_spill] sm:$0xff] }
 0x3fe   :  { %1759 = vmatpush.msra.mxu2 %v3214_v35  ;;  %1779 = vmatpush.msra.mxu3 %v3217_v32  ;;  %v3873_v35 = vld [vmem:[#allocation34_spill] sm:$0xff] }
 0x3ff   :  { %1740 = vmatpush.msrb.mxu1 %v2282_v3  ;;  %1720 = vmatpush.msrb.mxu0 %v2283_v30  ;;  %v3874_v32 = vld [vmem:[#allocation26_spill] sm:$0xff] }
 0x400   :  { %1760 = vmatpush.msra.mxu2 %v3222_v48  ;;  %1780 = vmatpush.msra.mxu3 %v3225_v51  ;;  %v3875_v48 = vld [vmem:[#allocation32_spill] sm:$0xff]  ;;  %v3876_v51 = vld [vmem:[#allocation41_spill] sm:$0xff] }
 0x401   :  { %1741 = vmatpush.msrb.mxu1 %v3231_v46  ;;  %1721 = vmatpush.msrb.mxu0 %v3228_v29  ;;  %v3877_v29 = vld [vmem:[#allocation16_spill] sm:$0xff]  ;;  %v3878_v46 = vld [vmem:[#allocation42_spill] sm:$0xff] }
 0x402   :  { %1761 = vmatpush.msra.mxu2 %v3234_v47  ;;  %1781 = vmatpush.msra.mxu3 %v3237_v41  ;;  %v3879_v47 = vld [vmem:[#allocation15_spill] sm:$0xff]  ;;  %v3880_v41 = vld [vmem:[#allocation61_spill] sm:$0xff] }
 0x403   :  { %1742 = vmatpush.msrb.mxu1 %v3243_v26  ;;  %1722 = vmatpush.msrb.mxu0 %v3240_v49  ;;  %v3881_v49 = vld [vmem:[#allocation63_spill] sm:$0xff]  ;;  %v3882_v26 = vld [vmem:[#allocation62_spill] sm:$0xff] }
 0x404   :  { %1762 = vmatpush.msra.mxu2 %v3246_v52  ;;  %1782 = vmatpush.msra.mxu3 %v3249_v42  ;;  %v3883_v52 = vld [vmem:[#allocation64_spill] sm:$0xff]  ;;  %v3884_v42 = vld [vmem:[#allocation65_spill] sm:$0xff] }
 0x405   :  { %1743 = vmatpush.msrb.mxu1 %v3255_v40  ;;  %1723 = vmatpush.msrb.mxu0 %v3252_v57 }
 0x406   :  { %1763 = vmatpush.msra.mxu2 %v3258_v19  ;;  %1783 = vmatpush.msra.mxu3 %v3261_v38  ;;  %v3885_v19 = vld [vmem:[#allocation49_spill] sm:$0xff] }
 0x407   :  { %1744 = vmatpush.msrb.mxu1 %v3267_v28  ;;  %1724 = vmatpush.msrb.mxu0 %v3264_v9  ;;  %v3886_v9 = vld [vmem:[#allocation50_spill] sm:$0xff] }
 0x408   :  { %1764 = vmatpush.msra.mxu2 %v3270_v61  ;;  %1784 = vmatpush.msra.mxu3 %v3273_v44 }
 0x409   :  { %1745 = vmatpush.msrb.mxu1 %v3279_v18  ;;  %1725 = vmatpush.msrb.mxu0 %v3276_v21  ;;  %v3887_v18 = vld [vmem:[#allocation56_spill] sm:$0xff] }
 0x40a   :  { %1765 = vmatpush.msra.mxu2 %v3841_v37  ;;  %1785 = vmatpush.msra.mxu3 %v3842_v55 }
 0x40b   :  { %1746 = vmatpush.msrb.mxu1 %v3844_v22  ;;  %1726 = vmatpush.msrb.mxu0 %v3843_v0 }
 0x40c   :  { %1766 = vmatpush.msra.mxu2 %v3845_v15  ;;  %1786 = vmatpush.msra.mxu3 %v3846_v23 }
 0x40d   :  { %1747 = vmatpush.msrb.mxu1 %v3848_v53  ;;  %1727 = vmatpush.msrb.mxu0 %v3847_v43 }
 0x40e   :  { %1767 = vmatpush.msra.mxu2 %v3849_v14  ;;  %1787 = vmatpush.msra.mxu3 %v3850_v59 }
 0x40f   :  { %1748 = vmatpush.msrb.mxu1 %v3852_v34  ;;  %1728 = vmatpush.msrb.mxu0 %v3851_v39  ;;  %v3888_v39 = vld [vmem:[#allocation55_spill] sm:$0xff] }
 0x410   :  { %1768 = vmatpush.msra.mxu2 %v3871_v31  ;;  %1788 = vmatpush.msra.mxu3 %v3872_v20 }
 0x411   :  { %1749 = vmatpush.msrb.mxu1 %v3873_v35  ;;  %1729 = vmatpush.msrb.mxu0 %v3874_v32 }
 0x412   :  { %1769 = vmatpush.msra.mxu2 %v3875_v48  ;;  %1789 = vmatpush.msra.mxu3 %v3876_v51 }
 0x413   :  { %1750 = vmatpush.msrb.mxu1 %v3877_v29  ;;  %1730 = vmatpush.msrb.mxu0 %v3878_v46 }
 0x414   :  { %1770 = vmatpush.msra.mxu2 %v3879_v47  ;;  %1790 = vmatpush.msra.mxu3 %v3880_v41  ;;  %v1893_v47 = vld [vmem:[#allocation8 + $0xf0] sm:$0xff]  ;;  %v1892_v41 = vld [vmem:[#allocation8 + $0xe8] sm:$0xff] }
 0x415   :  { %1751 = vmatpush.msrb.mxu1 %v3881_v49  ;;  %1731 = vmatpush.msrb.mxu0 %v3882_v26  ;;  %v1891_v49 = vld [vmem:[#allocation8 + $0xe0] sm:$0xff]  ;;  %v1890_v26 = vld [vmem:[#allocation8 + $0xd8] sm:$0xff] }
 0x416   :  { %1771 = vmatpush.msra.mxu2 %v3883_v52  ;;  %1791 = vmatpush.msra.mxu3 %v3884_v42  ;;  %v3889_v52 = vld [vmem:[#allocation38_spill] sm:$0xff]  ;;  %v3890_v42 = vld [vmem:[#allocation37_spill] sm:$0xff] }
 0x472   :  { %v1431_v57 = vpop.f32.mrf.mxu0  ;;  %v1451_v40 = vpop.f32.mrf.mxu1 }
 0x473   :  { %v1494_v38 = vadd.f32 %v1431_v57, %v3885_v19  ;;  %v1495_v28 = vadd.f32 %v1451_v40, %v3886_v9  ;;  %v190_v57 = vadd.f32 %v3890_v42, %v3889_v52  ;;  %v3891_v40 = vld [vmem:[#allocation40_spill] sm:$0xff]  ;;  %v3892_v19 = vld [vmem:[#allocation39_spill] sm:$0xff]  ;;  %v1889_v9 = vld [vmem:[#allocation8 + $0xd0] sm:$0xff] }
 0x475   :  { %v2039_v61 = vmul.f32 -1.442695, %v1494_v38  ;;  %v2040_v44 = vmul.f32 -1.442695, %v1495_v28  ;;  %v231_v38 = vadd.f32 %v3892_v19, %v3891_v40 }
 0x477   :  { %2160 = vpow2.f32 %v2039_v61 }
 0x478   :  { %2162 = vpow2.f32 %v2040_v44 }
 0x479   :  { %v1491_v21 = vpop.f32.mrf.mxu3  ;;  %v1471_v43 = vpop.f32.mrf.mxu2 }
 0x47a   :  { %v1497_v37 = vadd.f32 %v1491_v21, %v3887_v18  ;;  %v1496_v34 = vadd.f32 %v1471_v43, %v3888_v39  ;;  %v1888_v18 = vld [vmem:[#allocation8 + $0xc8] sm:$0xff] }
 0x47b   :  { %v1884_v43 = vld [vmem:[#allocation8 + $0xa8] sm:$0xff] }
 0x47c   :  { %v2041_v55 = vmul.f32 -1.442695, %v1497_v37 }
 0x47d   :  { %v2161_v0 = vpop.eup %2160 }
 0x47e   :  { %v2163_v22 = vpop.eup %2162  ;;  %v1501_v15 = vadd.f32 1.0, %v2161_v0  ;;  %2164 = vpow2.f32 %v2041_v55  ;;  %v1887_v0 = vld [vmem:[#allocation8 + $0xc0] sm:$0xff] }
 0x47f   :  { %v1520_v23 = vadd.f32 1.0, %v2163_v22  ;;  %v1886_v22 = vld [vmem:[#allocation8 + $0xb8] sm:$0xff] }
 0x480   :  { %2166 = vrcp.f32 %v1501_v15  ;;  %v1513_v13 = vand.u32 2147483648, %v1501_v15  ;;  %v1511_v54 = vand.u32 2147483647, %v1501_v15  ;;  %vm1507_vm7 = vweird.f32 %v1501_v15 }
 0x481   :  { %2168 = vrcp.f32 %v1520_v23  ;;  %v1532_v27 = vand.u32 2147483648, %v1520_v23  ;;  %v1530_v1 = vand.u32 2147483647, %v1520_v23  ;;  %vm1526_vm8 = vweird.f32 %v1520_v23 }
 0x482   :  { %v1514_v50 = vor.u32 1.1754944e-38, %v1513_v13  ;;  %vm1512_vm11 = vcmp.eq.f32.partialorder %v1511_v54, 8.507059e+37  ;;  %v1880_v13 = vld [vmem:[#allocation8 + $0x88] sm:$0xff]  ;;  %v1879_v54 = vld [vmem:[#allocation8 + $0x80] sm:$0xff] }
 0x483   :  { %v1533_v2 = vor.u32 1.1754944e-38, %v1532_v27  ;;  %vm1531_vm12 = vcmp.eq.f32.partialorder %v1530_v1, 8.507059e+37 }
 0x484   :  { %v2165_v53 = vpop.eup %2164 }
 0x485   :  { %v1540_v14 = vadd.f32 1.0, %v2165_v53  ;;  %v3893_v53 = vld [vmem:[#allocation58_spill] sm:$0xff] }
 0x486   :  { %v2167_v59 = vpop.eup %2166 }
 0x487   :  { %v2169_v8 = vpop.eup %2168  ;;  %v1503_v6 = vmul.f32 %v2167_v59, %v1501_v15  ;;  %2170 = vrcp.f32 %v1540_v14  ;;  %vm1508_vm5 = vweird.f32 %v2167_v59  ;;  %v1552_v20 = vand.u32 2147483648, %v1540_v14  ;;  %v1885_v15 = vld [vmem:[#allocation8 + $0xb0] sm:$0xff] }
 0x488   :  { %v1522_v58 = vmul.f32 %v2169_v8, %v1520_v23  ;;  %2172 = vtanh.f32 %v1496_v34  ;;  %vm1527_vm6 = vweird.f32 %v2169_v8  ;;  %vm1509_vm9 = vmor %vm1507_vm7, %vm1508_vm5  ;;  %vm1546_vm14 = vweird.f32 %v1540_v14 }
 0x489   :  { %v1504_v10 = vsub.f32 1.0, %v1503_v6  ;;  %vm1528_vm10 = vmor %vm1526_vm8, %vm1527_vm6  ;;  %v1550_v35 = vand.u32 2147483647, %v1540_v14  ;;  %v1553_v48 = vor.u32 1.1754944e-38, %v1552_v20 }
 0x48a   :  { %v1523_v62 = vsub.f32 1.0, %v1522_v58 }
 0x48b   :  { %v1505_v5 = vmul.f32 %v2167_v59, %v1504_v10  ;;  %vm1551_vm0 = vcmp.eq.f32.partialorder %v1550_v35, 8.507059e+37  ;;  %v1882_v10 = vld [vmem:[#allocation8 + $0x98] sm:$0xff] }
 0x48c   :  { %v1524_v17 = vmul.f32 %v2169_v8, %v1523_v62  ;;  %v1881_v62 = vld [vmem:[#allocation8 + $0x90] sm:$0xff] }
 0x48d   :  { %v2171_v25 = vpop.eup %2170  ;;  %v1506_v56 = vadd.f32 %v2167_v59, %v1505_v5 }
 0x48e   :  { %v1525_v12 = vadd.f32 %v2169_v8, %v1524_v17  ;;  %v1542_v63 = vmul.f32 %v2171_v25, %v1540_v14  ;;  %v2173_v33 = vpop.eup %2172  ;;  %vm1547_vm13 = vweird.f32 %v2171_v25 }
 0x48f   :  { %v1510_v11 = vsel %vm1509_vm9, %v2167_v59, %v1506_v56  ;;  %vm1548_vm15 = vmor %vm1546_vm14, %vm1547_vm13  ;;  %v1883_v59 = vld [vmem:[#allocation8 + $0xa0] sm:$0xff] }
 0x490   :  { %v1515_v45 = vsel %vm1512_vm11, %v1514_v50, %v1510_v11  ;;  %v1529_v60 = vsel %vm1528_vm10, %v2169_v8, %v1525_v12  ;;  %v1543_v24 = vsub.f32 1.0, %v1542_v63 }
 0x491   :  { %v1534_v7 = vsel %vm1531_vm12, %v1533_v2, %v1529_v60  ;;  %v1557_v16 = vmul.f32 %v2173_v33, %v1515_v45 }
 0x492   :  { %v1556_v36 = vmul.f32 %v1534_v7, %v3509_v4  ;;  %v1544_v3 = vmul.f32 %v2171_v25, %v1543_v24  ;;  %v1894_v4 = vld [vmem:[#allocation8 + $0xf8] sm:$0xff] }
 0x494   :  { %v3569_v30 = vadd.f32 %v1557_v16, %v1556_v36  ;;  %v1545_v31 = vadd.f32 %v2171_v25, %v1544_v3 }
 0x496   :  { %2174 = vtanh.f32 %v3569_v30  ;;  %v1549_v32 = vsel %vm1548_vm15, %v2171_v25, %v1545_v31  ;;  %v3894_v25 = vld [vmem:[#allocation57_spill] sm:$0xff] }
 0x497   :  { %v1554_v29 = vsel %vm1551_vm0, %v1553_v48, %v1549_v32 }
 0x49c   :  { %v2175_v51 = vpop.eup %2174 }
 0x49d   :  { %v1560_v46 = vmul.f32 %v2175_v51, %v1554_v29 }
 0x49f   :  { %1581 = vmatmul.f32.vlgmr.msra.gmra.mxu0 %v1560_v46  ;;  %1601 = vmatmul.f32.vlgmr.msra.gmra.mxu1 %v1560_v46 }
 0x4a0   :  { %1621 = vmatmul.f32.vlgmr.msrb.gmra.mxu2 %v1560_v46  ;;  %1641 = vmatmul.f32.vlgmr.msrb.gmra.mxu3 %v1560_v46 }
 0x4a1   :  { %1919 = vmatpush.msra.mxu1 %v1894_v4 }
 0x4a3   :  { %1920 = vmatpush.msra.mxu1 %v1893_v47 }
 0x4a5   :  { %1921 = vmatpush.msra.mxu1 %v1892_v41 }
 0x4a7   :  { %1922 = vmatpush.msra.mxu1 %v1891_v49 }
 0x4a9   :  { %1923 = vmatpush.msra.mxu1 %v1890_v26 }
 0x4ab   :  { %1924 = vmatpush.msra.mxu1 %v1889_v9 }
 0x4ad   :  { %1925 = vmatpush.msra.mxu1 %v1888_v18  ;;  %v1878_v18 = vld [vmem:[#allocation8 + $0x78] sm:$0xff] }
 0x4ae   :  { %1899 = vmatpush.msra.mxu0 %v1878_v18 }
 0x4af   :  { %1926 = vmatpush.msra.mxu1 %v1887_v0  ;;  %v1875_v0 = vld [vmem:[#allocation8 + $0x60] sm:$0xff] }
 0x4b1   :  { %1927 = vmatpush.msra.mxu1 %v1886_v22  ;;  %v1874_v22 = vld [vmem:[#allocation8 + $0x58] sm:$0xff] }
 0x4b3   :  { %1928 = vmatpush.msra.mxu1 %v1885_v15  ;;  %v1873_v15 = vld [vmem:[#allocation8 + $0x50] sm:$0xff] }
 0x4b5   :  { %1929 = vmatpush.msra.mxu1 %v1884_v43  ;;  %v1871_v43 = vld [vmem:[#allocation8 + $0x40] sm:$0xff] }
 0x4b7   :  { %1930 = vmatpush.msra.mxu1 %v1883_v59 }
 0x4b9   :  { %1931 = vmatpush.msra.mxu1 %v1882_v10 }
 0x4bb   :  { %1932 = vmatpush.msra.mxu1 %v1881_v62 }
 0x4bd   :  { %1933 = vmatpush.msra.mxu1 %v1880_v13  ;;  %v1868_v13 = vld [vmem:[#allocation8 + $0x28] sm:$0xff] }
 0x4bf   :  { %1934 = vmatpush.msra.mxu1 %v1879_v54  ;;  %v1867_v54 = vld [vmem:[#allocation8 + $0x20] sm:$0xff] }
 0x51c   :  { %v1582_v28 = vpop.f32.mrf.mxu0  ;;  %v1602_v61 = vpop.f32.mrf.mxu1 }
 0x51d   :  { %v1645_v44 = vadd.f32 %v1582_v28, %v190_v57  ;;  %v1646_v21 = vadd.f32 %v1602_v61, %v231_v38 }
 0x51f   :  { %v2042_v37 = vmul.f32 -1.442695, %v1645_v44  ;;  %v2043_v55 = vmul.f32 -1.442695, %v1646_v21 }
 0x521   :  { %2176 = vpow2.f32 %v2042_v37  ;;  %v1877_v37 = vld [vmem:[#allocation8 + $0x70] sm:$0xff] }
 0x522   :  { %2178 = vpow2.f32 %v2043_v55  ;;  %1900 = vmatpush.msra.mxu0 %v1877_v37  ;;  %v1876_v55 = vld [vmem:[#allocation8 + $0x68] sm:$0xff] }
 0x523   :  { %v1642_v23 = vpop.f32.mrf.mxu3  ;;  %v1622_v27 = vpop.f32.mrf.mxu2 }
 0x524   :  { %v1648_v14 = vadd.f32 %v1642_v23, %v3893_v53  ;;  %v1647_v56 = vadd.f32 %v1622_v27, %v3894_v25  ;;  %1901 = vmatpush.msra.mxu0 %v1876_v55  ;;  %v1872_v23 = vld [vmem:[#allocation8 + $0x48] sm:$0xff]  ;;  %v1870_v53 = vld [vmem:[#allocation8 + $0x38] sm:$0xff] }
 0x525   :  { %v1864_v25 = vld [vmem:[#allocation8 + $0x8] sm:$0xff] }
 0x526   :  { %v2044_v39 = vmul.f32 -1.442695, %v1648_v14  ;;  %1902 = vmatpush.msra.mxu0 %v1875_v0  ;;  %v3896_v14 = vld [vmem:[#allocation43_spill] sm:$0xff] }
 0x527   :  { %v2177_v34 = vpop.eup %2176  ;;  %v193_v59 = vadd.f32 %v3896_v14, %v3889_v52 }
 0x528   :  { %v2179_v8 = vpop.eup %2178  ;;  %v1652_v6 = vadd.f32 1.0, %v2177_v34  ;;  %2180 = vpow2.f32 %v2044_v39  ;;  %1903 = vmatpush.msra.mxu0 %v1874_v22  ;;  %v3897_v39 = vld [vmem:[#allocation44_spill] sm:$0xff] }
 0x529   :  { %v1671_v58 = vadd.f32 1.0, %v2179_v8  ;;  %v234_v34 = vadd.f32 %v3897_v39, %v3891_v40  ;;  %v1869_v8 = vld [vmem:[#allocation8 + $0x30] sm:$0xff]  ;;  %v3898_v40 = vld [vmem:[#allocation60_spill] sm:$0xff] }
 0x52a   :  { %2182 = vrcp.f32 %v1652_v6  ;;  %v1664_v33 = vand.u32 2147483648, %v1652_v6  ;;  %v1662_v24 = vand.u32 2147483647, %v1652_v6  ;;  %vm1658_vm3 = vweird.f32 %v1652_v6  ;;  %1904 = vmatpush.msra.mxu0 %v1873_v15 }
 0x52b   :  { %2184 = vrcp.f32 %v1671_v58  ;;  %v1683_v45 = vand.u32 2147483648, %v1671_v58  ;;  %v1681_v16 = vand.u32 2147483647, %v1671_v58  ;;  %vm1677_vm4 = vweird.f32 %v1671_v58 }
 0x52c   :  { %v1665_v31 = vor.u32 1.1754944e-38, %v1664_v33  ;;  %vm1663_vm7 = vcmp.eq.f32.partialorder %v1662_v24, 8.507059e+37  ;;  %1905 = vmatpush.msra.mxu0 %v1872_v23 }
 0x52d   :  { %v1684_v32 = vor.u32 1.1754944e-38, %v1683_v45  ;;  %vm1682_vm8 = vcmp.eq.f32.partialorder %v1681_v16, 8.507059e+37  ;;  %v3899_v16 = vld [vmem:[#allocation59_spill] sm:$0xff] }
 0x52e   :  { %v2181_v5 = vpop.eup %2180  ;;  %1906 = vmatpush.msra.mxu0 %v1871_v43 }
 0x52f   :  { %v1691_v17 = vadd.f32 1.0, %v2181_v5 }
 0x530   :  { %v2183_v1 = vpop.eup %2182  ;;  %1907 = vmatpush.msra.mxu0 %v1870_v53 }
 0x531   :  { %v2185_v50 = vpop.eup %2184  ;;  %v1654_v12 = vmul.f32 %v2183_v1, %v1652_v6  ;;  %2186 = vrcp.f32 %v1691_v17  ;;  %vm1659_vm1 = vweird.f32 %v2183_v1  ;;  %v1703_v19 = vand.u32 2147483648, %v1691_v17 }
 0x532   :  { %v1673_v63 = vmul.f32 %v2185_v50, %v1671_v58  ;;  %2188 = vtanh.f32 %v1647_v56  ;;  %vm1678_vm2 = vweird.f32 %v2185_v50  ;;  %vm1660_vm5 = vmor %vm1658_vm3, %vm1659_vm1  ;;  %vm1697_vm10 = vweird.f32 %v1691_v17  ;;  %1908 = vmatpush.msra.mxu0 %v1869_v8 }
 0x533   :  { %v1655_v2 = vsub.f32 1.0, %v1654_v12  ;;  %vm1679_vm6 = vmor %vm1677_vm4, %vm1678_vm2  ;;  %v1701_v38 = vand.u32 2147483647, %v1691_v17  ;;  %v1704_v28 = vor.u32 1.1754944e-38, %v1703_v19 }
 0x534   :  { %v1674_v11 = vsub.f32 1.0, %v1673_v63  ;;  %1909 = vmatpush.msra.mxu0 %v1868_v13 }
 0x535   :  { %v1656_v60 = vmul.f32 %v2183_v1, %v1655_v2  ;;  %vm1702_vm12 = vcmp.eq.f32.partialorder %v1701_v38, 8.507059e+37 }
 0x536   :  { %v1675_v7 = vmul.f32 %v2185_v50, %v1674_v11  ;;  %1910 = vmatpush.msra.mxu0 %v1867_v54 }
 0x537   :  { %v2187_v36 = vpop.eup %2186  ;;  %v1657_v3 = vadd.f32 %v2183_v1, %v1656_v60 }
 0x538   :  { %v1676_v20 = vadd.f32 %v2185_v50, %v1675_v7  ;;  %v1693_v35 = vmul.f32 %v2187_v36, %v1691_v17  ;;  %v2189_v51 = vpop.eup %2188  ;;  %vm1698_vm9 = vweird.f32 %v2187_v36  ;;  %v1866_v17 = vld [vmem:[#allocation8 + $0x18] sm:$0xff] }
 0x539   :  { %v1661_v48 = vsel %vm1660_vm5, %v2183_v1, %v1657_v3  ;;  %vm1699_vm11 = vmor %vm1697_vm10, %vm1698_vm9  ;;  %v1865_v1 = vld [vmem:[#allocation8 + $0x10] sm:$0xff]  ;;  %1911 = vmatpush.msra.mxu0 %v1866_v17 }
 0x53a   :  { %v1666_v29 = vsel %vm1663_vm7, %v1665_v31, %v1661_v48  ;;  %v1680_v46 = vsel %vm1679_vm6, %v2185_v50, %v1676_v20  ;;  %v1694_v4 = vsub.f32 1.0, %v1693_v35  ;;  %v1863_v50 = vld [vmem:[#allocation8] sm:$0xff] }
 0x53b   :  { %v1685_v47 = vsel %vm1682_vm8, %v1684_v32, %v1680_v46  ;;  %v1708_v41 = vmul.f32 %v2189_v51, %v1666_v29  ;;  %1912 = vmatpush.msra.mxu0 %v1865_v1 }
 0x53c   :  { %v1707_v49 = vmul.f32 %v1685_v47, %v3569_v30  ;;  %v1695_v26 = vmul.f32 %v2187_v36, %v1694_v4  ;;  %v3895_v30 = vld [vmem:[#allocation35_spill] sm:$0xff] }
 0x53d   :  { %1913 = vmatpush.msra.mxu0 %v1864_v25 }
 0x53e   :  { %v3579_v42 = vadd.f32 %v1708_v41, %v1707_v49  ;;  %v1696_v57 = vadd.f32 %v2187_v36, %v1695_v26 }
 0x53f   :  { %1914 = vmatpush.msra.mxu0 %v1863_v50 }
 0x540   :  { %2190 = vtanh.f32 %v3579_v42  ;;  %v1700_v9 = vsel %vm1699_vm11, %v2187_v36, %v1696_v57 }
 0x541   :  { %v1705_v44 = vsel %vm1702_vm12, %v1704_v28, %v1700_v9 }
 0x546   :  { %v2191_v61 = vpop.eup %2190 }
 0x547   :  { %v1711_v21 = vmul.f32 %v2191_v61, %v1705_v44 }
 0x549   :  { %1732 = vmatmul.f32.vlgmr.msrb.gmra.mxu0 %v1711_v21  ;;  %1752 = vmatmul.f32.vlgmr.msrb.gmra.mxu1 %v1711_v21 }
 0x54a   :  { %1772 = vmatmul.f32.vlgmr.msra.gmra.mxu2 %v1711_v21  ;;  %1792 = vmatmul.f32.vlgmr.msra.gmra.mxu3 %v1711_v21 }
 0x551   :  { %1935 = vmatmul.f32.vlgmr.msra.gmra.mxu1 %v3895_v30 }
 0x5c6   :  { %v1733_v6 = vpop.f32.mrf.mxu0  ;;  %v1753_v58 = vpop.f32.mrf.mxu1 }
 0x5c7   :  { %v1796_v10 = vadd.f32 %v1733_v6, %v193_v59  ;;  %v1797_v62 = vadd.f32 %v1753_v58, %v234_v34 }
 0x5c9   :  { %v2045_v27 = vmul.f32 -1.442695, %v1796_v10  ;;  %v2046_v5 = vmul.f32 -1.442695, %v1797_v62 }
 0x5cb   :  { %2192 = vpow2.f32 %v2045_v27 }
 0x5cc   :  { %2194 = vpow2.f32 %v2046_v5 }
 0x5cd   :  { %v1793_v52 = vpop.f32.mrf.mxu3  ;;  %v1773_v45 = vpop.f32.mrf.mxu2 }
 0x5ce   :  { %v1799_v56 = vadd.f32 %v1793_v52, %v3898_v40  ;;  %v1798_v36 = vadd.f32 %v1773_v45, %v3899_v16  ;;  %v1936_v6 = vpop.f32.mrf.mxu1 }
 0x5d0   :  { %v2047_v12 = vmul.f32 -1.442695, %v1799_v56 }
 0x5d1   :  { %v2193_v63 = vpop.eup %2192 }
 0x5d2   :  { %v2195_v2 = vpop.eup %2194  ;;  %v1803_v11 = vadd.f32 1.0, %v2193_v63  ;;  %2196 = vpow2.f32 %v2047_v12 }
 0x5d3   :  { %v1822_v33 = vadd.f32 1.0, %v2195_v2 }
 0x5d4   :  { %2198 = vrcp.f32 %v1803_v11  ;;  %v1815_v48 = vand.u32 2147483648, %v1803_v11  ;;  %v1813_v46 = vand.u32 2147483647, %v1803_v11  ;;  %vm1809_vm15 = vweird.f32 %v1803_v11 }
 0x5d5   :  { %2200 = vrcp.f32 %v1822_v33  ;;  %v1834_v51 = vand.u32 2147483648, %v1822_v33  ;;  %v1832_v47 = vand.u32 2147483647, %v1822_v33  ;;  %vm1828_vm0 = vweird.f32 %v1822_v33 }
 0x5d6   :  { %v1816_v26 = vor.u32 1.1754944e-38, %v1815_v48  ;;  %vm1814_vm3 = vcmp.eq.f32.partialorder %v1813_v46, 8.507059e+37 }
 0x5d7   :  { %v1835_v38 = vor.u32 1.1754944e-38, %v1834_v51  ;;  %vm1833_vm4 = vcmp.eq.f32.partialorder %v1832_v47, 8.507059e+37 }
 0x5d8   :  { %v2197_v60 = vpop.eup %2196 }
 0x5d9   :  { %v1842_v24 = vadd.f32 1.0, %v2197_v60 }
 0x5da   :  { %v2199_v7 = vpop.eup %2198 }
 0x5db   :  { %v2201_v3 = vpop.eup %2200  ;;  %v1805_v31 = vmul.f32 %v2199_v7, %v1803_v11  ;;  %2202 = vrcp.f32 %v1842_v24  ;;  %vm1810_vm13 = vweird.f32 %v2199_v7  ;;  %v1854_v15 = vand.u32 2147483648, %v1842_v24 }
 0x5dc   :  { %v1824_v20 = vmul.f32 %v2201_v3, %v1822_v33  ;;  %2204 = vtanh.f32 %v1798_v36  ;;  %vm1829_vm14 = vweird.f32 %v2201_v3  ;;  %vm1811_vm1 = vmor %vm1809_vm15, %vm1810_vm13  ;;  %vm1848_vm6 = vweird.f32 %v1842_v24 }
 0x5dd   :  { %v1806_v35 = vsub.f32 1.0, %v1805_v31  ;;  %vm1830_vm2 = vmor %vm1828_vm0, %vm1829_vm14  ;;  %v1852_v23 = vand.u32 2147483647, %v1842_v24  ;;  %v1855_v53 = vor.u32 1.1754944e-38, %v1854_v15 }
 0x5de   :  { %v1825_v32 = vsub.f32 1.0, %v1824_v20 }
 0x5df   :  { %v1807_v29 = vmul.f32 %v2199_v7, %v1806_v35  ;;  %vm1853_vm8 = vcmp.eq.f32.partialorder %v1852_v23, 8.507059e+37 }
 0x5e0   :  { %v1826_v4 = vmul.f32 %v2201_v3, %v1825_v32 }
 0x5e1   :  { %v2203_v41 = vpop.eup %2202  ;;  %v1808_v49 = vadd.f32 %v2199_v7, %v1807_v29 }
 0x5e2   :  { %v1827_v57 = vadd.f32 %v2201_v3, %v1826_v4  ;;  %v1844_v19 = vmul.f32 %v2203_v41, %v1842_v24  ;;  %v2205_v28 = vpop.eup %2204  ;;  %vm1849_vm5 = vweird.f32 %v2203_v41 }
 0x5e3   :  { %v1812_v9 = vsel %vm1811_vm1, %v2199_v7, %v1808_v49  ;;  %vm1850_vm7 = vmor %vm1848_vm6, %vm1849_vm5 }
 0x5e4   :  { %v1817_v61 = vsel %vm1814_vm3, %v1816_v26, %v1812_v9  ;;  %v1831_v44 = vsel %vm1830_vm2, %v2201_v3, %v1827_v57  ;;  %v1845_v21 = vsub.f32 1.0, %v1844_v19 }
 0x5e5   :  { %v1836_v30 = vsel %vm1833_vm4, %v1835_v38, %v1831_v44  ;;  %v1859_v18 = vmul.f32 %v2205_v28, %v1817_v61 }
 0x5e6   :  { %v1858_v37 = vmul.f32 %v1836_v30, %v3579_v42  ;;  %v1846_v55 = vmul.f32 %v2203_v41, %v1845_v21  ;;  %v2067_v42 = vld [vmem:[%s3601_s5] ss:$0 sm:$0xff] }
 0x5e8   :  { %v1860_v0 = vadd.f32 %v1859_v18, %v1858_v37  ;;  %v1847_v22 = vadd.f32 %v2203_v41, %v1846_v55 }
 0x5ea   :  { %2206 = vtanh.f32 %v1860_v0  ;;  %v1851_v43 = vsel %vm1850_vm7, %v2203_v41, %v1847_v22 }
 0x5eb   :  { %v1856_v59 = vsel %vm1853_vm8, %v1855_v53, %v1851_v43 }
 0x5f0   :  { %v2207_v14 = vpop.eup %2206 }
 0x5f1   :  { %v1862_v39 = vmul.f32 %v2207_v14, %v1856_v59 }
 0x5f3   :  { %1915 = vmatmul.f32.vlgmr.msra.gmra.mxu0 %v1862_v39 }
 0x670   :  { %v1916_v34 = vpop.f32.mrf.mxu0 }
 0x671   :  { %v1917_v8 = vadd.f32 %v2067_v42, %v1916_v34 }
 0x673   :  { %v1937_v58 = vadd.f32 %v1936_v6, %v1917_v8 }
 0x675   :  { %1939 = vst [vmem:[#allocation9] sm:$0xff] %v1937_v58 }
 0x676   :  { %1950 = dma.vmem_to_hbm [thread:$0]  %s1946_s10, 128, %s1948_s12, [#allocation5]  }
 0x677   :  { %2384 = dma.done.wait [#allocation5], 128  }
 0x678   :  { %2385 = vsyncadd [#allocation5], 4294967168 }
 0x679   :  { %1955 = vsyncpa [#allocation4], 1 }
 0x67a   :  { %1956 = vsyncpa [#allocation7], 1 }
 0x67b   :  { %1957 = vsyncpa [#allocation5], 1 }

</bundles_post_ra>
